<compile_context>
chip_gen: v6e
topology: v6e:2x2x1
jax: 0.10.0
libtpu: 0.0.40
codegen_flags: <defaults>
</compile_context>

<pallas_src>
import numpy as np
import jax
import jax.numpy as jnp
from jax.experimental import pallas as pl
from jax.experimental.pallas import tpu as pltpu

# ----------------------- small synthetic "Config" -----------------------
VOCAB = 100
WORD_DIM = 32            # word_embedding_dim
MAX_TITLE = 16           # max_title_length
HEAD_NUM = 4
HEAD_DIM = 8
FEAT_DIM = HEAD_NUM * HEAD_DIM          # 32
ATT_DIM = 16             # attention_dim
CAT_NUM = 10
CAT_DIM = 8              # category_embedding_dim
SUBCAT_NUM = 10
SUBCAT_DIM = 8           # subCategory_embedding_dim
ENT_DIM = 16             # entity_embedding_dim
ENT_ATT_DIM = 16         # entity_attention_dim
ENT_ATT_HEADS = 3        # entity_att_head_num
ENT_HID = 16             # entity_hidden_dim
PRE_EMB_D = 32           # pretrain_emb_d
PRE_HID = 32             # pretrain_hidden_dim
PRE_REP_D = 16           # pretrain_rep_d
MAX_ENT = 8              # max_linked_entity_length
GAT_IN = 16
GAT_HID = 16
GAT_OUT = 16
GAT_HEADS = 2
NODES_PER_GRAPH = 4

B, N_NEWS = 2, 3
BN = B * N_NEWS
NEWS_EMB_DIM = FEAT_DIM + CAT_DIM + SUBCAT_DIM + PRE_REP_D + ENT_HID + GAT_OUT  # 96

KOUT_USED = FEAT_DIM + PRE_REP_D + ENT_HID + GAT_OUT   # 80  (kernel-computed pieces)
KOUT_LANES = 128                                        # pad to 128 -> unmasked store
SLAB_LANES = 128

# ----------------------- static weight-slab layout -----------------------
_W_SHAPES = {
    'wq': (WORD_DIM, FEAT_DIM), 'wk': (WORD_DIM, FEAT_DIM), 'wv': (WORD_DIM, FEAT_DIM),
    'att_W': (FEAT_DIM, ATT_DIM), 'att_b': (1, ATT_DIM), 'att_q': (1, ATT_DIM),
    'd1_w': (PRE_EMB_D, PRE_HID), 'd1_b': (1, PRE_HID),
    'd2_w': (PRE_HID, PRE_REP_D), 'd2_b': (1, PRE_REP_D),
    'q1_w': (PRE_EMB_D, PRE_HID), 'q1_b': (1, PRE_HID),
    'q2_w': (PRE_HID, PRE_REP_D), 'q2_b': (1, PRE_REP_D),
    'hw': (PRE_REP_D, ENT_ATT_HEADS * ENT_DIM), 'hb': (1, ENT_ATT_HEADS * ENT_DIM),
    'eq_wa': (ENT_DIM, ENT_ATT_DIM), 'eq_wb': (ENT_DIM, ENT_ATT_DIM),
    'eq_wc': (ENT_DIM, ENT_ATT_DIM),
    'eq_b': (1, ENT_ATT_DIM), 'eq_v': (1, ENT_ATT_DIM),
    'd3_w': (ENT_ATT_HEADS * ENT_DIM, 2 * ENT_HID), 'd3_b': (1, 2 * ENT_HID),
    'd4_w': (2 * ENT_HID, ENT_HID), 'd4_b': (1, ENT_HID),
    'mlp_w': (GAT_OUT, GAT_OUT), 'mlp_b': (1, GAT_OUT),
    # static block-diagonal constants for the head-fused title attention
    'mask_bd': (HEAD_NUM * MAX_TITLE, FEAT_DIM),                 # (64, 32)
    'ones_bd': (HEAD_NUM * MAX_TITLE, HEAD_NUM * MAX_TITLE),     # (64, 64)
}


def _round8(x):
    return (x + 7) // 8 * 8


_W_OFF = {}
_off = 0
for _name, (_r, _c) in _W_SHAPES.items():
    _W_OFF[_name] = _off            # 8-aligned sublane offset -> clean tiled loads
    _off += _round8(_r)
SLAB_ROWS = _round8(_off)


def pack_weight_slab(p):
    """Pack all encoder weights/biases + static constants into ONE lane-dense f32 slab.
    Runs ONCE at init (outside the jitted forward)."""
    entries = {
        'wq': p['wq'], 'wk': p['wk'], 'wv': p['wv'],
        'att_W': p['att_W'], 'att_b': p['att_b'], 'att_q': p['att_q'],
        'd1_w': p['d1_w'], 'd1_b': p['d1_b'], 'd2_w': p['d2_w'], 'd2_b': p['d2_b'],
        'q1_w': p['q1_w'], 'q1_b': p['q1_b'], 'q2_w': p['q2_w'], 'q2_b': p['q2_b'],
        'hw': jnp.concatenate([p['h1_w'], p['h2_w'], p['h3_w']], axis=1),
        'hb': jnp.concatenate([p['h1_b'], p['h2_b'], p['h3_b']], axis=1),
        'eq_wa': p['eq_w'][0:ENT_DIM],
        'eq_wb': p['eq_w'][ENT_DIM:2 * ENT_DIM],
        'eq_wc': p['eq_w'][2 * ENT_DIM:3 * ENT_DIM],
        'eq_b': p['eq_b'], 'eq_v': p['eq_v'],
        'd3_w': p['d3_w'], 'd3_b': p['d3_b'], 'd4_w': p['d4_w'], 'd4_b': p['d4_b'],
        'mlp_w': p['mlp_w'], 'mlp_b': p['mlp_b'],
        'mask_bd': jnp.asarray(np.kron(np.eye(HEAD_NUM, dtype=np.float32),
                                       np.ones((MAX_TITLE, HEAD_DIM), np.float32))),
        'ones_bd': jnp.asarray(np.kron(np.eye(HEAD_NUM, dtype=np.float32),
                                       np.ones((MAX_TITLE, MAX_TITLE), np.float32))),
    }
    slab = jnp.zeros((SLAB_ROWS, SLAB_LANES), jnp.float32)
    for name, arr in entries.items():
        r, c = _W_SHAPES[name]
        assert arr.shape == (r, c), (name, arr.shape)
        slab = slab.at[_W_OFF[name]:_W_OFF[name] + r, 0:c].set(arr.astype(jnp.float32))
    return slab


def _w(slab_ref, name):
    """Static (8-aligned row, lane-0) slice of the packed weight slab."""
    r, c = _W_SHAPES[name]
    off = _W_OFF[name]
    return slab_ref[off:off + r, 0:c]


# =====================================================================
# Fused news-encoder kernel: one invocation for all BN news.
# =====================================================================
def fused_news_kernel(w_ref, tmask_ref, pe_ref, eemb_ref, emask_ref, pooled_ref,
                      slab_ref, out_ref):
    f32 = jnp.float32

    def dense_relu(x, wname, bname):
        return jnp.maximum(
            jnp.dot(x, _w(slab_ref, wname), preferred_element_type=f32)
            + _w(slab_ref, bname), 0.0)

    # ---------------- title branch: block-diagonal multi-head self-attention ----------------
    w2 = w_ref[...]                                       # (BN*L, D)
    tneg = (tmask_ref[...] - 1.0) * 1e9                   # (BN, L): 0 valid, -1e9 pad
    mask_bd = _w(slab_ref, 'mask_bd')                     # (H*L, D)  block-diag head mask
    ones_bd = _w(slab_ref, 'ones_bd')                     # (H*L, H*L) block-ones (segment sums)

    # Q/K/V: three matmuls against pre-split weights (no lane-offset slices of fused QKV)
    q3 = jnp.dot(w2, _w(slab_ref, 'wq'), preferred_element_type=f32).reshape(BN, MAX_TITLE, FEAT_DIM)
    k3 = jnp.dot(w2, _w(slab_ref, 'wk'), preferred_element_type=f32).reshape(BN, MAX_TITLE, FEAT_DIM)
    v3 = jnp.dot(w2, _w(slab_ref, 'wv'), preferred_element_type=f32).reshape(BN, MAX_TITLE, FEAT_DIM)

    # block-diagonal packed K / V -> lane-dense per-head scores in one batched matmul
    k_bd = jnp.concatenate([k3] * HEAD_NUM, axis=1) * mask_bd    # (BN, H*L, D)
    v_bd = jnp.concatenate([v3] * HEAD_NUM, axis=1) * mask_bd    # (BN, H*L, D)
    scale = 1.0 / (HEAD_DIM ** 0.5)
    s_all = jnp.einsum('bld,bmd->blm', q3, k_bd,
                       preferred_element_type=f32) * scale        # (BN, L, H*L)
    s_all = s_all + jnp.concatenate([tneg] * HEAD_NUM, axis=1)[:, None, :]

    # per-head (16-lane segment) softmax; subtracting the row-global max is exact by
    # shift-invariance, segment sums come from one block-ones matmul.
    s2 = s_all.reshape(BN * MAX_TITLE, HEAD_NUM * MAX_TITLE)
    s2 = s2 - jnp.max(s2, axis=-1, keepdims=True)
    p2 = jnp.exp(s2)
    seg_sum = jnp.dot(p2, ones_bd, preferred_element_type=f32)    # per-segment sums, broadcast
    p2 = p2 * pl.reciprocal(seg_sum, approx=True)
    p_all = p2.reshape(BN, MAX_TITLE, HEAD_NUM * MAX_TITLE)

    # head outputs land directly at their feature offsets -> no concat(heads)
    c = jnp.einsum('blm,bmd->bld', p_all, v_bd, preferred_element_type=f32)  # (BN, L, FEAT)

    # additive attention pooling over title tokens (weighted sum on the MXU)
    c2 = c.reshape(BN * MAX_TITLE, FEAT_DIM)
    e2 = jnp.tanh(jnp.dot(c2, _w(slab_ref, 'att_W'), preferred_element_type=f32)
                  + _w(slab_ref, 'att_b'))
    e3 = e2.reshape(BN, MAX_TITLE, ATT_DIM)
    attq = _w(slab_ref, 'att_q').reshape(1, 1, ATT_DIM)
    logits = jnp.sum(e3 * attq, axis=-1) + tneg                   # (BN, L)
    logits = logits - jnp.max(logits, axis=-1, keepdims=True)
    a = jnp.exp(logits)
    a = a * pl.reciprocal(jnp.sum(a, axis=-1, keepdims=True), approx=True)
    news_rep = jnp.einsum('bil,bld->bid', a[:, None, :], c,
                          preferred_element_type=f32).reshape(BN, FEAT_DIM)

    # ---------------- pretrain / query branch (all on-chip) ----------------
    pe = pe_ref[...]                                              # (BN, P)
    nrm = jnp.sqrt(jnp.sum(pe * pe, axis=-1, keepdims=True))
    llm = pe / jnp.maximum(nrm, 1e-12)                            # F.normalize(dim=-1)
    prep = dense_relu(dense_relu(llm, 'd1_w', 'd1_b'), 'd2_w', 'd2_b')   # pretrain rep
    qq = dense_relu(dense_relu(llm, 'q1_w', 'q1_b'), 'q2_w', 'q2_b')     # llm_query
    qheads = dense_relu(qq, 'hw', 'hb')                           # denseHead1/2/3 fused (BN, 3*De)

    # ---------------- linked-entity branch: 3 query heads fused on the sublane axis -------
    # head-major stacking: row r = h*BN + b
    q_stack = jnp.concatenate(
        [qheads[:, i * ENT_DIM:(i + 1) * ENT_DIM] for i in range(ENT_ATT_HEADS)], axis=0)  # (3BN, De)
    emb2 = eemb_ref[...]                                          # (BN*Le, De)
    emb3 = emb2.reshape(BN, MAX_ENT, ENT_DIM)
    eneg = (emask_ref[...] - 1.0) * 1e9                           # (BN, Le)
    base_a = jnp.dot(emb2, _w(slab_ref, 'eq_wa'),
                     preferred_element_type=f32).reshape(BN, MAX_ENT, ENT_ATT_DIM)

    emb_rep = jnp.concatenate([emb3] * ENT_ATT_HEADS, axis=0)     # (3BN, Le, De)
    base_rep = jnp.concatenate([base_a] * ENT_ATT_HEADS, axis=0)  # (3BN, Le, A)
    eneg_rep = jnp.concatenate([eneg] * ENT_ATT_HEADS, axis=0)    # (3BN, Le)

    term_b = jnp.dot(q_stack, _w(slab_ref, 'eq_wb'),
                     preferred_element_type=f32) + _w(slab_ref, 'eq_b')   # (3BN, A)
    prod = emb_rep * q_stack[:, None, :]                                   # (3BN, Le, De)
    term_c = jnp.dot(prod.reshape(ENT_ATT_HEADS * BN * MAX_ENT, ENT_DIM),
                     _w(slab_ref, 'eq_wc'),
                     preferred_element_type=f32).reshape(ENT_ATT_HEADS * BN, MAX_ENT, ENT_ATT_DIM)
    eatt = jnp.tanh(base_rep + term_b[:, None, :] + term_c)       # (3BN, Le, A)
    eqv = _w(slab_ref, 'eq_v').reshape(1, 1, ENT_ATT_DIM)
    lg = jnp.sum(eatt * eqv, axis=-1) + eneg_rep                  # (3BN, Le)
    lg = lg - jnp.max(lg, axis=-1, keepdims=True)
    ae = jnp.exp(lg)
    ae = ae * pl.reciprocal(jnp.sum(ae, axis=-1, keepdims=True), approx=True)
    rep_stack = jnp.einsum('bil,bld->bid', ae[:, None, :], emb_rep,
                           preferred_element_type=f32).reshape(ENT_ATT_HEADS * BN, ENT_DIM)
    rep = jnp.concatenate(
        [rep_stack[i * BN:(i + 1) * BN] for i in range(ENT_ATT_HEADS)], axis=1)  # (BN, 3*De)
    rnrm = jnp.sqrt(jnp.sum(rep * rep, axis=-1, keepdims=True))
    rep = rep / jnp.maximum(rnrm, 1e-12)                          # F.normalize(dim=2)
    ent_rep = dense_relu(dense_relu(rep, 'd3_w', 'd3_b'), 'd4_w', 'd4_b')

    # ---------------- gat_mlp head (GAT itself runs in plain JAX) ----------------
    gat_rep = dense_relu(pooled_ref[...], 'mlp_w', 'mlp_b')       # (BN, GAT_OUT)

    # ---------------- single lane-dense 128-wide output store ----------------
    pad = jnp.zeros((BN, KOUT_LANES - KOUT_USED), f32)
    out_ref[...] = jnp.concatenate([news_rep, prep, ent_rep, gat_rep, pad], axis=-1)


def fused_news_encoder(w2, tmask, pe, eemb2, emask, pooled, weight_slab):
    # TODO(synk): at production BN, add grid=(BN//TILE,) with
    #             dimension_semantics=("parallel",) (uses v7x's 2nd TensorCore), re-derive
    #             the tile / vmem_limit for v7x's 64 MiB VMEM, and cast MXU operands to
    #             bf16 on v6e/v7x (keep softmax/tanh f32 for v5e).
    return pl.pallas_call(
        fused_news_kernel,
        out_shape=jax.ShapeDtypeStruct((BN, KOUT_LANES), jnp.float32),
        compiler_params=pltpu.CompilerParams(vmem_limit_bytes=32 * 1024 * 1024),
    )(w2, tmask, pe, eemb2, emask, pooled, weight_slab)


# =====================================================================
# GAT (plain JAX glue): dense-adjacency 2-layer graph attention.
# TODO(synk): torch_geometric GAT (edge scatter/gather, edge_attr) has no clean
#             Pallas equivalent; approximated with dense-adjacency attention in JAX.
# =====================================================================
def gat_forward(x, adj, gp):
    n = x.shape[0]
    h = (x @ gp['gat_W1']).reshape(n, GAT_HEADS, GAT_HID)
    a_src = jnp.sum(h * gp['gat_a1s'][None], axis=-1)
    a_dst = jnp.sum(h * gp['gat_a1d'][None], axis=-1)
    e = jax.nn.leaky_relu(a_dst[:, None, :] + a_src[None, :, :], 0.2)
    e = jnp.where(adj[:, :, None], e, -1e9)
    alpha = jax.nn.softmax(e, axis=1)
    out1 = jnp.einsum('ijh,jhd->ihd', alpha, h).reshape(n, GAT_HEADS * GAT_HID)
    out1 = jax.nn.relu(out1)
    h2 = out1 @ gp['gat_W2']
    e2 = jax.nn.leaky_relu((h2 @ gp['gat_a2d'])[:, None] + (h2 @ gp['gat_a2s'])[None, :], 0.2)
    e2 = jnp.where(adj, e2, -1e9)
    alpha2 = jax.nn.softmax(e2, axis=1)
    return alpha2 @ h2


# =====================================================================
# Parameters (deterministic synthetic init — no checkpoint loading).
# =====================================================================
def init_params(key):
    ks = list(jax.random.split(key, 40))
    it = iter(ks)
    nk = lambda: next(it)
    s = 0.1
    p = {}
    p['word_emb'] = jax.random.normal(nk(), (VOCAB, WORD_DIM)) * s
    p['cat_emb'] = jax.random.uniform(nk(), (CAT_NUM, CAT_DIM), minval=-0.1, maxval=0.1)
    sub = jax.random.uniform(nk(), (SUBCAT_NUM, SUBCAT_DIM), minval=-0.1, maxval=0.1)
    p['subcat_emb'] = sub.at[0].set(0.0)
    p['wq'] = jax.random.normal(nk(), (WORD_DIM, FEAT_DIM)) * s
    p['wk'] = jax.random.normal(nk(), (WORD_DIM, FEAT_DIM)) * s
    p['wv'] = jax.random.normal(nk(), (WORD_DIM, FEAT_DIM)) * s
    p['att_W'] = jax.random.normal(nk(), (FEAT_DIM, ATT_DIM)) * s
    p['att_b'] = jnp.zeros((1, ATT_DIM), jnp.float32)
    p['att_q'] = jax.random.normal(nk(), (1, ATT_DIM)) * s
    p['d1_w'] = jax.random.normal(nk(), (PRE_EMB_D, PRE_HID)) * s
    p['d1_b'] = jnp.zeros((1, PRE_HID), jnp.float32)
    p['d2_w'] = jax.random.normal(nk(), (PRE_HID, PRE_REP_D)) * s
    p['d2_b'] = jnp.zeros((1, PRE_REP_D), jnp.float32)
    p['q1_w'] = jax.random.normal(nk(), (PRE_EMB_D, PRE_HID)) * s
    p['q1_b'] = jnp.zeros((1, PRE_HID), jnp.float32)
    p['q2_w'] = jax.random.normal(nk(), (PRE_HID, PRE_REP_D)) * s
    p['q2_b'] = jnp.zeros((1, PRE_REP_D), jnp.float32)
    for i in (1, 2, 3):
        p[f'h{i}_w'] = jax.random.normal(nk(), (PRE_REP_D, ENT_DIM)) * s
        p[f'h{i}_b'] = jnp.zeros((1, ENT_DIM), jnp.float32)
    p['eq_w'] = jax.random.normal(nk(), (3 * ENT_DIM, ENT_ATT_DIM)) * s
    p['eq_b'] = jnp.zeros((1, ENT_ATT_DIM), jnp.float32)
    p['eq_v'] = jax.random.normal(nk(), (1, ENT_ATT_DIM)) * s
    p['d3_w'] = jax.random.normal(nk(), (ENT_DIM * ENT_ATT_HEADS, 2 * ENT_HID)) * s
    p['d3_b'] = jnp.zeros((1, 2 * ENT_HID), jnp.float32)
    p['d4_w'] = jax.random.normal(nk(), (2 * ENT_HID, ENT_HID)) * s
    p['d4_b'] = jnp.zeros((1, ENT_HID), jnp.float32)
    p['gat_W1'] = jax.random.normal(nk(), (GAT_IN, GAT_HEADS * GAT_HID)) * s
    p['gat_a1s'] = jax.random.normal(nk(), (GAT_HEADS, GAT_HID)) * s
    p['gat_a1d'] = jax.random.normal(nk(), (GAT_HEADS, GAT_HID)) * s
    p['gat_W2'] = jax.random.normal(nk(), (GAT_HEADS * GAT_HID, GAT_OUT)) * s
    p['gat_a2s'] = jax.random.normal(nk(), (GAT_OUT,)) * s
    p['gat_a2d'] = jax.random.normal(nk(), (GAT_OUT,)) * s
    p['mlp_w'] = jax.random.normal(nk(), (GAT_OUT, GAT_OUT)) * s
    p['mlp_b'] = jnp.zeros((1, GAT_OUT), jnp.float32)
    return p


# =====================================================================
# Full MHSA forward (dropouts = identity in eval mode).
# Note: masked softmax uses (mask-1)*1e9; fully-padded rows would yield a uniform
#       distribution — synthetic data guarantees >=4 title tokens / >=1 entity.
# =====================================================================
def mhsa_forward(p, weight_slab, title_text, title_mask, category, subCategory,
                 pretrain_emb, linked_ent_emb, linked_ent_mask,
                 graph_x, graph_adj, graph_batch_idx):
    # plain-JAX gathers / graph pooling around the kernel
    w2 = p['word_emb'][title_text].reshape(BN * MAX_TITLE, WORD_DIM)
    tmask = title_mask.reshape(BN, MAX_TITLE).astype(jnp.float32)
    pe = pretrain_emb.reshape(BN, PRE_EMB_D)
    eemb2 = linked_ent_emb.reshape(BN * MAX_ENT, ENT_DIM)
    emask = linked_ent_mask.reshape(BN, MAX_ENT).astype(jnp.float32)
    cat_rep = p['cat_emb'][category].reshape(BN, CAT_DIM)
    subcat_rep = p['subcat_emb'][subCategory].reshape(BN, SUBCAT_DIM)

    node_emb = gat_forward(graph_x, graph_adj, p)
    onehot = (graph_batch_idx[:, None] == jnp.arange(BN)[None, :]).astype(jnp.float32)
    counts = jnp.maximum(onehot.sum(axis=0), 1.0)
    pooled = (onehot.T @ node_emb) / counts[:, None]               # global_mean_pool

    k = fused_news_encoder(w2, tmask, pe, eemb2, emask, pooled, weight_slab)
    news_rep = k[:, 0:FEAT_DIM]
    prep = k[:, FEAT_DIM:FEAT_DIM + PRE_REP_D]
    ent_rep = k[:, FEAT_DIM + PRE_REP_D:FEAT_DIM + PRE_REP_D + ENT_HID]
    gat_rep = k[:, FEAT_DIM + PRE_REP_D + ENT_HID:KOUT_USED]
    # feature_fusion order: [news, category, subCategory, pretrain, entity, gat]
    fused = jnp.concatenate([news_rep, cat_rep, subcat_rep, prep, ent_rep, gat_rep], axis=-1)
    return fused.reshape(B, N_NEWS, NEWS_EMB_DIM)


# =====================================================================
if __name__ == "__main__":
    key = jax.random.PRNGKey(0)
    kp, k1, k2, k3, k4, k5, k6, k7 = jax.random.split(key, 8)
    params = init_params(kp)
    weight_slab = pack_weight_slab(params)          # packed ONCE, outside the jitted forward

    title_text = jax.random.randint(k1, (B, N_NEWS, MAX_TITLE), 0, VOCAB)
    title_lens = jax.random.randint(k2, (B, N_NEWS), 4, MAX_TITLE + 1)
    title_mask = (jnp.arange(MAX_TITLE)[None, None, :] < title_lens[:, :, None]).astype(jnp.float32)

    category = jax.random.randint(k3, (B, N_NEWS), 0, CAT_NUM)
    subCategory = jax.random.randint(k3, (B, N_NEWS), 0, SUBCAT_NUM)
    pretrain_emb = jax.random.normal(k4, (B, N_NEWS, PRE_EMB_D), jnp.float32)

    linked_ent_emb = jax.random.normal(k5, (B, N_NEWS, MAX_ENT, ENT_DIM), jnp.float32)
    ent_lens = jax.random.randint(k6, (B, N_NEWS), 1, MAX_ENT + 1)
    linked_ent_mask = (jnp.arange(MAX_ENT)[None, None, :] < ent_lens[:, :, None]).astype(jnp.float32)

    n_nodes = BN * NODES_PER_GRAPH
    graph_x = jax.random.normal(k7, (n_nodes, GAT_IN), jnp.float32)
    graph_batch_idx = jnp.repeat(jnp.arange(BN), NODES_PER_GRAPH)
    graph_adj = graph_batch_idx[:, None] == graph_batch_idx[None, :]  # fully connected per-graph
    # news_subgraph_entity_mask is computed-but-unused in the reference forward; omitted.

    out = jax.jit(mhsa_forward)(params, weight_slab, title_text, title_mask, category,
                                subCategory, pretrain_emb, linked_ent_emb, linked_ent_mask,
                                graph_x, graph_adj, graph_batch_idx)
    out = jax.block_until_ready(out)
    assert out.shape == (B, N_NEWS, NEWS_EMB_DIM), out.shape
    assert bool(jnp.all(jnp.isfinite(out)))
    print("KERNEL_OK")
</pallas_src>

<mosaic_0001>
module attributes {stable_mosaic.version = 11 : i64} {
  func.func @fused_news_kernel(%arg0: memref<96x32xf32, #tpu.memory_space<vmem>>, %arg1: memref<6x16xf32, #tpu.memory_space<vmem>>, %arg2: memref<6x32xf32, #tpu.memory_space<vmem>>, %arg3: memref<48x16xf32, #tpu.memory_space<vmem>>, %arg4: memref<6x8xf32, #tpu.memory_space<vmem>>, %arg5: memref<6x16xf32, #tpu.memory_space<vmem>>, %arg6: memref<640x128xf32, #tpu.memory_space<vmem>>, %arg7: memref<6x128xf32, #tpu.memory_space<vmem>>) attributes {dimension_semantics = [], scalar_prefetch = 0 : i64, scratch_operands = 0 : i64, tpu.core_type = #tpu.core_type<tc>} {
    %c0 = arith.constant 0 : index
    %c0_0 = arith.constant 0 : index
    %0 = vector.load %arg0[%c0, %c0_0] : memref<96x32xf32, #tpu.memory_space<vmem>>, vector<96x32xf32>
    %c0_1 = arith.constant 0 : index
    %c0_2 = arith.constant 0 : index
    %1 = vector.load %arg1[%c0_1, %c0_2] : memref<6x16xf32, #tpu.memory_space<vmem>>, vector<6x16xf32>
    %cst = arith.constant 1.000000e+00 : f32
    %2 = vector.broadcast %cst : f32 to vector<6x16xf32>
    %3 = arith.subf %1, %2 : vector<6x16xf32>
    %cst_3 = arith.constant 1.000000e+09 : f32
    %4 = vector.broadcast %cst_3 : f32 to vector<6x16xf32>
    %5 = arith.mulf %3, %4 : vector<6x16xf32>
    %c512 = arith.constant 512 : index
    %c0_4 = arith.constant 0 : index
    %6 = vector.load %arg6[%c512, %c0_4] : memref<640x128xf32, #tpu.memory_space<vmem>>, vector<64x32xf32>
    %c576 = arith.constant 576 : index
    %c0_5 = arith.constant 0 : index
    %7 = vector.load %arg6[%c576, %c0_5] : memref<640x128xf32, #tpu.memory_space<vmem>>, vector<64x64xf32>
    %c0_6 = arith.constant 0 : index
    %c0_7 = arith.constant 0 : index
    %8 = vector.load %arg6[%c0_6, %c0_7] : memref<640x128xf32, #tpu.memory_space<vmem>>, vector<32x32xf32>
    %cst_8 = arith.constant dense<0.000000e+00> : vector<96x32xf32>
    %9 = tpu.matmul %0, %8, %cst_8 {dimension_numbers = #tpu.dot_dimension_numbers<[1], [0], [0], [1], [0, 0, 1, 1], [], []>} : vector<96x32xf32>, vector<32x32xf32>, vector<96x32xf32> -> vector<96x32xf32>
    %10 = vector.shape_cast %9 : vector<96x32xf32> to vector<6x16x32xf32>
    %c32 = arith.constant 32 : index
    %c0_9 = arith.constant 0 : index
    %11 = vector.load %arg6[%c32, %c0_9] : memref<640x128xf32, #tpu.memory_space<vmem>>, vector<32x32xf32>
    %cst_10 = arith.constant dense<0.000000e+00> : vector<96x32xf32>
    %12 = tpu.matmul %0, %11, %cst_10 {dimension_numbers = #tpu.dot_dimension_numbers<[1], [0], [0], [1], [0, 0, 1, 1], [], []>} : vector<96x32xf32>, vector<32x32xf32>, vector<96x32xf32> -> vector<96x32xf32>
    %13 = vector.shape_cast %12 : vector<96x32xf32> to vector<6x16x32xf32>
    %c64 = arith.constant 64 : index
    %c0_11 = arith.constant 0 : index
    %14 = vector.load %arg6[%c64, %c0_11] : memref<640x128xf32, #tpu.memory_space<vmem>>, vector<32x32xf32>
    %cst_12 = arith.constant dense<0.000000e+00> : vector<96x32xf32>
    %15 = tpu.matmul %0, %14, %cst_12 {dimension_numbers = #tpu.dot_dimension_numbers<[1], [0], [0], [1], [0, 0, 1, 1], [], []>} : vector<96x32xf32>, vector<32x32xf32>, vector<96x32xf32> -> vector<96x32xf32>
    %16 = vector.shape_cast %15 : vector<96x32xf32> to vector<6x16x32xf32>
    %17 = tpu.concatenate %13, %13, %13, %13 in 1 : vector<6x16x32xf32>, vector<6x16x32xf32>, vector<6x16x32xf32>, vector<6x16x32xf32> -> vector<6x64x32xf32>
    %18 = vector.shape_cast %6 : vector<64x32xf32> to vector<1x64x32xf32>
    %19 = vector.broadcast %18 : vector<1x64x32xf32> to vector<6x64x32xf32>
    %20 = arith.mulf %17, %19 : vector<6x64x32xf32>
    %21 = tpu.concatenate %16, %16, %16, %16 in 1 : vector<6x16x32xf32>, vector<6x16x32xf32>, vector<6x16x32xf32>, vector<6x16x32xf32> -> vector<6x64x32xf32>
    %22 = vector.shape_cast %6 : vector<64x32xf32> to vector<1x64x32xf32>
    %23 = vector.broadcast %22 : vector<1x64x32xf32> to vector<6x64x32xf32>
    %24 = arith.mulf %21, %23 : vector<6x64x32xf32>
    "tpu.trace_start"() <{level = 10 : i32, message = "bld,bmd->blm"}> : () -> ()
    %cst_13 = arith.constant dense<0.000000e+00> : vector<6x16x64xf32>
    %25 = tpu.matmul %10, %20, %cst_13 {dimension_numbers = #tpu.dot_dimension_numbers<[2], [2], [1], [1], [0, 0, 0, 1, 1, 1], [0], [0]>} : vector<6x16x32xf32>, vector<6x64x32xf32>, vector<6x16x64xf32> -> vector<6x16x64xf32>
    "tpu.trace_stop"() : () -> ()
    %cst_14 = arith.constant 0.353553385 : f32
    %26 = vector.broadcast %cst_14 : f32 to vector<6x16x64xf32>
    %27 = arith.mulf %25, %26 : vector<6x16x64xf32>
    %28 = tpu.concatenate %5, %5, %5, %5 in 1 : vector<6x16xf32>, vector<6x16xf32>, vector<6x16xf32>, vector<6x16xf32> -> vector<6x64xf32>
    %29 = vector.shape_cast %28 : vector<6x64xf32> to vector<6x1x64xf32>
    %30 = vector.broadcast %29 : vector<6x1x64xf32> to vector<6x16x64xf32>
    %31 = arith.addf %27, %30 : vector<6x16x64xf32>
    %32 = vector.shape_cast %31 : vector<6x16x64xf32> to vector<96x64xf32>
    %cst_15 = arith.constant dense<0xFF800000> : vector<96xf32>
    %33 = vector.multi_reduction <maximumf>, %32, %cst_15 [1] : vector<96x64xf32> to vector<96xf32>
    %34 = vector.shape_cast %33 : vector<96xf32> to vector<96x1xf32>
    %35 = vector.broadcast %34 : vector<96x1xf32> to vector<96x64xf32>
    %36 = arith.subf %32, %35 : vector<96x64xf32>
    %37 = math.exp %36 : vector<96x64xf32>
    %cst_16 = arith.constant dense<0.000000e+00> : vector<96x64xf32>
    %38 = tpu.matmul %37, %7, %cst_16 {dimension_numbers = #tpu.dot_dimension_numbers<[1], [0], [0], [1], [0, 0, 1, 1], [], []>} : vector<96x64xf32>, vector<64x64xf32>, vector<96x64xf32> -> vector<96x64xf32>
    %39 = tpu.reciprocal %38 {approx = true} : vector<96x64xf32> -> vector<96x64xf32>
    %40 = arith.mulf %37, %39 : vector<96x64xf32>
    %41 = vector.shape_cast %40 : vector<96x64xf32> to vector<6x16x64xf32>
    "tpu.trace_start"() <{level = 10 : i32, message = "blm,bmd->bld"}> : () -> ()
    %cst_17 = arith.constant dense<0.000000e+00> : vector<6x16x32xf32>
    %42 = tpu.matmul %41, %24, %cst_17 {dimension_numbers = #tpu.dot_dimension_numbers<[2], [1], [1], [2], [0, 0, 0, 1, 1, 2], [0], [0]>} : vector<6x16x64xf32>, vector<6x64x32xf32>, vector<6x16x32xf32> -> vector<6x16x32xf32>
    "tpu.trace_stop"() : () -> ()
    %43 = vector.shape_cast %42 : vector<6x16x32xf32> to vector<96x32xf32>
    %c96 = arith.constant 96 : index
    %c0_18 = arith.constant 0 : index
    %44 = vector.load %arg6[%c96, %c0_18] : memref<640x128xf32, #tpu.memory_space<vmem>>, vector<32x16xf32>
    %cst_19 = arith.constant dense<0.000000e+00> : vector<96x16xf32>
    %45 = tpu.matmul %43, %44, %cst_19 {dimension_numbers = #tpu.dot_dimension_numbers<[1], [0], [0], [1], [0, 0, 1, 1], [], []>} : vector<96x32xf32>, vector<32x16xf32>, vector<96x16xf32> -> vector<96x16xf32>
    %c128 = arith.constant 128 : index
    %c0_20 = arith.constant 0 : index
    %46 = vector.load %arg6[%c128, %c0_20] : memref<640x128xf32, #tpu.memory_space<vmem>>, vector<1x16xf32>
    %47 = vector.broadcast %46 : vector<1x16xf32> to vector<96x16xf32>
    %48 = arith.addf %45, %47 : vector<96x16xf32>
    %49 = math.tanh %48 : vector<96x16xf32>
    %50 = vector.shape_cast %49 : vector<96x16xf32> to vector<6x16x16xf32>
    %c136 = arith.constant 136 : index
    %c0_21 = arith.constant 0 : index
    %51 = vector.load %arg6[%c136, %c0_21] : memref<640x128xf32, #tpu.memory_space<vmem>>, vector<1x16xf32>
    %52 = vector.shape_cast %51 : vector<1x16xf32> to vector<1x1x16xf32>
    %53 = vector.broadcast %52 : vector<1x1x16xf32> to vector<6x16x16xf32>
    %54 = arith.mulf %50, %53 : vector<6x16x16xf32>
    %cst_22 = arith.constant dense<0.000000e+00> : vector<6x16xf32>
    %55 = vector.multi_reduction <add>, %54, %cst_22 [2] : vector<6x16x16xf32> to vector<6x16xf32>
    %56 = arith.addf %55, %5 : vector<6x16xf32>
    %cst_23 = arith.constant dense<0xFF800000> : vector<6xf32>
    %57 = vector.multi_reduction <maximumf>, %56, %cst_23 [1] : vector<6x16xf32> to vector<6xf32>
    %58 = vector.shape_cast %57 : vector<6xf32> to vector<6x1xf32>
    %59 = vector.broadcast %58 : vector<6x1xf32> to vector<6x16xf32>
    %60 = arith.subf %56, %59 : vector<6x16xf32>
    %61 = math.exp %60 : vector<6x16xf32>
    %cst_24 = arith.constant dense<0.000000e+00> : vector<6xf32>
    %62 = vector.multi_reduction <add>, %61, %cst_24 [1] : vector<6x16xf32> to vector<6xf32>
    %63 = vector.shape_cast %62 : vector<6xf32> to vector<6x1xf32>
    %64 = tpu.reciprocal %63 {approx = true} : vector<6x1xf32> -> vector<6x1xf32>
    %65 = vector.broadcast %64 : vector<6x1xf32> to vector<6x16xf32>
    %66 = arith.mulf %61, %65 : vector<6x16xf32>
    %67 = vector.shape_cast %66 : vector<6x16xf32> to vector<6x1x16xf32>
    "tpu.trace_start"() <{level = 10 : i32, message = "bil,bld->bid"}> : () -> ()
    %cst_25 = arith.constant dense<0.000000e+00> : vector<6x1x32xf32>
    %68 = tpu.matmul %67, %42, %cst_25 {dimension_numbers = #tpu.dot_dimension_numbers<[2], [1], [1], [2], [0, 0, 0, 1, 1, 2], [0], [0]>} : vector<6x1x16xf32>, vector<6x16x32xf32>, vector<6x1x32xf32> -> vector<6x1x32xf32>
    "tpu.trace_stop"() : () -> ()
    %69 = vector.shape_cast %68 : vector<6x1x32xf32> to vector<6x32xf32>
    %c0_26 = arith.constant 0 : index
    %c0_27 = arith.constant 0 : index
    %70 = vector.load %arg2[%c0_26, %c0_27] : memref<6x32xf32, #tpu.memory_space<vmem>>, vector<6x32xf32>
    %71 = arith.mulf %70, %70 : vector<6x32xf32>
    %cst_28 = arith.constant dense<0.000000e+00> : vector<6xf32>
    %72 = vector.multi_reduction <add>, %71, %cst_28 [1] : vector<6x32xf32> to vector<6xf32>
    %73 = vector.shape_cast %72 : vector<6xf32> to vector<6x1xf32>
    %74 = math.sqrt %73 : vector<6x1xf32>
    %cst_29 = arith.constant 9.99999996E-13 : f32
    %75 = vector.broadcast %cst_29 : f32 to vector<6x1xf32>
    %76 = arith.maximumf %74, %75 : vector<6x1xf32>
    %77 = vector.broadcast %76 : vector<6x1xf32> to vector<6x32xf32>
    %78 = arith.divf %70, %77 : vector<6x32xf32>
    %c144 = arith.constant 144 : index
    %c0_30 = arith.constant 0 : index
    %79 = vector.load %arg6[%c144, %c0_30] : memref<640x128xf32, #tpu.memory_space<vmem>>, vector<32x32xf32>
    %cst_31 = arith.constant dense<0.000000e+00> : vector<6x32xf32>
    %80 = tpu.matmul %78, %79, %cst_31 {dimension_numbers = #tpu.dot_dimension_numbers<[1], [0], [0], [1], [0, 0, 1, 1], [], []>} : vector<6x32xf32>, vector<32x32xf32>, vector<6x32xf32> -> vector<6x32xf32>
    %c176 = arith.constant 176 : index
    %c0_32 = arith.constant 0 : index
    %81 = vector.load %arg6[%c176, %c0_32] : memref<640x128xf32, #tpu.memory_space<vmem>>, vector<1x32xf32>
    %82 = vector.broadcast %81 : vector<1x32xf32> to vector<6x32xf32>
    %83 = arith.addf %80, %82 : vector<6x32xf32>
    %cst_33 = arith.constant 0.000000e+00 : f32
    %84 = vector.broadcast %cst_33 : f32 to vector<6x32xf32>
    %85 = arith.maximumf %83, %84 : vector<6x32xf32>
    %c184 = arith.constant 184 : index
    %c0_34 = arith.constant 0 : index
    %86 = vector.load %arg6[%c184, %c0_34] : memref<640x128xf32, #tpu.memory_space<vmem>>, vector<32x16xf32>
    %cst_35 = arith.constant dense<0.000000e+00> : vector<6x16xf32>
    %87 = tpu.matmul %85, %86, %cst_35 {dimension_numbers = #tpu.dot_dimension_numbers<[1], [0], [0], [1], [0, 0, 1, 1], [], []>} : vector<6x32xf32>, vector<32x16xf32>, vector<6x16xf32> -> vector<6x16xf32>
    %c216 = arith.constant 216 : index
    %c0_36 = arith.constant 0 : index
    %88 = vector.load %arg6[%c216, %c0_36] : memref<640x128xf32, #tpu.memory_space<vmem>>, vector<1x16xf32>
    %89 = vector.broadcast %88 : vector<1x16xf32> to vector<6x16xf32>
    %90 = arith.addf %87, %89 : vector<6x16xf32>
    %cst_37 = arith.constant 0.000000e+00 : f32
    %91 = vector.broadcast %cst_37 : f32 to vector<6x16xf32>
    %92 = arith.maximumf %90, %91 : vector<6x16xf32>
    %c224 = arith.constant 224 : index
    %c0_38 = arith.constant 0 : index
    %93 = vector.load %arg6[%c224, %c0_38] : memref<640x128xf32, #tpu.memory_space<vmem>>, vector<32x32xf32>
    %cst_39 = arith.constant dense<0.000000e+00> : vector<6x32xf32>
    %94 = tpu.matmul %78, %93, %cst_39 {dimension_numbers = #tpu.dot_dimension_numbers<[1], [0], [0], [1], [0, 0, 1, 1], [], []>} : vector<6x32xf32>, vector<32x32xf32>, vector<6x32xf32> -> vector<6x32xf32>
    %c256 = arith.constant 256 : index
    %c0_40 = arith.constant 0 : index
    %95 = vector.load %arg6[%c256, %c0_40] : memref<640x128xf32, #tpu.memory_space<vmem>>, vector<1x32xf32>
    %96 = vector.broadcast %95 : vector<1x32xf32> to vector<6x32xf32>
    %97 = arith.addf %94, %96 : vector<6x32xf32>
    %cst_41 = arith.constant 0.000000e+00 : f32
    %98 = vector.broadcast %cst_41 : f32 to vector<6x32xf32>
    %99 = arith.maximumf %97, %98 : vector<6x32xf32>
    %c264 = arith.constant 264 : index
    %c0_42 = arith.constant 0 : index
    %100 = vector.load %arg6[%c264, %c0_42] : memref<640x128xf32, #tpu.memory_space<vmem>>, vector<32x16xf32>
    %cst_43 = arith.constant dense<0.000000e+00> : vector<6x16xf32>
    %101 = tpu.matmul %99, %100, %cst_43 {dimension_numbers = #tpu.dot_dimension_numbers<[1], [0], [0], [1], [0, 0, 1, 1], [], []>} : vector<6x32xf32>, vector<32x16xf32>, vector<6x16xf32> -> vector<6x16xf32>
    %c296 = arith.constant 296 : index
    %c0_44 = arith.constant 0 : index
    %102 = vector.load %arg6[%c296, %c0_44] : memref<640x128xf32, #tpu.memory_space<vmem>>, vector<1x16xf32>
    %103 = vector.broadcast %102 : vector<1x16xf32> to vector<6x16xf32>
    %104 = arith.addf %101, %103 : vector<6x16xf32>
    %cst_45 = arith.constant 0.000000e+00 : f32
    %105 = vector.broadcast %cst_45 : f32 to vector<6x16xf32>
    %106 = arith.maximumf %104, %105 : vector<6x16xf32>
    %c304 = arith.constant 304 : index
    %c0_46 = arith.constant 0 : index
    %107 = vector.load %arg6[%c304, %c0_46] : memref<640x128xf32, #tpu.memory_space<vmem>>, vector<16x48xf32>
    %cst_47 = arith.constant dense<0.000000e+00> : vector<6x48xf32>
    %108 = tpu.matmul %106, %107, %cst_47 {dimension_numbers = #tpu.dot_dimension_numbers<[1], [0], [0], [1], [0, 0, 1, 1], [], []>} : vector<6x16xf32>, vector<16x48xf32>, vector<6x48xf32> -> vector<6x48xf32>
    %c320 = arith.constant 320 : index
    %c0_48 = arith.constant 0 : index
    %109 = vector.load %arg6[%c320, %c0_48] : memref<640x128xf32, #tpu.memory_space<vmem>>, vector<1x48xf32>
    %110 = vector.broadcast %109 : vector<1x48xf32> to vector<6x48xf32>
    %111 = arith.addf %108, %110 : vector<6x48xf32>
    %cst_49 = arith.constant 0.000000e+00 : f32
    %112 = vector.broadcast %cst_49 : f32 to vector<6x48xf32>
    %113 = arith.maximumf %111, %112 : vector<6x48xf32>
    %114 = vector.extract_strided_slice %113 {offsets = [0, 0], sizes = [6, 16], strides = [1, 1]} : vector<6x48xf32> to vector<6x16xf32>
    %115 = vector.extract_strided_slice %113 {offsets = [0, 16], sizes = [6, 16], strides = [1, 1]} : vector<6x48xf32> to vector<6x16xf32>
    %116 = vector.extract_strided_slice %113 {offsets = [0, 32], sizes = [6, 16], strides = [1, 1]} : vector<6x48xf32> to vector<6x16xf32>
    %117 = tpu.concatenate %114, %115, %116 in 0 : vector<6x16xf32>, vector<6x16xf32>, vector<6x16xf32> -> vector<18x16xf32>
    %c0_50 = arith.constant 0 : index
    %c0_51 = arith.constant 0 : index
    %118 = vector.load %arg3[%c0_50, %c0_51] : memref<48x16xf32, #tpu.memory_space<vmem>>, vector<48x16xf32>
    %119 = vector.shape_cast %118 : vector<48x16xf32> to vector<6x8x16xf32>
    %c0_52 = arith.constant 0 : index
    %c0_53 = arith.constant 0 : index
    %120 = vector.load %arg4[%c0_52, %c0_53] : memref<6x8xf32, #tpu.memory_space<vmem>>, vector<6x8xf32>
    %cst_54 = arith.constant 1.000000e+00 : f32
    %121 = vector.broadcast %cst_54 : f32 to vector<6x8xf32>
    %122 = arith.subf %120, %121 : vector<6x8xf32>
    %cst_55 = arith.constant 1.000000e+09 : f32
    %123 = vector.broadcast %cst_55 : f32 to vector<6x8xf32>
    %124 = arith.mulf %122, %123 : vector<6x8xf32>
    %c328 = arith.constant 328 : index
    %c0_56 = arith.constant 0 : index
    %125 = vector.load %arg6[%c328, %c0_56] : memref<640x128xf32, #tpu.memory_space<vmem>>, vector<16x16xf32>
    %cst_57 = arith.constant dense<0.000000e+00> : vector<48x16xf32>
    %126 = tpu.matmul %118, %125, %cst_57 {dimension_numbers = #tpu.dot_dimension_numbers<[1], [0], [0], [1], [0, 0, 1, 1], [], []>} : vector<48x16xf32>, vector<16x16xf32>, vector<48x16xf32> -> vector<48x16xf32>
    %127 = vector.shape_cast %126 : vector<48x16xf32> to vector<6x8x16xf32>
    %128 = tpu.concatenate %119, %119, %119 in 0 : vector<6x8x16xf32>, vector<6x8x16xf32>, vector<6x8x16xf32> -> vector<18x8x16xf32>
    %129 = tpu.concatenate %127, %127, %127 in 0 : vector<6x8x16xf32>, vector<6x8x16xf32>, vector<6x8x16xf32> -> vector<18x8x16xf32>
    %130 = tpu.concatenate %124, %124, %124 in 0 : vector<6x8xf32>, vector<6x8xf32>, vector<6x8xf32> -> vector<18x8xf32>
    %c344 = arith.constant 344 : index
    %c0_58 = arith.constant 0 : index
    %131 = vector.load %arg6[%c344, %c0_58] : memref<640x128xf32, #tpu.memory_space<vmem>>, vector<16x16xf32>
    %cst_59 = arith.constant dense<0.000000e+00> : vector<18x16xf32>
    %132 = tpu.matmul %117, %131, %cst_59 {dimension_numbers = #tpu.dot_dimension_numbers<[1], [0], [0], [1], [0, 0, 1, 1], [], []>} : vector<18x16xf32>, vector<16x16xf32>, vector<18x16xf32> -> vector<18x16xf32>
    %c376 = arith.constant 376 : index
    %c0_60 = arith.constant 0 : index
    %133 = vector.load %arg6[%c376, %c0_60] : memref<640x128xf32, #tpu.memory_space<vmem>>, vector<1x16xf32>
    %134 = vector.broadcast %133 : vector<1x16xf32> to vector<18x16xf32>
    %135 = arith.addf %132, %134 : vector<18x16xf32>
    %136 = vector.shape_cast %117 : vector<18x16xf32> to vector<18x1x16xf32>
    %137 = vector.broadcast %136 : vector<18x1x16xf32> to vector<18x8x16xf32>
    %138 = arith.mulf %128, %137 : vector<18x8x16xf32>
    %139 = vector.shape_cast %138 : vector<18x8x16xf32> to vector<144x16xf32>
    %c360 = arith.constant 360 : index
    %c0_61 = arith.constant 0 : index
    %140 = vector.load %arg6[%c360, %c0_61] : memref<640x128xf32, #tpu.memory_space<vmem>>, vector<16x16xf32>
    %cst_62 = arith.constant dense<0.000000e+00> : vector<144x16xf32>
    %141 = tpu.matmul %139, %140, %cst_62 {dimension_numbers = #tpu.dot_dimension_numbers<[1], [0], [0], [1], [0, 0, 1, 1], [], []>} : vector<144x16xf32>, vector<16x16xf32>, vector<144x16xf32> -> vector<144x16xf32>
    %142 = vector.shape_cast %141 : vector<144x16xf32> to vector<18x8x16xf32>
    %143 = vector.shape_cast %135 : vector<18x16xf32> to vector<18x1x16xf32>
    %144 = vector.broadcast %143 : vector<18x1x16xf32> to vector<18x8x16xf32>
    %145 = arith.addf %129, %144 : vector<18x8x16xf32>
    %146 = arith.addf %145, %142 : vector<18x8x16xf32>
    %147 = math.tanh %146 : vector<18x8x16xf32>
    %c384 = arith.constant 384 : index
    %c0_63 = arith.constant 0 : index
    %148 = vector.load %arg6[%c384, %c0_63] : memref<640x128xf32, #tpu.memory_space<vmem>>, vector<1x16xf32>
    %149 = vector.shape_cast %148 : vector<1x16xf32> to vector<1x1x16xf32>
    %150 = vector.broadcast %149 : vector<1x1x16xf32> to vector<18x8x16xf32>
    %151 = arith.mulf %147, %150 : vector<18x8x16xf32>
    %cst_64 = arith.constant dense<0.000000e+00> : vector<18x8xf32>
    %152 = vector.multi_reduction <add>, %151, %cst_64 [2] : vector<18x8x16xf32> to vector<18x8xf32>
    %153 = arith.addf %152, %130 : vector<18x8xf32>
    %cst_65 = arith.constant dense<0xFF800000> : vector<18xf32>
    %154 = vector.multi_reduction <maximumf>, %153, %cst_65 [1] : vector<18x8xf32> to vector<18xf32>
    %155 = vector.shape_cast %154 : vector<18xf32> to vector<18x1xf32>
    %156 = vector.broadcast %155 : vector<18x1xf32> to vector<18x8xf32>
    %157 = arith.subf %153, %156 : vector<18x8xf32>
    %158 = math.exp %157 : vector<18x8xf32>
    %cst_66 = arith.constant dense<0.000000e+00> : vector<18xf32>
    %159 = vector.multi_reduction <add>, %158, %cst_66 [1] : vector<18x8xf32> to vector<18xf32>
    %160 = vector.shape_cast %159 : vector<18xf32> to vector<18x1xf32>
    %161 = tpu.reciprocal %160 {approx = true} : vector<18x1xf32> -> vector<18x1xf32>
    %162 = vector.broadcast %161 : vector<18x1xf32> to vector<18x8xf32>
    %163 = arith.mulf %158, %162 : vector<18x8xf32>
    %164 = vector.shape_cast %163 : vector<18x8xf32> to vector<18x1x8xf32>
    "tpu.trace_start"() <{level = 10 : i32, message = "bil,bld->bid"}> : () -> ()
    %cst_67 = arith.constant dense<0.000000e+00> : vector<18x1x16xf32>
    %165 = tpu.matmul %164, %128, %cst_67 {dimension_numbers = #tpu.dot_dimension_numbers<[2], [1], [1], [2], [0, 0, 0, 1, 1, 2], [0], [0]>} : vector<18x1x8xf32>, vector<18x8x16xf32>, vector<18x1x16xf32> -> vector<18x1x16xf32>
    "tpu.trace_stop"() : () -> ()
    %166 = vector.shape_cast %165 : vector<18x1x16xf32> to vector<18x16xf32>
    %167 = vector.extract_strided_slice %166 {offsets = [0, 0], sizes = [6, 16], strides = [1, 1]} : vector<18x16xf32> to vector<6x16xf32>
    %168 = vector.extract_strided_slice %166 {offsets = [6, 0], sizes = [6, 16], strides = [1, 1]} : vector<18x16xf32> to vector<6x16xf32>
    %169 = vector.extract_strided_slice %166 {offsets = [12, 0], sizes = [6, 16], strides = [1, 1]} : vector<18x16xf32> to vector<6x16xf32>
    %170 = tpu.concatenate %167, %168, %169 in 1 : vector<6x16xf32>, vector<6x16xf32>, vector<6x16xf32> -> vector<6x48xf32>
    %171 = arith.mulf %170, %170 : vector<6x48xf32>
    %cst_68 = arith.constant dense<0.000000e+00> : vector<6xf32>
    %172 = vector.multi_reduction <add>, %171, %cst_68 [1] : vector<6x48xf32> to vector<6xf32>
    %173 = vector.shape_cast %172 : vector<6xf32> to vector<6x1xf32>
    %174 = math.sqrt %173 : vector<6x1xf32>
    %cst_69 = arith.constant 9.99999996E-13 : f32
    %175 = vector.broadcast %cst_69 : f32 to vector<6x1xf32>
    %176 = arith.maximumf %174, %175 : vector<6x1xf32>
    %177 = vector.broadcast %176 : vector<6x1xf32> to vector<6x48xf32>
    %178 = arith.divf %170, %177 : vector<6x48xf32>
    %c392 = arith.constant 392 : index
    %c0_70 = arith.constant 0 : index
    %179 = vector.load %arg6[%c392, %c0_70] : memref<640x128xf32, #tpu.memory_space<vmem>>, vector<48x32xf32>
    %cst_71 = arith.constant dense<0.000000e+00> : vector<6x32xf32>
    %180 = tpu.matmul %178, %179, %cst_71 {dimension_numbers = #tpu.dot_dimension_numbers<[1], [0], [0], [1], [0, 0, 1, 1], [], []>} : vector<6x48xf32>, vector<48x32xf32>, vector<6x32xf32> -> vector<6x32xf32>
    %c440 = arith.constant 440 : index
    %c0_72 = arith.constant 0 : index
    %181 = vector.load %arg6[%c440, %c0_72] : memref<640x128xf32, #tpu.memory_space<vmem>>, vector<1x32xf32>
    %182 = vector.broadcast %181 : vector<1x32xf32> to vector<6x32xf32>
    %183 = arith.addf %180, %182 : vector<6x32xf32>
    %cst_73 = arith.constant 0.000000e+00 : f32
    %184 = vector.broadcast %cst_73 : f32 to vector<6x32xf32>
    %185 = arith.maximumf %183, %184 : vector<6x32xf32>
    %c448 = arith.constant 448 : index
    %c0_74 = arith.constant 0 : index
    %186 = vector.load %arg6[%c448, %c0_74] : memref<640x128xf32, #tpu.memory_space<vmem>>, vector<32x16xf32>
    %cst_75 = arith.constant dense<0.000000e+00> : vector<6x16xf32>
    %187 = tpu.matmul %185, %186, %cst_75 {dimension_numbers = #tpu.dot_dimension_numbers<[1], [0], [0], [1], [0, 0, 1, 1], [], []>} : vector<6x32xf32>, vector<32x16xf32>, vector<6x16xf32> -> vector<6x16xf32>
    %c480 = arith.constant 480 : index
    %c0_76 = arith.constant 0 : index
    %188 = vector.load %arg6[%c480, %c0_76] : memref<640x128xf32, #tpu.memory_space<vmem>>, vector<1x16xf32>
    %189 = vector.broadcast %188 : vector<1x16xf32> to vector<6x16xf32>
    %190 = arith.addf %187, %189 : vector<6x16xf32>
    %cst_77 = arith.constant 0.000000e+00 : f32
    %191 = vector.broadcast %cst_77 : f32 to vector<6x16xf32>
    %192 = arith.maximumf %190, %191 : vector<6x16xf32>
    %c0_78 = arith.constant 0 : index
    %c0_79 = arith.constant 0 : index
    %193 = vector.load %arg5[%c0_78, %c0_79] : memref<6x16xf32, #tpu.memory_space<vmem>>, vector<6x16xf32>
    %c488 = arith.constant 488 : index
    %c0_80 = arith.constant 0 : index
    %194 = vector.load %arg6[%c488, %c0_80] : memref<640x128xf32, #tpu.memory_space<vmem>>, vector<16x16xf32>
    %cst_81 = arith.constant dense<0.000000e+00> : vector<6x16xf32>
    %195 = tpu.matmul %193, %194, %cst_81 {dimension_numbers = #tpu.dot_dimension_numbers<[1], [0], [0], [1], [0, 0, 1, 1], [], []>} : vector<6x16xf32>, vector<16x16xf32>, vector<6x16xf32> -> vector<6x16xf32>
    %c504 = arith.constant 504 : index
    %c0_82 = arith.constant 0 : index
    %196 = vector.load %arg6[%c504, %c0_82] : memref<640x128xf32, #tpu.memory_space<vmem>>, vector<1x16xf32>
    %197 = vector.broadcast %196 : vector<1x16xf32> to vector<6x16xf32>
    %198 = arith.addf %195, %197 : vector<6x16xf32>
    %cst_83 = arith.constant 0.000000e+00 : f32
    %199 = vector.broadcast %cst_83 : f32 to vector<6x16xf32>
    %200 = arith.maximumf %198, %199 : vector<6x16xf32>
    %cst_84 = arith.constant 0.000000e+00 : f32
    %201 = vector.broadcast %cst_84 : f32 to vector<6x48xf32>
    %202 = tpu.concatenate %69, %92, %192, %200, %201 in 1 : vector<6x32xf32>, vector<6x16xf32>, vector<6x16xf32>, vector<6x16xf32>, vector<6x48xf32> -> vector<6x128xf32>
    %c0_85 = arith.constant 0 : index
    %c0_86 = arith.constant 0 : index
    %203 = vector.load %arg7[%c0_85, %c0_86] : memref<6x128xf32, #tpu.memory_space<vmem>>, vector<6x128xf32>
    tpu.vector_store %arg7[%c0_85, %c0_86], %202 {strides = array<i32>} : memref<6x128xf32, #tpu.memory_space<vmem>>, vector<6x128xf32>,
    return
  }
}

</mosaic_0001>

<bundles_post_ra>
// kernel: mhsa_forward.1
= control target key start
LH: loop header
LB: loop body
LE: loop exit
PB: predicated region body
PF: predicated region fallthrough
CT: control target
= control target key end

     0   :  { %vm61_vm0 = vcmask 261120   ;;  %s8673_s27 = smov 16   ;;  %s8674_s28 = smov 48   ;;  %vm1229_vm1 = vcmask 130048   ;;  %vm1232_vm2 = vcmask 392192   ;;  %vm1324_vm3 = vcmask 523264   ;;  %s10633_s6 = inlined_call_operand.vmem [shape: f32[640,128], index: 6, kind: input, shape index: {}]   ;;  %s10634_s0 = inlined_call_operand.vmem [shape: f32[96,32], index: 0, kind: input, shape index: {}]   ;;  %s10635_s1 = inlined_call_operand.vmem [shape: f32[6,16], index: 1, kind: input, shape index: {}]   ;;  %s10636_s2 = inlined_call_operand.vmem [shape: f32[6,32], index: 2, kind: input, shape index: {}]   ;;  %s10637_s3 = inlined_call_operand.vmem [shape: f32[48,16], index: 3, kind: input, shape index: {}]   ;;  %s10638_s4 = inlined_call_operand.vmem [shape: f32[6,8], index: 4, kind: input, shape index: {}]   ;;  %s10639_s5 = inlined_call_operand.vmem [shape: f32[6,16], index: 5, kind: input, shape index: {}]   ;;  %s10640_s7 = inlined_call_operand.vmem [shape: f32[6,128], index: 7, kind: output, shape index: {}]  }
   0x1   :  { %v226_v0 = vld [vmem:[%s10633_s6 + $0x38] sm:$0xff]  ;;  %v225_v1 = vld [vmem:[%s10633_s6 + $0x30] sm:$0xff]  ;;  %v8732_v2 = vld [vmem:[%s10634_s0] sm:$0xff]  ;;  %s8675_s29 = smov 32   ;;  %vm3272_vm4 = vcmask 259072   ;;  %vm2452_vm5 = vcmask 130112  }
   0x2   :  { %7850 = vmatprep.subr.mxu1 %v226_v0  ;;  %v224_v3 = vld [vmem:[%s10633_s6 + $0x28] sm:$0xff]  ;;  %7858 = vmatprep.mubr.msk.f32.mxu1 %vm61_vm0, %v8732_v2  ;;  %v60_v4 = vld [vmem:[%s10633_s6 + $0x18] sm:$0xff]  ;;  %v59_v5 = vld [vmem:[%s10633_s6 + $0x10] sm:$0xff]  ;;  %vm2499_vm6 = vcmask 1041409   ;;  %vm2501_vm7 = vcmask 1042434   ;;  %vm2503_vm8 = vcmask 1043459  }
   0x3   :  { %7851 = vmatpush3.msra.mxu1 %v226_v0  ;;  %7824 = vmatprep.subr.mxu0 %v60_v4  ;;  %v223_v6 = vld [vmem:[%s10633_s6 + $0x20] sm:$0xff]  ;;  %v58_v7 = vld [vmem:[%s10633_s6 + $0x8] sm:$0xff]  ;;  %v28_v10 = vld [vmem:[%s10634_s0 + $0x10] sm:$0xff]  ;;  %vm2505_vm9 = vcmask 1044484   ;;  %vm2507_vm10 = vcmask 1045509   ;;  %vm2510_vm11 = vcmask 128000  }
   0x4   :  { %7852 = vmatprep.subr.mxu1 %v225_v1  ;;  %7825 = vmatpush3.msra.mxu0 %v60_v4  ;;  %v27_v8 = vld [vmem:[%s10634_s0 + $0x8] sm:$0xff]  ;;  %v57_v9 = vld [vmem:[%s10633_s6] sm:$0xff]  ;;  %v355_v11 = vld [vmem:[%s10633_s6 + $0x58] sm:$0xff]  ;;  %vm8679_vm14 = vmmov 0   ;;  %s8680_s21 = smov 112   ;;  %vm3705_vm15 = vcmask 1045504  }
   0x5   :  { %7853 = vmatpush3.msra.mxu1 %v225_v1  ;;  %7826 = vmatprep.subr.mxu0 %v59_v5  ;;  %v29_v12 = vld [vmem:[%s10634_s0 + $0x18] sm:$0xff]  ;;  %v30_v13 = vld [vmem:[%s10634_s0 + $0x20] sm:$0xff]  ;;  %v354_v14 = vld [vmem:[%s10633_s6 + $0x50] sm:$0xff] }
   0x6   :  { %7854 = vmatprep.subr.mxu1 %v224_v3  ;;  %7827 = vmatpush3.msra.mxu0 %v59_v5  ;;  %v31_v15 = vld [vmem:[%s10634_s0 + $0x28] sm:$0xff]  ;;  %v32_v16 = vld [vmem:[%s10634_s0 + $0x30] sm:$0xff]  ;;  %v33_v18 = vld [vmem:[%s10634_s0 + $0x38] sm:$0xff] }
   0x7   :  { %7855 = vmatpush3.msra.mxu1 %v224_v3  ;;  %7828 = vmatprep.subr.mxu0 %v58_v7  ;;  %v353_v17 = vld [vmem:[%s10633_s6 + $0x48] sm:$0xff]  ;;  %v34_v19 = vld [vmem:[%s10634_s0 + $0x40] sm:$0xff]  ;;  %v36_v22 = vld [vmem:[%s10634_s0 + $0x50] sm:$0xff] }
   0x8   :  { %7856 = vmatprep.subr.mxu1 %v223_v6  ;;  %7829 = vmatpush3.msra.mxu0 %v58_v7  ;;  %v352_v20 = vld [vmem:[%s10633_s6 + $0x40] sm:$0xff]  ;;  %v35_v21 = vld [vmem:[%s10634_s0 + $0x48] sm:$0xff]  ;;  %v37_v23 = vld [vmem:[%s10634_s0 + $0x58] sm:$0xff] }
   0x9   :  { %7857 = vmatpush3.msra.mxu1 %v223_v6  ;;  %7830 = vmatprep.subr.mxu0 %v57_v9  ;;  %v38_v24 = vld [vmem:[%s10635_s1] sm:$0x3f]  ;;  %v8850_v27 = vld [vmem:[%s10633_s6 + $0x238] sm:$0xff]  ;;  %v8855_v29 = vld [vmem:[%s10633_s6 + $0x230] sm:$0xff] }
   0xa   :  { %7859 = vmatmul.mubr.msk.f32.vlgmr.msra.gmra.mxu1 %vm61_vm0, %v27_v8  ;;  %7831 = vmatpush3.msra.mxu0 %v57_v9  ;;  %v7290_v25 = vadd.f32 -1.0, %v38_v24  ;;  %v8865_v34 = vld [vmem:[%s10633_s6 + $0x228] sm:$0xff]  ;;  %v8879_v42 = vld [vmem:[%s10633_s6 + $0x220] sm:$0xff]  ;;  %v8891_v46 = vld [vmem:[%s10633_s6 + $0x218] sm:$0xff] }
   0xb   :  { %7861 = vmatprep.mubr.msk.f32.mxu1 %vm61_vm0, %v28_v10  ;;  %7832 = vmatprep.mubr.msk.f32.mxu0 %vm61_vm0, %v8732_v2  ;;  %v8902_v49 = vld [vmem:[%s10633_s6 + $0x210] sm:$0xff]  ;;  %v8913_v52 = vld [vmem:[%s10633_s6 + $0x208] sm:$0xff]  ;;  %v8924_v55 = vld [vmem:[%s10633_s6 + $0x200] sm:$0xff] }
   0xc   :  { %7876 = vmatprep.subr.mxu0 %v355_v11  ;;  %7833 = vmatmul.mubr.msk.f32.vlgmr.msra.gmra.mxu0 %vm61_vm0, %v27_v8  ;;  %v8839_v26 = vmul.f32 1e+09, %v7290_v25 }
   0xd   :  { %7835 = vmatprep.mubr.msk.f32.mxu0 %vm61_vm0, %v28_v10  ;;  %7877 = vmatpush3.msra.mxu0 %v355_v11 }
   0xe   :  { %7862 = vmatmul.mubr.msk.f32.gmra.mxu1 %vm61_vm0, %v29_v12  ;;  %7878 = vmatprep.subr.mxu0 %v354_v14 }
   0xf   :  { %7864 = vmatprep.mubr.msk.f32.mxu1 %vm61_vm0, %v30_v13  ;;  %7879 = vmatpush3.msra.mxu0 %v354_v14 }
  0x10   :  { %7836 = vmatmul.mubr.msk.f32.gmra.mxu0 %vm61_vm0, %v29_v12  ;;  %7880 = vmatprep.subr.mxu0 %v353_v17 }
  0x11   :  { %7838 = vmatprep.mubr.msk.f32.mxu0 %vm61_vm0, %v30_v13  ;;  %7881 = vmatpush3.msra.mxu0 %v353_v17 }
  0x12   :  { %7865 = vmatmul.mubr.msk.f32.gmra.mxu1 %vm61_vm0, %v31_v15  ;;  %7882 = vmatprep.subr.mxu0 %v352_v20 }
  0x13   :  { %7867 = vmatprep.mubr.msk.f32.mxu1 %vm61_vm0, %v32_v16  ;;  %7883 = vmatpush3.msra.mxu0 %v352_v20 }
  0x14   :  { %7839 = vmatmul.mubr.msk.f32.gmra.mxu0 %vm61_vm0, %v31_v15  ;;  %1220 = vrot.lane.b32.xlu0 %v8839_v26, %s8673_s27 }
  0x15   :  { %7841 = vmatprep.mubr.msk.f32.mxu0 %vm61_vm0, %v32_v16  ;;  %1226 = vrot.lane.b32.xlu1 %v8839_v26, %s8674_s28 }
  0x16   :  { %7868 = vmatmul.mubr.msk.f32.gmra.mxu1 %vm61_vm0, %v33_v18 }
  0x17   :  { %7870 = vmatprep.mubr.msk.f32.mxu1 %vm61_vm0, %v34_v19 }
  0x18   :  { %7842 = vmatmul.mubr.msk.f32.gmra.mxu0 %vm61_vm0, %v33_v18  ;;  %1223 = vrot.lane.b32.xlu0 %v8839_v26, %s8675_s29 }
  0x19   :  { %7844 = vmatprep.mubr.msk.f32.mxu0 %vm61_vm0, %v34_v19 }
  0x1a   :  { %7871 = vmatmul.mubr.msk.f32.gmra.mxu1 %vm61_vm0, %v35_v21 }
  0x1b   :  { %7873 = vmatprep.mubr.msk.f32.mxu1 %vm61_vm0, %v36_v22 }
  0x1c   :  { %7845 = vmatmul.mubr.msk.f32.gmra.mxu0 %vm61_vm0, %v35_v21 }
  0x1d   :  { %7847 = vmatprep.mubr.msk.f32.mxu0 %vm61_vm0, %v36_v22 }
  0x1e   :  { %7874 = vmatmul.mubr.msk.f32.gmra.mxu1 %vm61_vm0, %v37_v23 }
  0x20   :  { %7848 = vmatmul.mubr.msk.f32.gmra.mxu0 %vm61_vm0, %v37_v23 }
  0x21   :  { %7884 = vmatprep.mubr.msk.f32.mxu0 %vm61_vm0, %v8732_v2 }
  0x24   :  { %7885 = vmatmul.mubr.msk.f32.vlgmr.msra.gmra.mxu0 %vm61_vm0, %v27_v8 }
  0x25   :  { %7887 = vmatprep.mubr.msk.f32.mxu0 %vm61_vm0, %v28_v10 }
  0x28   :  { %7888 = vmatmul.mubr.msk.f32.gmra.mxu0 %vm61_vm0, %v29_v12 }
  0x29   :  { %7890 = vmatprep.mubr.msk.f32.mxu0 %vm61_vm0, %v30_v13 }
  0x2c   :  { %7891 = vmatmul.mubr.msk.f32.gmra.mxu0 %vm61_vm0, %v31_v15 }
  0x2d   :  { %7893 = vmatprep.mubr.msk.f32.mxu0 %vm61_vm0, %v32_v16 }
  0x30   :  { %7894 = vmatmul.mubr.msk.f32.gmra.mxu0 %vm61_vm0, %v33_v18 }
  0x31   :  { %7896 = vmatprep.mubr.msk.f32.mxu0 %vm61_vm0, %v34_v19 }
  0x34   :  { %7897 = vmatmul.mubr.msk.f32.gmra.mxu0 %vm61_vm0, %v35_v21 }
  0x35   :  { %7899 = vmatprep.mubr.msk.f32.mxu0 %vm61_vm0, %v36_v22 }
  0x38   :  { %7900 = vmatmul.mubr.msk.f32.gmra.mxu0 %vm61_vm0, %v37_v23 }
  0xca   :  { %v7860_v28 = vpop.f32.mrf.mxu1 }
  0xcb   :  { %v488_v30 = vmul.f32 %v7860_v28, %v8850_v27  ;;  %v486_v39 = vmul.f32 %v7860_v28, %v8865_v34  ;;  %v484_v47 = vmul.f32 %v7860_v28, %v8891_v46  ;;  %v482_v53 = vmul.f32 %v7860_v28, %v8913_v52 }
  0xcc   :  { %v293_v31 = vpop.f32.mrf.mxu1  ;;  %v8860_v33 = vpop.f32.mrf.mxu0 }
  0xcd   :  { %v487_v32 = vmul.f32 %v293_v31, %v8855_v29  ;;  %7902 = vmatprep.subr.msk.mxu1 %vm61_vm0, %v488_v30  ;;  %v485_v44 = vmul.f32 %v293_v31, %v8879_v42  ;;  %v483_v50 = vmul.f32 %v293_v31, %v8902_v49  ;;  %v481_v57 = vmul.f32 %v293_v31, %v8924_v55 }
  0xce   :  { %v7863_v35 = vpop.f32.mrf.mxu1  ;;  %7903 = vmatpush3.xpose.msk.msra.mxu1 %vm61_vm0, %v488_v30  ;;  %v164_v37 = vpop.f32.mrf.mxu0 }
  0xcf   :  { %v496_v36 = vmul.f32 %v7863_v35, %v8850_v27  ;;  %7904 = vmatprep.subr.msk.mxu1 %vm61_vm0, %v487_v32  ;;  %7918 = vmatprep.mubr.msk.f32.mxu1 %vm61_vm0, %v164_v37  ;;  %v494_v45 = vmul.f32 %v7863_v35, %v8865_v34  ;;  %v492_v51 = vmul.f32 %v7863_v35, %v8891_v46 }
  0xd0   :  { %v303_v38 = vpop.f32.mrf.mxu1  ;;  %v8874_v41 = vpop.f32.mrf.mxu0  ;;  %v490_v58 = vmul.f32 %v7863_v35, %v8913_v52 }
  0xd1   :  { %v495_v40 = vmul.f32 %v303_v38, %v8855_v29  ;;  %7921 = vmatprep.subr.msk.mxu0 %vm61_vm0, %v496_v36  ;;  %v493_v48 = vmul.f32 %v303_v38, %v8879_v42  ;;  %v491_v54 = vmul.f32 %v303_v38, %v8902_v49  ;;  %v489_v62 = vmul.f32 %v303_v38, %v8924_v55 }
  0xd2   :  { %7905 = vmatpush3.xpose.msk.msra.mxu1 %vm61_vm0, %v487_v32  ;;  %7922 = vmatpush3.xpose.msk.msra.mxu0 %vm61_vm0, %v496_v36  ;;  %v174_v43 = vpop.f32.mrf.mxu0  ;;  %v7866_v56 = vpop.f32.mrf.mxu1 }
  0xd3   :  { %7906 = vmatprep.subr.msk.mxu1 %vm61_vm0, %v486_v39  ;;  %7923 = vmatprep.subr.msk.mxu0 %vm61_vm0, %v495_v40  ;;  %v504_v61 = vmul.f32 %v7866_v56, %v8850_v27  ;;  %v502_v5 = vmul.f32 %v7866_v56, %v8865_v34  ;;  %v500_v10 = vmul.f32 %v7866_v56, %v8891_v46 }
  0xd4   :  { %7937 = vmatprep.mubr.msk.f32.mxu0 %vm61_vm0, %v174_v43  ;;  %v8932_v59 = vpop.f32.mrf.mxu0  ;;  %v313_v60 = vpop.f32.mrf.mxu1  ;;  %v498_v14 = vmul.f32 %v7866_v56, %v8913_v52  ;;  %v55_v56 = vld [vmem:[%s10633_s6 + $0x270] sm:$0xff] }
  0xd5   :  { %v503_v2 = vmul.f32 %v313_v60, %v8855_v29  ;;  %v501_v8 = vmul.f32 %v313_v60, %v8879_v42  ;;  %v499_v12 = vmul.f32 %v313_v60, %v8902_v49  ;;  %v497_v17 = vmul.f32 %v313_v60, %v8924_v55 }
  0xd6   :  { %7907 = vmatpush3.xpose.msk.msra.mxu1 %vm61_vm0, %v486_v39  ;;  %7924 = vmatpush3.xpose.msk.msra.mxu0 %vm61_vm0, %v495_v40  ;;  %v184_v63 = vpop.f32.mrf.mxu0  ;;  %v7869_v0 = vpop.f32.mrf.mxu1 }
  0xd7   :  { %7908 = vmatprep.subr.msk.mxu1 %vm61_vm0, %v485_v44  ;;  %7925 = vmatprep.subr.msk.mxu0 %vm61_vm0, %v494_v45  ;;  %v512_v1 = vmul.f32 %v7869_v0, %v8850_v27  ;;  %v510_v9 = vmul.f32 %v7869_v0, %v8865_v34  ;;  %v508_v13 = vmul.f32 %v7869_v0, %v8891_v46 }
  0xd8   :  { %v8948_v3 = vpop.f32.mrf.mxu0  ;;  %v323_v4 = vpop.f32.mrf.mxu1  ;;  %v506_v18 = vmul.f32 %v7869_v0, %v8913_v52 }
  0xd9   :  { %v511_v6 = vmul.f32 %v323_v4, %v8855_v29  ;;  %v509_v11 = vmul.f32 %v323_v4, %v8879_v42  ;;  %v507_v15 = vmul.f32 %v323_v4, %v8902_v49  ;;  %v505_v22 = vmul.f32 %v323_v4, %v8924_v55 }
  0xda   :  { %7909 = vmatpush3.xpose.msk.msra.mxu1 %vm61_vm0, %v485_v44  ;;  %7926 = vmatpush3.xpose.msk.msra.mxu0 %vm61_vm0, %v494_v45  ;;  %v194_v7 = vpop.f32.mrf.mxu0  ;;  %v7872_v16 = vpop.f32.mrf.mxu1 }
  0xdb   :  { %7910 = vmatprep.subr.msk.mxu1 %vm61_vm0, %v484_v47  ;;  %7927 = vmatprep.subr.msk.mxu0 %vm61_vm0, %v493_v48  ;;  %v520_v21 = vmul.f32 %v7872_v16, %v8850_v27  ;;  %v518_v32 = vmul.f32 %v7872_v16, %v8865_v34  ;;  %v516_v38 = vmul.f32 %v7872_v16, %v8891_v46 }
  0xdc   :  { %v8990_v19 = vpop.f32.mrf.mxu0  ;;  %v333_v20 = vpop.f32.mrf.mxu1  ;;  %v514_v43 = vmul.f32 %v7872_v16, %v8913_v52 }
  0xdd   :  { %v519_v28 = vmul.f32 %v333_v20, %v8855_v29  ;;  %v517_v36 = vmul.f32 %v333_v20, %v8879_v42  ;;  %v515_v40 = vmul.f32 %v333_v20, %v8902_v49  ;;  %v513_v45 = vmul.f32 %v333_v20, %v8924_v55 }
  0xde   :  { %7911 = vmatpush3.xpose.msk.msra.mxu1 %vm61_vm0, %v484_v47  ;;  %7928 = vmatpush3.xpose.msk.msra.mxu0 %vm61_vm0, %v493_v48  ;;  %v204_v23 = vpop.f32.mrf.mxu0  ;;  %v7875_v24 = vpop.f32.mrf.mxu1 }
  0xdf   :  { %7912 = vmatprep.subr.msk.mxu1 %vm61_vm0, %v483_v50  ;;  %7929 = vmatprep.subr.msk.mxu0 %vm61_vm0, %v492_v51  ;;  %v528_v25 = vmul.f32 %v7875_v24, %v8850_v27  ;;  %v526_v37 = vmul.f32 %v7875_v24, %v8865_v34  ;;  %v522_v47 = vmul.f32 %v7875_v24, %v8913_v52 }
  0xe0   :  { %v9006_v30 = vpop.f32.mrf.mxu0  ;;  %v343_v31 = vpop.f32.mrf.mxu1 }
  0xe1   :  { %v525_v39 = vmul.f32 %v343_v31, %v8879_v42  ;;  %v523_v44 = vmul.f32 %v343_v31, %v8902_v49 }
  0xe2   :  { %7913 = vmatpush3.xpose.msk.msra.mxu1 %vm61_vm0, %v483_v50  ;;  %7930 = vmatpush3.xpose.msk.msra.mxu0 %vm61_vm0, %v492_v51  ;;  %v214_v35 = vpop.f32.mrf.mxu0  ;;  %v56_v50 = vld [vmem:[%s10633_s6 + $0x278] sm:$0xff]  ;;  %v521_v51 = vmul.f32 %v343_v31, %v8924_v55 }
  0xe3   :  { %7914 = vmatprep.subr.msk.mxu1 %vm61_vm0, %v482_v53  ;;  %7931 = vmatprep.subr.msk.mxu0 %vm61_vm0, %v491_v54 }
  0xe4   :  { %v7886_v48 = vpop.f32.mrf.mxu0 }
  0xe5   :  { %v534_v60 = vmul.f32 %v7886_v48, %v8865_v34 }
  0xe6   :  { %7915 = vmatpush3.xpose.msk.msra.mxu1 %vm61_vm0, %v482_v53  ;;  %7932 = vmatpush3.xpose.msk.msra.mxu0 %vm61_vm0, %v491_v54  ;;  %v536_v53 = vmul.f32 %v7886_v48, %v8850_v27  ;;  %v422_v54 = vpop.f32.mrf.mxu0 }
  0xe7   :  { %7916 = vmatprep.subr.msk.mxu1 %vm61_vm0, %v481_v57  ;;  %7933 = vmatprep.subr.msk.mxu0 %vm61_vm0, %v490_v58 }
  0xe8   :  { %v9083_v0 = vpop.f32.mrf.mxu0 }
  0xea   :  { %7917 = vmatpush3.xpose.msk.msra.mxu1 %vm61_vm0, %v481_v57  ;;  %7934 = vmatpush3.xpose.msk.msra.mxu0 %vm61_vm0, %v490_v58  ;;  %v54_v57 = vld [vmem:[%s10633_s6 + $0x268] sm:$0xff]  ;;  %v535_v58 = vmul.f32 %v422_v54, %v8855_v29  ;;  %v9090_v4 = vpop.f32.mrf.mxu0 }
  0xeb   :  { %7935 = vmatprep.subr.msk.mxu0 %vm61_vm0, %v489_v62  ;;  %7940 = vmatprep.subr.msk.mxu1 %vm61_vm0, %v504_v61 }
  0xed   :  { %7919 = vmatmul.mubr.msk.f32.vlgmr.msra.gmra.mxu1 %vm61_vm0, %v8860_v33  ;;  %v527_v33 = vmul.f32 %v343_v31, %v8855_v29 }
  0xee   :  { %7936 = vmatpush3.xpose.msk.msra.mxu0 %vm61_vm0, %v489_v62  ;;  %7941 = vmatpush3.xpose.msk.msra.mxu1 %vm61_vm0, %v504_v61  ;;  %v52_v61 = vld [vmem:[%s10633_s6 + $0x258] sm:$0xff]  ;;  %v533_v62 = vmul.f32 %v422_v54, %v8879_v42 }
  0xef   :  { %7942 = vmatprep.subr.msk.mxu1 %vm61_vm0, %v503_v2  ;;  %7959 = vmatprep.subr.msk.mxu0 %vm61_vm0, %v512_v1 }
  0xf0   :  { %7956 = vmatprep.mubr.msk.f32.mxu1 %vm61_vm0, %v184_v63  ;;  %v51_v63 = vld [vmem:[%s10633_s6 + $0x250] sm:$0xff] }
  0xf1   :  { %7938 = vmatmul.mubr.msk.f32.vlgmr.msra.gmra.mxu0 %vm61_vm0, %v8874_v41  ;;  %v524_v41 = vmul.f32 %v7875_v24, %v8891_v46 }
  0xf2   :  { %7943 = vmatpush3.xpose.msk.msra.mxu1 %vm61_vm0, %v503_v2  ;;  %7960 = vmatpush3.xpose.msk.msra.mxu0 %vm61_vm0, %v512_v1  ;;  %v532_v1 = vmul.f32 %v7886_v48, %v8891_v46  ;;  %v50_v2 = vld [vmem:[%s10633_s6 + $0x248] sm:$0xff] }
  0xf3   :  { %7944 = vmatprep.subr.msk.mxu1 %vm61_vm0, %v502_v5  ;;  %7961 = vmatprep.subr.msk.mxu0 %vm61_vm0, %v511_v6 }
  0xf4   :  { %7975 = vmatprep.mubr.msk.f32.mxu0 %vm61_vm0, %v194_v7  ;;  %v9098_v7 = vmul.f32 %v9083_v0, %v8850_v27 }
  0xf6   :  { %7945 = vmatpush3.xpose.msk.msra.mxu1 %vm61_vm0, %v502_v5  ;;  %7962 = vmatpush3.xpose.msk.msra.mxu0 %vm61_vm0, %v511_v6  ;;  %v49_v5 = vld [vmem:[%s10633_s6 + $0x240] sm:$0xff]  ;;  %v530_v6 = vmul.f32 %v7886_v48, %v8913_v52 }
  0xf7   :  { %7946 = vmatprep.subr.msk.mxu1 %vm61_vm0, %v501_v8  ;;  %7963 = vmatprep.subr.msk.mxu0 %vm61_vm0, %v510_v9 }
  0xfa   :  { %7947 = vmatpush3.xpose.msk.msra.mxu1 %vm61_vm0, %v501_v8  ;;  %7964 = vmatpush3.xpose.msk.msra.mxu0 %vm61_vm0, %v510_v9  ;;  %v529_v8 = vmul.f32 %v422_v54, %v8924_v55  ;;  %v9101_v9 = vpop.f32.mrf.mxu0 }
  0xfb   :  { %7948 = vmatprep.subr.msk.mxu1 %vm61_vm0, %v500_v10  ;;  %7965 = vmatprep.subr.msk.mxu0 %vm61_vm0, %v509_v11 }
  0xfe   :  { %7949 = vmatpush3.xpose.msk.msra.mxu1 %vm61_vm0, %v500_v10  ;;  %7966 = vmatpush3.xpose.msk.msra.mxu0 %vm61_vm0, %v509_v11  ;;  %v9106_v10 = vmul.f32 %v9101_v9, %v8850_v27  ;;  %v9109_v11 = vpop.f32.mrf.mxu0 }
  0xff   :  { %7950 = vmatprep.subr.msk.mxu1 %vm61_vm0, %v499_v12  ;;  %7967 = vmatprep.subr.msk.mxu0 %vm61_vm0, %v508_v13 }
 0x100   :  { %v9111_v16 = vpop.f32.mrf.mxu0 }
 0x102   :  { %7951 = vmatpush3.xpose.msk.msra.mxu1 %vm61_vm0, %v499_v12  ;;  %7968 = vmatpush3.xpose.msk.msra.mxu0 %vm61_vm0, %v508_v13  ;;  %v1221_v12 = vpop.permute.xlu0 %1220  ;;  %v8676_v13 = vmov 1966171168  }
 0x103   :  { %7952 = vmatprep.subr.msk.mxu1 %vm61_vm0, %v498_v14  ;;  %7969 = vmatprep.subr.msk.mxu0 %vm61_vm0, %v507_v15 }
 0x106   :  { %7953 = vmatpush3.xpose.msk.msra.mxu1 %vm61_vm0, %v498_v14  ;;  %7970 = vmatpush3.xpose.msk.msra.mxu0 %vm61_vm0, %v507_v15  ;;  %v1237_v14 = vunpack.c.l.s4 %v8676_v13  ;;  %v1239_v15 = vlaneseq }
 0x107   :  { %7954 = vmatprep.subr.msk.mxu1 %vm61_vm0, %v497_v17  ;;  %7971 = vmatprep.subr.msk.mxu0 %vm61_vm0, %v506_v18 }
 0x108   :  { %v9116_v20 = vshrl.u32 %v1239_v15, 7 }
 0x10a   :  { %7955 = vmatpush3.xpose.msk.msra.mxu1 %vm61_vm0, %v497_v17  ;;  %7972 = vmatpush3.xpose.msk.msra.mxu0 %vm61_vm0, %v506_v18  ;;  %v1230_v17 = vsel %vm1229_vm1, %v8839_v26, %v1221_v12  ;;  %v1224_v18 = vpop.permute.xlu0 %1223 }
 0x10b   :  { %7973 = vmatprep.subr.msk.mxu0 %vm61_vm0, %v505_v22  ;;  %7978 = vmatprep.subr.msk.mxu1 %vm61_vm0, %v520_v21 }
 0x10d   :  { %7957 = vmatmul.mubr.msk.f32.vlgmr.msra.gmra.mxu1 %vm61_vm0, %v8932_v59  ;;  %v53_v59 = vld [vmem:[%s10633_s6 + $0x260] sm:$0xff] }
 0x10e   :  { %7974 = vmatpush3.xpose.msk.msra.mxu0 %vm61_vm0, %v505_v22  ;;  %7979 = vmatpush3.xpose.msk.msra.mxu1 %vm61_vm0, %v520_v21  ;;  %v9118_v21 = vpop.f32.mrf.mxu0  ;;  %v1231_v22 = vsel %vm61_vm0, %v1230_v17, %v1224_v18 }
 0x10f   :  { %7980 = vmatprep.subr.msk.mxu1 %vm61_vm0, %v519_v28  ;;  %7997 = vmatprep.subr.msk.mxu0 %vm61_vm0, %v528_v25 }
 0x110   :  { %7994 = vmatprep.mubr.msk.f32.mxu1 %vm61_vm0, %v204_v23  ;;  %v1227_v23 = vpop.permute.xlu1 %1226 }
 0x111   :  { %7976 = vmatmul.mubr.msk.f32.vlgmr.msra.gmra.mxu0 %vm61_vm0, %v8948_v3  ;;  %v531_v3 = vmul.f32 %v422_v54, %v8902_v49 }
 0x112   :  { %7981 = vmatpush3.xpose.msk.msra.mxu1 %vm61_vm0, %v519_v28  ;;  %7998 = vmatpush3.xpose.msk.msra.mxu0 %vm61_vm0, %v528_v25  ;;  %v1233_v25 = vsel %vm1232_vm2, %v1231_v22, %v1227_v23  ;;  %v9125_v28 = vpop.f32.mrf.mxu0 }
 0x113   :  { %7982 = vmatprep.subr.msk.mxu1 %vm61_vm0, %v518_v32  ;;  %7999 = vmatprep.subr.msk.mxu0 %vm61_vm0, %v527_v33 }
 0x114   :  { %8013 = vmatprep.mubr.msk.f32.mxu0 %vm61_vm0, %v214_v35  ;;  %v9128_v31 = vpop.f32.mrf.mxu0  ;;  %v9132_v35 = vsub.s32 0, %v9116_v20 }
 0x116   :  { %7983 = vmatpush3.xpose.msk.msra.mxu1 %vm61_vm0, %v518_v32  ;;  %8000 = vmatpush3.xpose.msk.msra.mxu0 %vm61_vm0, %v527_v33 }
 0x117   :  { %7984 = vmatprep.subr.msk.mxu1 %vm61_vm0, %v517_v36  ;;  %8001 = vmatprep.subr.msk.mxu0 %vm61_vm0, %v526_v37 }
 0x11a   :  { %7985 = vmatpush3.xpose.msk.msra.mxu1 %vm61_vm0, %v517_v36  ;;  %8002 = vmatpush3.xpose.msk.msra.mxu0 %vm61_vm0, %v526_v37  ;;  %v9134_v36 = vpop.f32.mrf.mxu0 }
 0x11b   :  { %7986 = vmatprep.subr.msk.mxu1 %vm61_vm0, %v516_v38  ;;  %8003 = vmatprep.subr.msk.mxu0 %vm61_vm0, %v525_v39 }
 0x11e   :  { %7987 = vmatpush3.xpose.msk.msra.mxu1 %vm61_vm0, %v516_v38  ;;  %8004 = vmatpush3.xpose.msk.msra.mxu0 %vm61_vm0, %v525_v39 }
 0x11f   :  { %7988 = vmatprep.subr.msk.mxu1 %vm61_vm0, %v515_v40  ;;  %8005 = vmatprep.subr.msk.mxu0 %vm61_vm0, %v524_v41 }
 0x122   :  { %7989 = vmatpush3.xpose.msk.msra.mxu1 %vm61_vm0, %v515_v40  ;;  %8006 = vmatpush3.xpose.msk.msra.mxu0 %vm61_vm0, %v524_v41  ;;  %v9138_v40 = vpop.f32.mrf.mxu0 }
 0x123   :  { %7990 = vmatprep.subr.msk.mxu1 %vm61_vm0, %v514_v43  ;;  %8007 = vmatprep.subr.msk.mxu0 %vm61_vm0, %v523_v44 }
 0x126   :  { %7991 = vmatpush3.xpose.msk.msra.mxu1 %vm61_vm0, %v514_v43  ;;  %8008 = vmatpush3.xpose.msk.msra.mxu0 %vm61_vm0, %v523_v44 }
 0x127   :  { %7992 = vmatprep.subr.msk.mxu1 %vm61_vm0, %v513_v45  ;;  %8009 = vmatprep.subr.msk.mxu0 %vm61_vm0, %v522_v47 }
 0x12a   :  { %7993 = vmatpush3.xpose.msk.msra.mxu1 %vm61_vm0, %v513_v45  ;;  %8010 = vmatpush3.xpose.msk.msra.mxu0 %vm61_vm0, %v522_v47 }
 0x12b   :  { %8011 = vmatprep.subr.msk.mxu0 %vm61_vm0, %v521_v51  ;;  %8016 = vmatprep.subr.mxu1 %v56_v50 }
 0x12d   :  { %7995 = vmatmul.mubr.msk.f32.vlgmr.msra.gmra.mxu1 %vm61_vm0, %v8990_v19  ;;  %v1238_v19 = vunpack.c.0.s8 %v1237_v14 }
 0x12e   :  { %8012 = vmatpush3.xpose.msk.msra.mxu0 %vm61_vm0, %v521_v51  ;;  %8017 = vmatpush3.msra.mxu1 %v56_v50 }
 0x12f   :  { %8050 = vmatprep.subr.mxu0 %v536_v53  ;;  %8018 = vmatprep.subr.mxu1 %v55_v56  ;;  %v9122_v24 = vsub.s32 %v1238_v19, %v9116_v20 }
 0x130   :  { %8019 = vmatpush3.msra.mxu1 %v55_v56 }
 0x131   :  { %8014 = vmatmul.mubr.msk.f32.vlgmr.msra.gmra.mxu0 %vm61_vm0, %v9006_v30  ;;  %8020 = vmatprep.subr.mxu1 %v54_v57  ;;  %v1242_v30 = vrot.slane %v1233_v25, %v9122_v24 }
 0x132   :  { %8051 = vmatpush3.msra.mxu0 %v536_v53  ;;  %8021 = vmatpush3.msra.mxu1 %v54_v57 }
 0x133   :  { %8052 = vmatprep.subr.mxu0 %v535_v58  ;;  %8022 = vmatprep.subr.mxu1 %v53_v59  ;;  %v1250_v32 = vcombine.high %v1242_v30, %v1242_v30  ;;  %v1258_v33 = vrot.slane %v1242_v30, %v9122_v24 }
 0x134   :  { %8053 = vmatpush3.msra.mxu0 %v535_v58  ;;  %8023 = vmatpush3.msra.mxu1 %v53_v59 }
 0x135   :  { %8054 = vmatprep.subr.mxu0 %v534_v60  ;;  %8024 = vmatprep.subr.mxu1 %v52_v61  ;;  %v1285_v37 = vrot.slane %v1258_v33, %v9132_v35  ;;  %v1272_v38 = vrot.slane %v1250_v32, %v9122_v24 }
 0x136   :  { %8055 = vmatpush3.msra.mxu0 %v534_v60  ;;  %8025 = vmatpush3.msra.mxu1 %v52_v61 }
 0x137   :  { %8056 = vmatprep.subr.mxu0 %v533_v62  ;;  %8026 = vmatprep.subr.mxu1 %v51_v63  ;;  %v1289_v47 = vrot.slane %v1272_v38, %v9132_v35 }
 0x138   :  { %8057 = vmatpush3.msra.mxu0 %v533_v62  ;;  %8027 = vmatpush3.msra.mxu1 %v51_v63  ;;  %v1280_v62 = vcombine.high %v1258_v33, %v1258_v33 }
 0x139   :  { %8058 = vmatprep.subr.mxu0 %v532_v1  ;;  %8028 = vmatprep.subr.mxu1 %v50_v2 }
 0x13a   :  { %8059 = vmatpush3.msra.mxu0 %v532_v1  ;;  %8029 = vmatpush3.msra.mxu1 %v50_v2  ;;  %v1293_v63 = vrot.slane %v1280_v62, %v9132_v35  ;;  %v1281_v1 = vcombine.high %v1272_v38, %v1272_v38  ;;  %v1235_v38 = vcombine.high %v1233_v25, %v1233_v25 }
 0x13b   :  { %8060 = vmatprep.subr.mxu0 %v531_v3  ;;  %8030 = vmatprep.subr.mxu1 %v49_v5 }
 0x13c   :  { %8061 = vmatpush3.msra.mxu0 %v531_v3  ;;  %8031 = vmatpush3.msra.mxu1 %v49_v5  ;;  %v1297_v12 = vrot.slane %v1281_v1, %v9132_v35 }
 0x13d   :  { %8062 = vmatprep.subr.mxu0 %v530_v6  ;;  %8069 = vmatprep.subr.mxu1 %v9098_v7 }
 0x13e   :  { %8063 = vmatpush3.msra.mxu0 %v530_v6 }
 0x13f   :  { %8064 = vmatprep.subr.mxu0 %v529_v8 }
 0x140   :  { %8065 = vmatpush3.msra.mxu0 %v529_v8 }
 0x141   :  { %8088 = vmatprep.subr.mxu0 %v9106_v10 }
 0x1ad   :  { %v7920_v39 = vpop.f32.mrf.mxu1 }
 0x1ae   :  { %v1208_v41 = vmul.f32 0.35355338, %v7920_v39  ;;  %v1249_v39 = vrot.slane %v1235_v38, %v9122_v24 }
 0x1af   :  { %v673_v43 = vpop.f32.mrf.mxu1 }
 0x1b0   :  { %v1207_v44 = vmul.f32 0.35355338, %v673_v43  ;;  %v9140_v45 = vadd.f32 %v1285_v37, %v1208_v41  ;;  %v1251_v41 = vcombine.high %v1249_v39, %v1249_v39  ;;  %v1265_v43 = vrot.slane %v1249_v39, %v9122_v24 }
 0x1b1   :  { %v7939_v48 = vpop.f32.mrf.mxu0 }
 0x1b2   :  { %v1210_v50 = vmul.f32 0.35355338, %v7939_v48  ;;  %v1328_v51 = vsel %vm1324_vm3, %v9140_v45, -inf  ;;  %v9145_v53 = vadd.f32 %v1285_v37, %v1207_v44  ;;  %v1301_v48 = vrot.slane %v1265_v43, %v9132_v35 }
 0x1b3   :  { %1329 = vmax.xlane.f32.xlu0 %v1328_v51  ;;  %v778_v54 = vpop.f32.mrf.mxu0 }
 0x1b4   :  { %v1209_v56 = vmul.f32 0.35355338, %v778_v54  ;;  %v1325_v57 = vsel %vm1324_vm3, %v9145_v53, -inf  ;;  %v9149_v58 = vadd.f32 %v1289_v47, %v1210_v50  ;;  %v1279_v50 = vrot.slane %v1251_v41, %v9122_v24 }
 0x1b5   :  { %1326 = vmax.xlane.f32.xlu1 %v1325_v57 }
 0x1b6   :  { %v9151_v59 = vadd.f32 %v1289_v47, %v1209_v56  ;;  %v1334_v60 = vsel %vm1324_vm3, %v9149_v58, -inf  ;;  %v1305_v62 = vrot.slane %v1279_v50, %v9132_v35  ;;  %v539_v50 = vmul.f32 %v9090_v4, %v8902_v49 }
 0x1b8   :  { %v1331_v61 = vsel %vm1324_vm3, %v9151_v59, -inf }
 0x1b9   :  { %1335 = vmax.xlane.f32.xlu1 %v1334_v60  ;;  %1332 = vmax.xlane.f32.xlu0 %v1331_v61 }
 0x1cd   :  { %v7958_v2 = vpop.f32.mrf.mxu1 }
 0x1ce   :  { %v1212_v3 = vmul.f32 0.35355338, %v7958_v2 }
 0x1cf   :  { %v883_v5 = vpop.f32.mrf.mxu1 }
 0x1d0   :  { %v1211_v6 = vmul.f32 0.35355338, %v883_v5  ;;  %v9158_v8 = vadd.f32 %v1293_v63, %v1212_v3 }
 0x1d1   :  { %v7977_v13 = vpop.f32.mrf.mxu0 }
 0x1d2   :  { %v1214_v14 = vmul.f32 0.35355338, %v7977_v13  ;;  %v1340_v17 = vsel %vm1324_vm3, %v9158_v8, -inf  ;;  %v9163_v18 = vadd.f32 %v1293_v63, %v1211_v6 }
 0x1d3   :  { %1341 = vmax.xlane.f32.xlu1 %v1340_v17  ;;  %v988_v19 = vpop.f32.mrf.mxu0 }
 0x1d4   :  { %v1213_v22 = vmul.f32 0.35355338, %v988_v19  ;;  %v1337_v23 = vsel %vm1324_vm3, %v9163_v18, -inf  ;;  %v9167_v30 = vadd.f32 %v1297_v12, %v1214_v14 }
 0x1d5   :  { %1338 = vmax.xlane.f32.xlu0 %v1337_v23 }
 0x1d6   :  { %v1346_v32 = vsel %vm1324_vm3, %v9167_v30, -inf  ;;  %v9171_v33 = vadd.f32 %v1297_v12, %v1213_v22 }
 0x1d7   :  { %1347 = vmax.xlane.f32.xlu1 %v1346_v32 }
 0x1d8   :  { %v1343_v37 = vsel %vm1324_vm3, %v9171_v33, -inf }
 0x1d9   :  { %1344 = vmax.xlane.f32.xlu0 %v1343_v37 }
 0x1ed   :  { %v7996_v44 = vpop.f32.mrf.mxu1 }
 0x1ee   :  { %v1216_v47 = vmul.f32 0.35355338, %v7996_v44 }
 0x1ef   :  { %v1093_v51 = vpop.f32.mrf.mxu1 }
 0x1f0   :  { %v1215_v54 = vmul.f32 0.35355338, %v1093_v51  ;;  %v9179_v56 = vadd.f32 %v1301_v48, %v1216_v47 }
 0x1f1   :  { %v8015_v57 = vpop.f32.mrf.mxu0 }
 0x1f2   :  { %v1218_v60 = vmul.f32 0.35355338, %v8015_v57  ;;  %v1352_v25 = vsel %vm1324_vm3, %v9179_v56, -inf  ;;  %v9183_v61 = vadd.f32 %v1301_v48, %v1215_v54  ;;  %v541_v48 = vmul.f32 %v9090_v4, %v8879_v42 }
 0x1f3   :  { %1353 = vmax.xlane.f32.xlu1 %v1352_v25  ;;  %v1198_v63 = vpop.f32.mrf.mxu0  ;;  %v538_v57 = vmul.f32 %v9083_v0, %v8913_v52 }
 0x1f4   :  { %v1217_v1 = vmul.f32 0.35355338, %v1198_v63  ;;  %v1349_v2 = vsel %vm1324_vm3, %v9183_v61, -inf  ;;  %v9188_v3 = vadd.f32 %v1305_v62, %v1218_v60 }
 0x1f5   :  { %1350 = vmax.xlane.f32.xlu0 %v1349_v2 }
 0x1f6   :  { %v1358_v5 = vsel %vm1324_vm3, %v9188_v3, -inf  ;;  %v9192_v6 = vadd.f32 %v1305_v62, %v1217_v1  ;;  %v537_v62 = vmul.f32 %v9090_v4, %v8924_v55 }
 0x1f7   :  { %1359 = vmax.xlane.f32.xlu1 %v1358_v5 }
 0x1f8   :  { %v1355_v12 = vsel %vm1324_vm3, %v9192_v6, -inf }
 0x1f9   :  { %1356 = vmax.xlane.f32.xlu0 %v1355_v12 }
 0x23c   :  { %v1330_v13 = vpop.xlane.xlu0 %1329 }
 0x23d   :  { %v1362_v14 = vsub.f32 %v9140_v45, %v1330_v13 }
 0x23e   :  { %v1327_v17 = vpop.xlane.xlu1 %1326 }
 0x23f   :  { %v1361_v19 = vsub.f32 %v9145_v53, %v1327_v17  ;;  %v1375_v22 = vmul.f32 1.442695, %v1362_v14  ;;  %v543_v53 = vmul.f32 %v9090_v4, %v8855_v29 }
 0x241   :  { %v1373_v23 = vmul.f32 1.442695, %v1361_v19 }
 0x242   :  { %v1336_v32 = vpop.xlane.xlu1 %1335  ;;  %v1333_v37 = vpop.xlane.xlu0 %1332 }
 0x243   :  { %8475 = vpow2.f32 %v1373_v23  ;;  %v1364_v38 = vsub.f32 %v9149_v58, %v1336_v32  ;;  %v1363_v39 = vsub.f32 %v9151_v59, %v1333_v37  ;;  %v542_v59 = vmul.f32 %v9083_v0, %v8865_v34 }
 0x244   :  { %8477 = vpow2.f32 %v1375_v22 }
 0x245   :  { %v1379_v41 = vmul.f32 1.442695, %v1364_v38  ;;  %v1377_v43 = vmul.f32 1.442695, %v1363_v39 }
 0x247   :  { %8479 = vpow2.f32 %v1379_v41 }
 0x248   :  { %8481 = vpow2.f32 %v1377_v43 }
 0x250   :  { %v9200_v44 = vpop.eup %8475 }
 0x251   :  { %v9202_v45 = vpop.eup %8477  ;;  %8032 = vmatprep.mubr.msk.f32.mxu1 %vm1324_vm3, %v9200_v44 }
 0x252   :  { %8033 = vmatmul.mubr.msk.f32.vlgmr.msra.gmra.mxu1 %vm1324_vm3, %v9202_v45 }
 0x253   :  { %8070 = vmatpush3.msra.mxu1 %v9098_v7  ;;  %v540_v7 = vmul.f32 %v9083_v0, %v8891_v46 }
 0x254   :  { %v9211_v58 = vpop.eup %8479  ;;  %8071 = vmatprep.subr.mxu1 %v543_v53 }
 0x255   :  { %v9215_v47 = vpop.eup %8481  ;;  %8072 = vmatpush3.msra.mxu1 %v543_v53 }
 0x256   :  { %8035 = vmatprep.mubr.msk.f32.mxu1 %vm1324_vm3, %v9215_v47  ;;  %8073 = vmatprep.subr.mxu1 %v542_v59 }
 0x257   :  { %8036 = vmatmul.mubr.msk.f32.gmra.mxu1 %vm1324_vm3, %v9211_v58 }
 0x258   :  { %8074 = vmatpush3.msra.mxu1 %v542_v59 }
 0x259   :  { %8075 = vmatprep.subr.mxu1 %v541_v48 }
 0x25a   :  { %8076 = vmatpush3.msra.mxu1 %v541_v48 }
 0x25b   :  { %8077 = vmatprep.subr.mxu1 %v540_v7 }
 0x25c   :  { %8078 = vmatpush3.msra.mxu1 %v540_v7  ;;  %v1342_v51 = vpop.xlane.xlu1 %1341 }
 0x25d   :  { %8079 = vmatprep.subr.mxu1 %v539_v50  ;;  %v1366_v54 = vsub.f32 %v9158_v8, %v1342_v51  ;;  %v9236_v8 = vmul.f32 %v9111_v16, %v8850_v27 }
 0x25e   :  { %8080 = vmatpush3.msra.mxu1 %v539_v50  ;;  %v1339_v60 = vpop.xlane.xlu0 %1338 }
 0x25f   :  { %8081 = vmatprep.subr.mxu1 %v538_v57  ;;  %v1365_v25 = vsub.f32 %v9163_v18, %v1339_v60  ;;  %v1383_v63 = vmul.f32 1.442695, %v1366_v54 }
 0x260   :  { %8082 = vmatpush3.msra.mxu1 %v538_v57  ;;  %v1348_v1 = vpop.xlane.xlu1 %1347 }
 0x261   :  { %v1381_v2 = vmul.f32 1.442695, %v1365_v25  ;;  %8083 = vmatprep.subr.mxu1 %v537_v62  ;;  %v1368_v5 = vsub.f32 %v9167_v30, %v1348_v1 }
 0x262   :  { %8084 = vmatpush3.msra.mxu1 %v537_v62  ;;  %v1345_v0 = vpop.xlane.xlu0 %1344 }
 0x263   :  { %8483 = vpow2.f32 %v1381_v2  ;;  %8107 = vmatprep.subr.mxu1 %v9236_v8  ;;  %v1367_v18 = vsub.f32 %v9171_v33, %v1345_v0  ;;  %v1387_v4 = vmul.f32 1.442695, %v1368_v5  ;;  %v550_v5 = vmul.f32 %v9101_v9, %v8865_v34 }
 0x264   :  { %8485 = vpow2.f32 %v1383_v63  ;;  %v551_v63 = vmul.f32 %v9109_v11, %v8855_v29  ;;  %v547_v0 = vmul.f32 %v9109_v11, %v8902_v49 }
 0x265   :  { %v1385_v12 = vmul.f32 1.442695, %v1367_v18 }
 0x267   :  { %8487 = vpow2.f32 %v1385_v12  ;;  %v568_v12 = vmul.f32 %v9125_v28, %v8850_v27  ;;  %v8659_v27 = vld [vmem:[%s10633_s6 + $0x238] sm:$0xff] }
 0x268   :  { %8489 = vpow2.f32 %v1387_v4  ;;  %v545_v4 = vmul.f32 %v9109_v11, %v8924_v55 }
 0x270   :  { %v9240_v13 = vpop.eup %8483 }
 0x271   :  { %v9242_v14 = vpop.eup %8485  ;;  %8038 = vmatprep.mubr.msk.f32.mxu1 %vm1324_vm3, %v9240_v13 }
 0x272   :  { %8039 = vmatmul.mubr.msk.f32.gmra.mxu1 %vm1324_vm3, %v9242_v14 }
 0x274   :  { %v9248_v30 = vpop.eup %8487 }
 0x275   :  { %v9250_v17 = vpop.eup %8489  ;;  %8041 = vmatprep.mubr.msk.f32.mxu1 %vm1324_vm3, %v9248_v30 }
 0x276   :  { %8042 = vmatmul.mubr.msk.f32.gmra.mxu1 %vm1324_vm3, %v9250_v17 }
 0x27c   :  { %v1354_v33 = vpop.xlane.xlu1 %1353 }
 0x27d   :  { %v1370_v19 = vsub.f32 %v9179_v56, %v1354_v33  ;;  %v553_v33 = vmul.f32 %v9118_v21, %v8924_v55 }
 0x27e   :  { %v1351_v22 = vpop.xlane.xlu0 %1350 }
 0x27f   :  { %v1369_v23 = vsub.f32 %v9183_v61, %v1351_v22  ;;  %v1391_v32 = vmul.f32 1.442695, %v1370_v19  ;;  %v576_v22 = vmul.f32 %v8659_v27, %v9134_v36 }
 0x280   :  { %v1360_v37 = vpop.xlane.xlu1 %1359 }
 0x281   :  { %v1389_v38 = vmul.f32 1.442695, %v1369_v23  ;;  %v1372_v39 = vsub.f32 %v9188_v3, %v1360_v37 }
 0x282   :  { %v1357_v41 = vpop.xlane.xlu0 %1356 }
 0x283   :  { %8491 = vpow2.f32 %v1389_v38  ;;  %v1371_v43 = vsub.f32 %v9192_v6, %v1357_v41  ;;  %v1395_v53 = vmul.f32 1.442695, %v1372_v39  ;;  %v8660_v39 = vld [vmem:[%s10633_s6 + $0x230] sm:$0xff] }
 0x284   :  { %8493 = vpow2.f32 %v1391_v32  ;;  %v567_v41 = vmul.f32 %v8660_v39, %v9128_v31 }
 0x285   :  { %v1393_v59 = vmul.f32 1.442695, %v1371_v43 }
 0x287   :  { %8495 = vpow2.f32 %v1393_v59  ;;  %v8662_v59 = vld [vmem:[%s10633_s6 + $0x220] sm:$0xff] }
 0x288   :  { %8497 = vpow2.f32 %v1395_v53 }
 0x290   :  { %v9260_v48 = vpop.eup %8491 }
 0x291   :  { %v9262_v56 = vpop.eup %8493  ;;  %8044 = vmatprep.mubr.msk.f32.mxu1 %vm1324_vm3, %v9260_v48 }
 0x292   :  { %8045 = vmatmul.mubr.msk.f32.gmra.mxu1 %vm1324_vm3, %v9262_v56 }
 0x294   :  { %v9268_v61 = vpop.eup %8495 }
 0x295   :  { %v9270_v3 = vpop.eup %8497  ;;  %8047 = vmatprep.mubr.msk.f32.mxu1 %vm1324_vm3, %v9268_v61 }
 0x296   :  { %8048 = vmatmul.mubr.msk.f32.gmra.mxu1 %vm1324_vm3, %v9270_v3 }
 0x312   :  { %v8034_v6 = vpop.f32.mrf.mxu1 }
 0x313   :  { %8499 = vrcp.f32 %v8034_v6  ;;  %v575_v6 = vmul.f32 %v8660_v39, %v9138_v40 }
 0x314   :  { %v1499_v7 = vpop.f32.mrf.mxu1 }
 0x315   :  { %8501 = vrcp.f32 %v1499_v7 }
 0x317   :  { %v8037_v50 = vpop.f32.mrf.mxu1 }
 0x318   :  { %8503 = vrcp.f32 %v8037_v50 }
 0x319   :  { %v1509_v51 = vpop.f32.mrf.mxu1 }
 0x31a   :  { %8505 = vrcp.f32 %v1509_v51  ;;  %v563_v51 = vmul.f32 %v9128_v31, %v8902_v49 }
 0x320   :  { %v8500_v54 = vpop.eup %8499 }
 0x321   :  { %v1571_v25 = vmul.f32 %v8500_v54, %v9202_v45  ;;  %v549_v45 = vmul.f32 %v9109_v11, %v8879_v42  ;;  %v573_v54 = vmul.f32 %v8662_v59, %v9138_v40 }
 0x322   :  { %v8502_v57 = vpop.eup %8501 }
 0x323   :  { %v1570_v60 = vmul.f32 %v8502_v57, %v9200_v44  ;;  %v562_v57 = vmul.f32 %v9125_v28, %v8913_v52 }
 0x325   :  { %8066 = vmatprep.mubr.msk.f32.mxu0 %vm1324_vm3, %v1570_v60  ;;  %v8504_v62 = vpop.eup %8503 }
 0x326   :  { %8067 = vmatmul.mubr.msk.f32.vlgmr.msra.gmra.mxu0 %vm1324_vm3, %v1571_v25  ;;  %v1573_v44 = vmul.f32 %v8504_v62, %v9211_v58  ;;  %v558_v58 = vmul.f32 %v9111_v16, %v8865_v34  ;;  %v556_v34 = vmul.f32 %v9111_v16, %v8891_v46  ;;  %v561_v62 = vmul.f32 %v9128_v31, %v8924_v55  ;;  %v8665_v55 = vld [vmem:[%s10633_s6 + $0x208] sm:$0xff] }
 0x327   :  { %v8506_v1 = vpop.eup %8505  ;;  %8089 = vmatpush3.msra.mxu0 %v9106_v10  ;;  %v559_v10 = vmul.f32 %v9118_v21, %v8855_v29  ;;  %v557_v29 = vmul.f32 %v9118_v21, %v8879_v42  ;;  %v555_v42 = vmul.f32 %v9118_v21, %v8902_v49  ;;  %v8664_v49 = vld [vmem:[%s10633_s6 + $0x210] sm:$0xff] }
 0x328   :  { %8090 = vmatprep.subr.mxu0 %v551_v63  ;;  %v1572_v2 = vmul.f32 %v8506_v1, %v9215_v47  ;;  %v548_v47 = vmul.f32 %v9101_v9, %v8891_v46  ;;  %v554_v46 = vmul.f32 %v9111_v16, %v8913_v52 }
 0x329   :  { %8091 = vmatpush3.msra.mxu0 %v551_v63  ;;  %v571_v63 = vmul.f32 %v8664_v49, %v9138_v40 }
 0x32a   :  { %8085 = vmatprep.mubr.msk.f32.mxu1 %vm1324_vm3, %v1572_v2  ;;  %8092 = vmatprep.subr.mxu0 %v550_v5  ;;  %v8666_v2 = vld [vmem:[%s10633_s6 + $0x200] sm:$0xff] }
 0x32b   :  { %8086 = vmatmul.mubr.msk.f32.vlgmr.msra.gmra.mxu1 %vm1324_vm3, %v1573_v44  ;;  %8093 = vmatpush3.msra.mxu0 %v550_v5  ;;  %v569_v5 = vmul.f32 %v8666_v2, %v9138_v40  ;;  %v2070_v40 = vld [vmem:[%s10633_s6 + $0x70] sm:$0xff] }
 0x32c   :  { %8108 = vmatpush3.msra.mxu1 %v9236_v8  ;;  %8094 = vmatprep.subr.mxu0 %v549_v45  ;;  %v546_v8 = vmul.f32 %v9101_v9, %v8913_v52  ;;  %v2071_v52 = vld [vmem:[%s10633_s6 + $0x78] sm:$0xff] }
 0x32d   :  { %8109 = vmatprep.subr.mxu1 %v559_v10  ;;  %8095 = vmatpush3.msra.mxu0 %v549_v45 }
 0x32e   :  { %8110 = vmatpush3.msra.mxu1 %v559_v10  ;;  %8096 = vmatprep.subr.mxu0 %v548_v47 }
 0x32f   :  { %8111 = vmatprep.subr.mxu1 %v558_v58  ;;  %8097 = vmatpush3.msra.mxu0 %v548_v47 }
 0x330   :  { %8112 = vmatpush3.msra.mxu1 %v558_v58  ;;  %8098 = vmatprep.subr.mxu0 %v547_v0 }
 0x331   :  { %8113 = vmatprep.subr.mxu1 %v557_v29  ;;  %8099 = vmatpush3.msra.mxu0 %v547_v0 }
 0x332   :  { %8114 = vmatpush3.msra.mxu1 %v557_v29  ;;  %8100 = vmatprep.subr.mxu0 %v546_v8  ;;  %v8040_v18 = vpop.f32.mrf.mxu1 }
 0x333   :  { %8115 = vmatprep.subr.mxu1 %v556_v34  ;;  %8101 = vmatpush3.msra.mxu0 %v546_v8  ;;  %8507 = vrcp.f32 %v8040_v18  ;;  %v2069_v8 = vld [vmem:[%s10633_s6 + $0x68] sm:$0xff] }
 0x334   :  { %8116 = vmatpush3.msra.mxu1 %v556_v34  ;;  %8102 = vmatprep.subr.mxu0 %v545_v4  ;;  %v1519_v9 = vpop.f32.mrf.mxu1  ;;  %v2068_v34 = vld [vmem:[%s10633_s6 + $0x60] sm:$0xff] }
 0x335   :  { %8117 = vmatprep.subr.mxu1 %v555_v42  ;;  %8509 = vrcp.f32 %v1519_v9  ;;  %8103 = vmatpush3.msra.mxu0 %v545_v4  ;;  %v9396_v4 = vsub.s32 2, %v9116_v20  ;;  %v9401_v9 = vsub.s32 3, %v9116_v20 }
 0x336   :  { %8118 = vmatpush3.msra.mxu1 %v555_v42  ;;  %8126 = vmatprep.subr.mxu0 %v568_v12  ;;  %v8043_v11 = vpop.f32.mrf.mxu1 }
 0x337   :  { %8119 = vmatprep.subr.mxu1 %v554_v46  ;;  %8511 = vrcp.f32 %v8043_v11  ;;  %v2328_v42 = vrot.slane %v8839_v26, %v9396_v4 }
 0x338   :  { %8120 = vmatpush3.msra.mxu1 %v554_v46  ;;  %v1529_v19 = vpop.f32.mrf.mxu1  ;;  %v9406_v46 = vsub.s32 4, %v9116_v20 }
 0x339   :  { %8121 = vmatprep.subr.mxu1 %v553_v33  ;;  %8513 = vrcp.f32 %v1529_v19 }
 0x33a   :  { %8122 = vmatpush3.msra.mxu1 %v553_v33  ;;  %v2350_v11 = vrot.slane %v8839_v26, %v9406_v46 }
 0x33b   :  { %8145 = vmatprep.subr.mxu1 %v576_v22 }
 0x340   :  { %v8508_v16 = vpop.eup %8507 }
 0x341   :  { %v1575_v37 = vmul.f32 %v8508_v16, %v9242_v14 }
 0x342   :  { %v8510_v23 = vpop.eup %8509 }
 0x343   :  { %v1574_v32 = vmul.f32 %v8510_v23, %v9240_v13  ;;  %v8661_v13 = vld [vmem:[%s10633_s6 + $0x228] sm:$0xff] }
 0x344   :  { %v8512_v21 = vpop.eup %8511  ;;  %v566_v14 = vmul.f32 %v8661_v13, %v9125_v28  ;;  %v574_v50 = vmul.f32 %v8661_v13, %v9134_v36 }
 0x345   :  { %8104 = vmatprep.mubr.msk.f32.mxu0 %vm1324_vm3, %v1574_v32  ;;  %v1577_v53 = vmul.f32 %v8512_v21, %v9250_v17  ;;  %v8663_v17 = vld [vmem:[%s10633_s6 + $0x218] sm:$0xff] }
 0x346   :  { %v8514_v38 = vpop.eup %8513  ;;  %8105 = vmatmul.mubr.msk.f32.vlgmr.msra.gmra.mxu0 %vm1324_vm3, %v1575_v37  ;;  %v564_v7 = vmul.f32 %v8663_v17, %v9125_v28  ;;  %v572_v60 = vmul.f32 %v8663_v17, %v9134_v36 }
 0x347   :  { %8127 = vmatpush3.msra.mxu0 %v568_v12  ;;  %v1576_v43 = vmul.f32 %v8514_v38, %v9248_v30  ;;  %v565_v30 = vmul.f32 %v8662_v59, %v9128_v31  ;;  %v570_v31 = vmul.f32 %v8665_v55, %v9134_v36  ;;  %v2339_v12 = vrot.slane %v8839_v26, %v9401_v9 }
 0x348   :  { %8128 = vmatprep.subr.mxu0 %v567_v41 }
 0x349   :  { %8129 = vmatpush3.msra.mxu0 %v567_v41  ;;  %8123 = vmatprep.mubr.msk.f32.mxu1 %vm1324_vm3, %v1576_v43  ;;  %v9457_v43 = vld [vmem:[%s10633_s6 + $0x80] ss:$0 sm:$0xff] }
 0x34a   :  { %8130 = vmatprep.subr.mxu0 %v566_v14  ;;  %8124 = vmatmul.mubr.msk.f32.vlgmr.msra.gmra.mxu1 %vm1324_vm3, %v1577_v53 }
 0x34b   :  { %8131 = vmatpush3.msra.mxu0 %v566_v14  ;;  %8146 = vmatpush3.msra.mxu1 %v576_v22 }
 0x34c   :  { %8132 = vmatprep.subr.mxu0 %v565_v30  ;;  %8147 = vmatprep.subr.mxu1 %v575_v6 }
 0x34d   :  { %8133 = vmatpush3.msra.mxu0 %v565_v30  ;;  %8148 = vmatpush3.msra.mxu1 %v575_v6 }
 0x34e   :  { %8134 = vmatprep.subr.mxu0 %v564_v7  ;;  %8149 = vmatprep.subr.mxu1 %v574_v50 }
 0x34f   :  { %8135 = vmatpush3.msra.mxu0 %v564_v7  ;;  %8150 = vmatpush3.msra.mxu1 %v574_v50  ;;  %v9466_v50 = vld [vmem:[%s10633_s6 + $0x88] ss:$0 sm:$0xff] }
 0x350   :  { %8136 = vmatprep.subr.mxu0 %v563_v51  ;;  %8151 = vmatprep.subr.mxu1 %v573_v54 }
 0x351   :  { %8137 = vmatpush3.msra.mxu0 %v563_v51  ;;  %8152 = vmatpush3.msra.mxu1 %v573_v54 }
 0x352   :  { %8138 = vmatprep.subr.mxu0 %v562_v57  ;;  %8153 = vmatprep.subr.mxu1 %v572_v60  ;;  %v8046_v25 = vpop.f32.mrf.mxu1 }
 0x353   :  { %8139 = vmatpush3.msra.mxu0 %v562_v57  ;;  %8154 = vmatpush3.msra.mxu1 %v572_v60  ;;  %8515 = vrcp.f32 %v8046_v25 }
 0x354   :  { %8140 = vmatprep.subr.mxu0 %v561_v62  ;;  %8155 = vmatprep.subr.mxu1 %v571_v63  ;;  %v1539_v28 = vpop.f32.mrf.mxu1 }
 0x355   :  { %8517 = vrcp.f32 %v1539_v28  ;;  %8141 = vmatpush3.msra.mxu0 %v561_v62  ;;  %8156 = vmatpush3.msra.mxu1 %v571_v63 }
 0x356   :  { %8157 = vmatprep.subr.mxu1 %v570_v31  ;;  %v8049_v1 = vpop.f32.mrf.mxu1  ;;  %8164 = vmatprep.subr.mxu0 %v2071_v52 }
 0x357   :  { %8158 = vmatpush3.msra.mxu1 %v570_v31  ;;  %8519 = vrcp.f32 %v8049_v1  ;;  %v8678_v1 = vmov 0  }
 0x358   :  { %8159 = vmatprep.subr.mxu1 %v569_v5  ;;  %v1549_v44 = vpop.f32.mrf.mxu1  ;;  %8473 = vset.pattern.permute.xlu0 %v8678_v1 }
 0x359   :  { %8521 = vrcp.f32 %v1549_v44  ;;  %8160 = vmatpush3.msra.mxu1 %v569_v5  ;;  %8474 = vset.pattern.permute.xlu1 %v8678_v1 }
 0x360   :  { %v8516_v45 = vpop.eup %8515 }
 0x361   :  { %v1579_v47 = vmul.f32 %v8516_v45, %v9262_v56 }
 0x362   :  { %v8518_v36 = vpop.eup %8517 }
 0x363   :  { %v1578_v10 = vmul.f32 %v8518_v36, %v9260_v48  ;;  %v8677_v48 = vmov 0.0  }
 0x364   :  { %v8520_v58 = vpop.eup %8519  ;;  %8190 = vmatprep.subr.mxu1 %v8677_v48 }
 0x365   :  { %8142 = vmatprep.mubr.msk.f32.mxu0 %vm1324_vm3, %v1578_v10  ;;  %v1581_v56 = vmul.f32 %v8520_v58, %v9270_v3  ;;  %v9391_v3 = vsub.s32 1, %v9116_v20 }
 0x366   :  { %v8522_v0 = vpop.eup %8521  ;;  %8143 = vmatmul.mubr.msk.f32.vlgmr.msra.gmra.mxu0 %vm1324_vm3, %v1579_v47 }
 0x367   :  { %v1580_v29 = vmul.f32 %v8522_v0, %v9268_v61  ;;  %8165 = vmatpush3.msra.mxu0 %v2071_v52  ;;  %v2306_v61 = vrot.slane %v8839_v26, %v9132_v35  ;;  %v2317_v18 = vrot.slane %v8839_v26, %v9391_v3 }
 0x368   :  { %8166 = vmatprep.subr.mxu0 %v2070_v40 }
 0x369   :  { %8161 = vmatprep.mubr.msk.f32.mxu1 %vm1324_vm3, %v1580_v29  ;;  %8167 = vmatpush3.msra.mxu0 %v2070_v40 }
 0x36a   :  { %8162 = vmatmul.mubr.msk.f32.vlgmr.msra.gmra.mxu1 %vm1324_vm3, %v1581_v56  ;;  %8168 = vmatprep.subr.mxu0 %v2069_v8 }
 0x36b   :  { %8169 = vmatpush3.msra.mxu0 %v2069_v8  ;;  %2312 = vbcast.lane.b32.xlu1 %v2306_v61, 264 }
 0x36c   :  { %8170 = vmatprep.subr.mxu0 %v2068_v34  ;;  %2308 = vbcast.lane.b32.xlu0 %v2306_v61, 256 }
 0x36d   :  { %8171 = vmatpush3.msra.mxu0 %v2068_v34  ;;  %8194 = vmatprep.mubr.msk.f32.mxu1 %vm8679_vm14, %v8677_v48 }
 0x36e   :  { %8232 = vmatprep.subr.mxu0 %v8677_v48 }
 0x36f   :  { %2319 = vbcast.lane.b32.xlu1 %v2317_v18, 256 }
 0x370   :  { %2323 = vbcast.lane.b32.xlu0 %v2317_v18, 264 }
 0x373   :  { %2330 = vbcast.lane.b32.xlu1 %v2328_v42, 256 }
 0x374   :  { %2334 = vbcast.lane.b32.xlu0 %v2328_v42, 264 }
 0x377   :  { %2341 = vbcast.lane.b32.xlu1 %v2339_v12, 256 }
 0x378   :  { %2345 = vbcast.lane.b32.xlu0 %v2339_v12, 264 }
 0x37b   :  { %2352 = vbcast.lane.b32.xlu1 %v2350_v11, 256 }
 0x37c   :  { %2356 = vbcast.lane.b32.xlu0 %v2350_v11, 264 }
 0x3dd   :  { %v2313_v1 = vpop.permute.xlu1 %2312 }
 0x3e6   :  { %v8068_v33 = vpop.f32.mrf.mxu0 }
 0x3e7   :  { %8191 = vmatpush3.msra.mxu1 %v8068_v33 }
 0x3e8   :  { %v1654_v19 = vpop.f32.mrf.mxu0  ;;  %8192 = vmatprep.subr.mxu1 %v8677_v48 }
 0x3e9   :  { %8172 = vmatprep.mubr.msk.f32.mxu0 %vm61_vm0, %v1654_v19  ;;  %8193 = vmatpush3.msra.mxu1 %v1654_v19 }
 0x3ea   :  { %8173 = vmatmul.mubr.msk.f32.vlgmr.msra.gmra.mxu0 %vm61_vm0, %v8068_v33  ;;  %8197 = vmatprep.subr.mxu1 %v8677_v48 }
 0x3eb   :  { %v9414_v27 = vpop.f32.mrf.mxu1 }
 0x3ed   :  { %v9416_v22 = vpop.f32.mrf.mxu1 }
 0x3ee   :  { %8175 = vmatprep.mubr.msk.f32.mxu0 %vm61_vm0, %v9416_v22 }
 0x3ef   :  { %8176 = vmatmul.mubr.msk.f32.gmra.mxu0 %vm61_vm0, %v9414_v27 }
 0x406   :  { %v9422_v16 = vpop.f32.mrf.mxu0 }
 0x408   :  { %v9424_v23 = vpop.f32.mrf.mxu0 }
 0x409   :  { %8178 = vmatprep.mubr.msk.f32.mxu0 %vm61_vm0, %v9424_v23 }
 0x40a   :  { %v9428_v32 = vpop.f32.mrf.mxu1  ;;  %8179 = vmatmul.mubr.msk.f32.gmra.mxu0 %vm61_vm0, %v9422_v16 }
 0x40c   :  { %v9432_v37 = vpop.f32.mrf.mxu1 }
 0x40d   :  { %8181 = vmatprep.mubr.msk.f32.mxu0 %vm61_vm0, %v9432_v37 }
 0x40e   :  { %8182 = vmatmul.mubr.msk.f32.gmra.mxu0 %vm61_vm0, %v9428_v32 }
 0x426   :  { %v9438_v21 = vpop.f32.mrf.mxu0 }
 0x428   :  { %v9440_v38 = vpop.f32.mrf.mxu0 }
 0x429   :  { %8184 = vmatprep.mubr.msk.f32.mxu0 %vm61_vm0, %v9440_v38 }
 0x42a   :  { %v9444_v39 = vpop.f32.mrf.mxu1  ;;  %8185 = vmatmul.mubr.msk.f32.gmra.mxu0 %vm61_vm0, %v9438_v21 }
 0x42c   :  { %v9448_v41 = vpop.f32.mrf.mxu1 }
 0x42d   :  { %8187 = vmatprep.mubr.msk.f32.mxu0 %vm61_vm0, %v9448_v41 }
 0x42e   :  { %8188 = vmatmul.mubr.msk.f32.gmra.mxu0 %vm61_vm0, %v9444_v39 }
 0x42f   :  { %8240 = vmatprep.mubr.msk.f32.mxu0 %vm8679_vm14, %v8677_v48 }
 0x4aa   :  { %v8174_v13 = vpop.f32.mrf.mxu0 }
 0x4ab   :  { %v2185_v14 = vadd.f32 %v8174_v13, %v9457_v43 }
 0x4ac   :  { %v2179_v53 = vpop.f32.mrf.mxu0 }
 0x4ad   :  { %8523 = vtanh.f32 %v2185_v14  ;;  %v2180_v59 = vadd.f32 %v9457_v43, %v2179_v53 }
 0x4af   :  { %8525 = vtanh.f32 %v2180_v59  ;;  %v8177_v30 = vpop.f32.mrf.mxu0 }
 0x4b0   :  { %v2195_v6 = vadd.f32 %v8177_v30, %v9457_v43 }
 0x4b1   :  { %v2189_v17 = vpop.f32.mrf.mxu0 }
 0x4b2   :  { %8527 = vtanh.f32 %v2195_v6  ;;  %v2190_v7 = vadd.f32 %v9457_v43, %v2189_v17 }
 0x4b4   :  { %8529 = vtanh.f32 %v2190_v7 }
 0x4ba   :  { %v8524_v51 = vpop.eup %8523 }
 0x4bb   :  { %v2256_v54 = vmul.f32 %v8524_v51, %v9466_v50 }
 0x4bc   :  { %v8526_v57 = vpop.eup %8525 }
 0x4bd   :  { %v2270_v60 = vsel %vm1229_vm1, %v2256_v54, 0.0  ;;  %v2255_v25 = vmul.f32 %v8526_v57, %v9466_v50 }
 0x4be   :  { %2271 = vadd.xlane.f32.xlu1 %v2270_v60 }
 0x4bf   :  { %v8528_v62 = vpop.eup %8527  ;;  %v2267_v49 = vsel %vm1229_vm1, %v2255_v25, 0.0 }
 0x4c0   :  { %2268 = vadd.xlane.f32.xlu0 %v2267_v49  ;;  %v2258_v63 = vmul.f32 %v8528_v62, %v9466_v50 }
 0x4c1   :  { %v8530_v52 = vpop.eup %8529 }
 0x4c2   :  { %v2276_v28 = vsel %vm1229_vm1, %v2258_v63, 0.0  ;;  %v2257_v55 = vmul.f32 %v8530_v52, %v9466_v50 }
 0x4c3   :  { %2277 = vadd.xlane.f32.xlu1 %v2276_v28 }
 0x4c4   :  { %v2273_v31 = vsel %vm1229_vm1, %v2257_v55, 0.0  ;;  %v9501_v55 = vsub.s32 5, %v9116_v20 }
 0x4c5   :  { %2274 = vadd.xlane.f32.xlu0 %v2273_v31 }
 0x4c6   :  { %v2361_v31 = vrot.slane %v8839_v26, %v9501_v55 }
 0x4ca   :  { %v8180_v2 = vpop.f32.mrf.mxu0 }
 0x4cb   :  { %v2205_v5 = vadd.f32 %v8180_v2, %v9457_v43  ;;  %v2309_v2 = vpop.permute.xlu0 %2308 }
 0x4cc   :  { %v2199_v44 = vpop.f32.mrf.mxu0 }
 0x4cd   :  { %8531 = vtanh.f32 %v2205_v5  ;;  %v2200_v45 = vadd.f32 %v9457_v43, %v2199_v44  ;;  %v2320_v5 = vpop.permute.xlu1 %2319 }
 0x4ce   :  { %v8183_v36 = vpop.f32.mrf.mxu0 }
 0x4cf   :  { %8533 = vtanh.f32 %v2200_v45  ;;  %v2215_v10 = vadd.f32 %v8183_v36, %v9457_v43  ;;  %v2324_v44 = vpop.permute.xlu0 %2323 }
 0x4d0   :  { %v2209_v47 = vpop.f32.mrf.mxu0 }
 0x4d1   :  { %8535 = vtanh.f32 %v2215_v10  ;;  %v2210_v58 = vadd.f32 %v9457_v43, %v2209_v47  ;;  %v2331_v45 = vpop.permute.xlu1 %2330 }
 0x4d3   :  { %8537 = vtanh.f32 %v2210_v58  ;;  %v2335_v36 = vpop.permute.xlu0 %2334 }
 0x4d5   :  { %v2342_v10 = vpop.permute.xlu1 %2341 }
 0x4d9   :  { %v2353_v47 = vpop.permute.xlu1 %2352 }
 0x4da   :  { %v8532_v40 = vpop.eup %8531 }
 0x4db   :  { %v2260_v0 = vmul.f32 %v8532_v40, %v9466_v50 }
 0x4dc   :  { %v8534_v29 = vpop.eup %8533 }
 0x4dd   :  { %v2282_v8 = vsel %vm1229_vm1, %v2260_v0, 0.0  ;;  %v2259_v56 = vmul.f32 %v8534_v29, %v9466_v50 }
 0x4de   :  { %v8536_v34 = vpop.eup %8535  ;;  %2283 = vadd.xlane.f32.xlu1 %v2282_v8 }
 0x4df   :  { %v2279_v61 = vsel %vm1229_vm1, %v2259_v56, 0.0  ;;  %v2262_v18 = vmul.f32 %v8536_v34, %v9466_v50 }
 0x4e0   :  { %v8538_v42 = vpop.eup %8537  ;;  %2280 = vadd.xlane.f32.xlu0 %v2279_v61 }
 0x4e1   :  { %v2288_v12 = vsel %vm1229_vm1, %v2262_v18, 0.0  ;;  %v2261_v11 = vmul.f32 %v8538_v42, %v9466_v50 }
 0x4e2   :  { %2289 = vadd.xlane.f32.xlu1 %v2288_v12 }
 0x4e3   :  { %v2285_v33 = vsel %vm1229_vm1, %v2261_v11, 0.0 }
 0x4e4   :  { %2286 = vadd.xlane.f32.xlu0 %v2285_v33 }
 0x4ea   :  { %v8186_v19 = vpop.f32.mrf.mxu0 }
 0x4eb   :  { %v2225_v13 = vadd.f32 %v8186_v19, %v9457_v43 }
 0x4ec   :  { %v2219_v14 = vpop.f32.mrf.mxu0 }
 0x4ed   :  { %8539 = vtanh.f32 %v2225_v13  ;;  %v2220_v53 = vadd.f32 %v9457_v43, %v2219_v14 }
 0x4ee   :  { %v8189_v59 = vpop.f32.mrf.mxu0 }
 0x4ef   :  { %8541 = vtanh.f32 %v2220_v53  ;;  %v2235_v30 = vadd.f32 %v8189_v59, %v9457_v43 }
 0x4f0   :  { %v2229_v6 = vpop.f32.mrf.mxu0 }
 0x4f1   :  { %8543 = vtanh.f32 %v2235_v30  ;;  %v2230_v17 = vadd.f32 %v9457_v43, %v2229_v6 }
 0x4f3   :  { %8545 = vtanh.f32 %v2230_v17 }
 0x4fa   :  { %v8540_v7 = vpop.eup %8539 }
 0x4fb   :  { %v2264_v51 = vmul.f32 %v8540_v7, %v9466_v50 }
 0x4fc   :  { %v8542_v54 = vpop.eup %8541 }
 0x4fd   :  { %v2294_v57 = vsel %vm1229_vm1, %v2264_v51, 0.0  ;;  %v2263_v60 = vmul.f32 %v8542_v54, %v9466_v50 }
 0x4fe   :  { %v8544_v25 = vpop.eup %8543  ;;  %2295 = vadd.xlane.f32.xlu1 %v2294_v57 }
 0x4ff   :  { %v2291_v62 = vsel %vm1229_vm1, %v2263_v60, 0.0  ;;  %v2266_v49 = vmul.f32 %v8544_v25, %v9466_v50  ;;  %v9544_v25 = vld [vmem:[%s10636_s2] sm:$0x3f]  ;;  %s8681_s2 = smov 96  }
 0x500   :  { %v8546_v63 = vpop.eup %8545  ;;  %2292 = vadd.xlane.f32.xlu0 %v2291_v62  ;;  %v3271_v62 = vmul.f32 %v9544_v25, %v9544_v25 }
 0x501   :  { %v2300_v52 = vsel %vm1229_vm1, %v2266_v49, 0.0  ;;  %v2265_v43 = vmul.f32 %v8546_v63, %v9466_v50  ;;  %v2346_v50 = vpop.permute.xlu0 %2345 }
 0x502   :  { %2301 = vadd.xlane.f32.xlu1 %v2300_v52  ;;  %v3273_v49 = vsel %vm3272_vm4, %v3271_v62, 0.0  ;;  %vm3707_vm4 = vcmask 1043456  }
 0x503   :  { %v2297_v28 = vsel %vm1229_vm1, %v2265_v43, 0.0 }
 0x504   :  { %2298 = vadd.xlane.f32.xlu0 %v2297_v28 }
 0x505   :  { %v2357_v58 = vpop.permute.xlu0 %2356 }
 0x513   :  { %2363 = vbcast.lane.b32.xlu1 %v2361_v31, 256 }
 0x51a   :  { %2367 = vbcast.lane.b32.xlu0 %v2361_v31, 264 }
 0x547   :  { %v2272_v40 = vpop.xlane.xlu1 %2271 }
 0x548   :  { %v9505_v0 = vadd.f32 %v2313_v1, %v2272_v40  ;;  %v2442_v1 = vand.u32 127, %v1239_v15 }
 0x549   :  { %v2269_v29 = vpop.xlane.xlu0 %2268 }
 0x54a   :  { %v9507_v8 = vadd.f32 %v2309_v2, %v2269_v29  ;;  %2409 = vperm.xlu0 %8473, %v9505_v0  }
 0x54c   :  { %v2278_v26 = vpop.xlane.xlu1 %2277  ;;  %2406 = vperm.xlu1 %8474, %v9507_v8  }
 0x54d   :  { %v9511_v56 = vadd.f32 %v2324_v44, %v2278_v26 }
 0x54e   :  { %v2275_v34 = vpop.xlane.xlu0 %2274 }
 0x54f   :  { %v9514_v61 = vadd.f32 %v2320_v5, %v2275_v34  ;;  %v2447_v5 = vadd.s32 4294967288, %v2442_v1 }
 0x550   :  { %2415 = vperm.xlu1 %8474, %v9511_v56  }
 0x554   :  { %2412 = vperm.xlu1 %8474, %v9514_v61  }
 0x567   :  { %v2284_v18 = vpop.xlane.xlu1 %2283 }
 0x568   :  { %v9517_v42 = vadd.f32 %v2335_v36, %v2284_v18 }
 0x569   :  { %v2281_v12 = vpop.xlane.xlu0 %2280 }
 0x56a   :  { %v9519_v11 = vadd.f32 %v2331_v45, %v2281_v12  ;;  %2421 = vperm.xlu1 %8474, %v9517_v42   ;;  %v9550_v45 = vsub.s32 %v2442_v1, %v9116_v20 }
 0x56b   :  { %v2290_v33 = vpop.xlane.xlu1 %2289 }
 0x56c   :  { %v9522_v19 = vadd.f32 %v2346_v50, %v2290_v33  ;;  %2418 = vperm.xlu0 %8473, %v9519_v11  }
 0x56d   :  { %v2287_v13 = vpop.xlane.xlu0 %2286 }
 0x56e   :  { %v9525_v14 = vadd.f32 %v2342_v10, %v2287_v13  ;;  %2427 = vperm.xlu1 %8474, %v9522_v19   ;;  %v9553_v10 = vsub.s32 %v2447_v5, %v9116_v20 }
 0x570   :  { %2424 = vperm.xlu0 %8473, %v9525_v14  }
 0x587   :  { %v2296_v53 = vpop.xlane.xlu1 %2295 }
 0x588   :  { %v9529_v59 = vadd.f32 %v2357_v58, %v2296_v53 }
 0x589   :  { %v2293_v30 = vpop.xlane.xlu0 %2292 }
 0x58a   :  { %v9531_v6 = vadd.f32 %v2353_v47, %v2293_v30  ;;  %2433 = vperm.xlu1 %8474, %v9529_v59  }
 0x58b   :  { %v2302_v17 = vpop.xlane.xlu1 %2301 }
 0x58c   :  { %2430 = vperm.xlu0 %8473, %v9531_v6  }
 0x58d   :  { %v2299_v7 = vpop.xlane.xlu0 %2298 }
 0x58f   :  { %v2364_v51 = vpop.permute.xlu1 %2363 }
 0x590   :  { %v9535_v54 = vadd.f32 %v2364_v51, %v2299_v7 }
 0x591   :  { %v2368_v57 = vpop.permute.xlu0 %2367 }
 0x592   :  { %v9537_v60 = vadd.f32 %v2368_v57, %v2302_v17  ;;  %2436 = vperm.xlu0 %8473, %v9535_v54  }
 0x594   :  { %2439 = vperm.xlu1 %8474, %v9537_v60  }
 0x5b8   :  { %3274 = vadd.xlane.f32.xlu1 %v3273_v49 }
 0x5c5   :  { %v2410_v43 = vpop.permute.xlu0 %2409 }
 0x5c6   :  { %v2451_v12 = vrot.slane %v2410_v43, %v9553_v10 }
 0x5c7   :  { %v2407_v63 = vpop.permute.xlu1 %2406 }
 0x5c8   :  { %v2446_v40 = vrot.slane %v2407_v63, %v9550_v45 }
 0x5ca   :  { %v2453_v7 = vsel %vm2452_vm5, %v2451_v12, %v2446_v40 }
 0x5cb   :  { %v2416_v52 = vpop.permute.xlu1 %2415 }
 0x5cc   :  { %v2461_v29 = vrot.slane %v2416_v52, %v9553_v10 }
 0x5cf   :  { %v2413_v28 = vpop.permute.xlu1 %2412 }
 0x5d0   :  { %v2457_v50 = vrot.slane %v2413_v28, %v9550_v45 }
 0x5d2   :  { %v2462_v33 = vsel %vm2452_vm5, %v2461_v29, %v2457_v50 }
 0x5d3   :  { %v2500_v57 = vsel %vm2499_vm6, %v2462_v33, %v2453_v7 }
 0x5e5   :  { %v2422_v2 = vpop.permute.xlu1 %2421 }
 0x5e6   :  { %v2470_v34 = vrot.slane %v2422_v2, %v9553_v10 }
 0x5e7   :  { %v2419_v31 = vpop.permute.xlu0 %2418 }
 0x5e8   :  { %v2466_v58 = vrot.slane %v2419_v31, %v9550_v45 }
 0x5e9   :  { %v2428_v36 = vpop.permute.xlu1 %2427 }
 0x5ea   :  { %v2479_v13 = vrot.slane %v2428_v36, %v9553_v10  ;;  %v2471_v53 = vsel %vm2452_vm5, %v2470_v34, %v2466_v58 }
 0x5eb   :  { %v2425_v44 = vpop.permute.xlu0 %2424  ;;  %v2502_v43 = vsel %vm2501_vm7, %v2471_v53, %v2500_v57 }
 0x5ec   :  { %v2475_v15 = vrot.slane %v2425_v44, %v9550_v45  ;;  %v3289_v44 = vld [vmem:[%s10633_s6 + $0xa8] sm:$0xff] }
 0x5ed   :  { %8233 = vmatpush3.msra.mxu0 %v3289_v44 }
 0x5ee   :  { %v2480_v51 = vsel %vm2452_vm5, %v2479_v13, %v2475_v15  ;;  %8234 = vmatprep.subr.mxu0 %v8677_v48 }
 0x5ef   :  { %v2504_v28 = vsel %vm2503_vm8, %v2480_v51, %v2502_v43 }
 0x605   :  { %v2434_v26 = vpop.permute.xlu1 %2433 }
 0x606   :  { %v2488_v30 = vrot.slane %v2434_v26, %v9553_v10 }
 0x607   :  { %v2431_v47 = vpop.permute.xlu0 %2430 }
 0x608   :  { %v2484_v18 = vrot.slane %v2431_v47, %v9550_v45 }
 0x60a   :  { %v2489_v49 = vsel %vm2452_vm5, %v2488_v30, %v2484_v18 }
 0x60b   :  { %v2506_v1 = vsel %vm2505_vm9, %v2489_v49, %v2504_v28 }
 0x60d   :  { %v2437_v17 = vpop.permute.xlu0 %2436 }
 0x60e   :  { %v2493_v63 = vrot.slane %v2437_v17, %v9550_v45 }
 0x60f   :  { %v2440_v62 = vpop.permute.xlu1 %2439 }
 0x610   :  { %v2497_v52 = vrot.slane %v2440_v62, %v9553_v10 }
 0x612   :  { %v2498_v31 = vsel %vm2452_vm5, %v2497_v52, %v2493_v63 }
 0x613   :  { %v2508_v2 = vsel %vm2507_vm10, %v2498_v31, %v2506_v1 }
 0x614   :  { %v2511_v5 = vsel %vm2510_vm11, %v2508_v2, -inf }
 0x615   :  { %2512 = vmax.xlane.f32.xlu0 %v2511_v5 }
 0x641   :  { %v3275_v36 = vpop.xlane.xlu1 %3274 }
 0x642   :  { %8547 = vrsqrt.f32 %v3275_v36  ;;  %vm3278_vm12 = vcmp.eq.f32.partialorder %v3275_v36, inf  ;;  %v3281_v58 = vand.u32 2147483648, %v3275_v36  ;;  %vm3280_vm13 = vcmp.eq.f32.partialorder %v3275_v36, 0.0 }
 0x64f   :  { %v8548_v50 = vpop.eup %8547 }
 0x650   :  { %v3277_v47 = vmul.f32 %v8548_v50, %v3275_v36 }
 0x652   :  { %v3279_v29 = vsel %vm3278_vm12, %v3275_v36, %v3277_v47  ;;  %vm5046_vm12 = vcmask 64512  }
 0x653   :  { %v3282_v12 = vsel %vm3280_vm13, %v3281_v58, %v3279_v29  ;;  %v3286_v58 = vld [vmem:[%s10633_s6 + $0x90] sm:$0xff]  ;;  %v3455_v29 = vld [vmem:[%s10633_s6 + $0xf8] sm:$0xff]  ;;  %vm5053_vm13 = vcmask 58368  }
 0x654   :  { %v3283_v7 = vmax.f32 %v3282_v12, 1e-12  ;;  %v3452_v12 = vld [vmem:[%s10633_s6 + $0xe0] sm:$0xff] }
 0x69e   :  { %v2513_v40 = vpop.xlane.xlu0 %2512 }
 0x69f   :  { %v2518_v15 = vrot.slane %v2513_v40, %v9132_v35  ;;  %v2522_v26 = vrot.slane %v2513_v40, %v9391_v3  ;;  %v2526_v33 = vrot.slane %v2513_v40, %v9396_v4  ;;  %v2530_v51 = vrot.slane %v2513_v40, %v9401_v9 }
 0x6a0   :  { %v2534_v49 = vrot.slane %v2513_v40, %v9406_v46  ;;  %v2538_v43 = vrot.slane %v2513_v40, %v9501_v55 }
 0x6a1   :  { %v2545_v34 = vsub.f32 %v9507_v8, %v2518_v15  ;;  %v2546_v18 = vsub.f32 %v9505_v0, %v2518_v15  ;;  %v2547_v13 = vsub.f32 %v9514_v61, %v2522_v26  ;;  %v2548_v53 = vsub.f32 %v9511_v56, %v2522_v26 }
 0x6a2   :  { %v2549_v57 = vsub.f32 %v9519_v11, %v2526_v33  ;;  %v2550_v8 = vsub.f32 %v9517_v42, %v2526_v33  ;;  %v2551_v61 = vsub.f32 %v9525_v14, %v2530_v51  ;;  %v2552_v63 = vsub.f32 %v9522_v19, %v2530_v51 }
 0x6a3   :  { %v2557_v30 = vmul.f32 1.442695, %v2545_v34  ;;  %v2559_v17 = vmul.f32 1.442695, %v2546_v18  ;;  %v2561_v62 = vmul.f32 1.442695, %v2547_v13  ;;  %v2553_v11 = vsub.f32 %v9531_v6, %v2534_v49 }
 0x6a4   :  { %v2563_v0 = vmul.f32 1.442695, %v2548_v53  ;;  %v2565_v56 = vmul.f32 1.442695, %v2549_v57  ;;  %v2567_v52 = vmul.f32 1.442695, %v2550_v8  ;;  %v2554_v42 = vsub.f32 %v9529_v59, %v2534_v49 }
 0x6a5   :  { %8549 = vpow2.f32 %v2557_v30  ;;  %v2569_v28 = vmul.f32 1.442695, %v2551_v61  ;;  %v2571_v31 = vmul.f32 1.442695, %v2552_v63  ;;  %v2555_v1 = vsub.f32 %v9535_v54, %v2538_v43  ;;  %v3288_v6 = vld [vmem:[%s10633_s6 + $0xa0] sm:$0xff]  ;;  %v3287_v59 = vld [vmem:[%s10633_s6 + $0x98] sm:$0xff] }
 0x6a6   :  { %8551 = vpow2.f32 %v2559_v17  ;;  %v2573_v14 = vmul.f32 1.442695, %v2553_v11  ;;  %v2556_v19 = vsub.f32 %v9537_v60, %v2538_v43  ;;  %v2575_v5 = vmul.f32 1.442695, %v2554_v42  ;;  %8235 = vmatpush3.msra.mxu0 %v3288_v6  ;;  %v3453_v34 = vld [vmem:[%s10633_s6 + $0xe8] sm:$0xff] }
 0x6a7   :  { %8553 = vrcp.f32 %v3283_v7  ;;  %8236 = vmatprep.subr.mxu0 %v8677_v48  ;;  %v2577_v60 = vmul.f32 1.442695, %v2555_v1 }
 0x6a8   :  { %8555 = vpow2.f32 %v2561_v62  ;;  %8237 = vmatpush3.msra.mxu0 %v3287_v59  ;;  %v2579_v50 = vmul.f32 1.442695, %v2556_v19 }
 0x6a9   :  { %8557 = vpow2.f32 %v2563_v0  ;;  %8238 = vmatprep.subr.mxu0 %v8677_v48 }
 0x6aa   :  { %8559 = vpow2.f32 %v2565_v56  ;;  %8239 = vmatpush3.msra.mxu0 %v3286_v58 }
 0x6ab   :  { %8561 = vpow2.f32 %v2567_v52  ;;  %8254 = vmatprep.subr.mxu0 %v8677_v48 }
 0x6ac   :  { %8563 = vpow2.f32 %v2569_v28 }
 0x6ad   :  { %8565 = vpow2.f32 %v2571_v31 }
 0x6ae   :  { %8567 = vpow2.f32 %v2573_v14 }
 0x6af   :  { %8569 = vpow2.f32 %v2575_v5 }
 0x6b0   :  { %8571 = vpow2.f32 %v2577_v60 }
 0x6b1   :  { %8573 = vpow2.f32 %v2579_v50 }
 0x6b2   :  { %v9600_v2 = vpop.eup %8549 }
 0x6b3   :  { %v9609_v44 = vpop.eup %8551  ;;  %2594 = vperm.xlu0 %8473, %v9600_v2  }
 0x6b4   :  { %v8554_v54 = vpop.eup %8553  ;;  %2597 = vperm.xlu1 %8474, %v9609_v44  }
 0x6b5   :  { %v9614_v36 = vpop.eup %8555  ;;  %v3285_v40 = vmul.f32 %v8554_v54, %v9544_v25  ;;  %v3454_v25 = vld [vmem:[%s10633_s6 + $0xf0] sm:$0xff] }
 0x6b6   :  { %v9617_v47 = vpop.eup %8557 }
 0x6b7   :  { %2600 = vperm.xlu0 %8473, %v9614_v36   ;;  %v9631_v15 = vpop.eup %8559  ;;  %8241 = vmatmul.mubr.msk.f32.vlgmr.msra.gmra.mxu0 %vm61_vm0, %v3285_v40 }
 0x6b8   :  { %2603 = vperm.xlu1 %8474, %v9617_v47   ;;  %v9639_v26 = vpop.eup %8561  ;;  %8255 = vmatpush3.msra.mxu0 %v3455_v29 }
 0x6b9   :  { %8256 = vmatprep.subr.mxu0 %v8677_v48  ;;  %8262 = vmatprep.mubr.msk.f32.mxu0 %vm8679_vm14, %v8677_v48  ;;  %v9649_v18 = vpop.eup %8563 }
 0x6ba   :  { %8257 = vmatpush3.msra.mxu0 %v3454_v25  ;;  %v9655_v33 = vpop.eup %8565 }
 0x6bb   :  { %2606 = vperm.xlu0 %8473, %v9631_v15   ;;  %8258 = vmatprep.subr.mxu0 %v8677_v48  ;;  %v8568_v13 = vpop.eup %8567 }
 0x6bc   :  { %2609 = vperm.xlu1 %8474, %v9639_v26   ;;  %8259 = vmatpush3.msra.mxu0 %v3453_v34  ;;  %v9662_v53 = vpop.eup %8569 }
 0x6bd   :  { %8260 = vmatprep.subr.mxu0 %v8677_v48  ;;  %v9667_v30 = vpop.eup %8571 }
 0x6be   :  { %8261 = vmatpush3.msra.mxu0 %v3452_v12  ;;  %v9669_v17 = vpop.eup %8573 }
 0x6bf   :  { %2612 = vperm.xlu0 %8473, %v9649_v18   ;;  %8263 = vmatmul.mubr.msk.f32.vlgmr.msra.gmra.mxu0 %vm61_vm0, %v3285_v40 }
 0x6c0   :  { %2615 = vperm.xlu1 %8474, %v9655_v33   ;;  %8276 = vmatprep.subr.mxu0 %v8677_v48 }
 0x6c1   :  { %8280 = vmatprep.mubr.msk.f32.mxu0 %vm8679_vm14, %v8677_v48 }
 0x6c3   :  { %2618 = vperm.xlu0 %8473, %v8568_v13  }
 0x6c4   :  { %2621 = vperm.xlu1 %8474, %v9662_v53  }
 0x6c7   :  { %2624 = vperm.xlu0 %8473, %v9667_v30  }
 0x6c8   :  { %2627 = vperm.xlu1 %8474, %v9669_v17  }
 0x72e   :  { %v2595_v7 = vpop.permute.xlu0 %2594 }
 0x72f   :  { %v2598_v51 = vpop.permute.xlu1 %2597  ;;  %v2632_v28 = vrot.slane %v2595_v7, %v9550_v45 }
 0x730   :  { %v2636_v11 = vrot.slane %v2598_v51, %v9553_v10 }
 0x732   :  { %v2601_v57 = vpop.permute.xlu0 %2600  ;;  %v2637_v54 = vsel %vm2452_vm5, %v2636_v11, %v2632_v28 }
 0x733   :  { %v2604_v62 = vpop.permute.xlu1 %2603  ;;  %v2641_v63 = vrot.slane %v2601_v57, %v9550_v45 }
 0x734   :  { %v2645_v56 = vrot.slane %v2604_v62, %v9553_v10 }
 0x736   :  { %v2607_v8 = vpop.permute.xlu0 %2606  ;;  %v2646_v5 = vsel %vm2452_vm5, %v2645_v56, %v2641_v63 }
 0x737   :  { %v2610_v0 = vpop.permute.xlu1 %2609  ;;  %v2650_v43 = vrot.slane %v2607_v8, %v9550_v45  ;;  %v2683_v58 = vsel %vm2499_vm6, %v2646_v5, %v2637_v54 }
 0x738   :  { %v2654_v52 = vrot.slane %v2610_v0, %v9553_v10 }
 0x73a   :  { %v2613_v49 = vpop.permute.xlu0 %2612  ;;  %v2655_v59 = vsel %vm2452_vm5, %v2654_v52, %v2650_v43 }
 0x73b   :  { %v2616_v61 = vpop.permute.xlu1 %2615  ;;  %v2659_v31 = vrot.slane %v2613_v49, %v9550_v45  ;;  %v2684_v12 = vsel %vm2501_vm7, %v2655_v59, %v2683_v58 }
 0x73c   :  { %v2663_v42 = vrot.slane %v2616_v61, %v9553_v10 }
 0x73e   :  { %v2619_v1 = vpop.permute.xlu0 %2618  ;;  %v2664_v60 = vsel %vm2452_vm5, %v2663_v42, %v2659_v31 }
 0x73f   :  { %v2622_v14 = vpop.permute.xlu1 %2621  ;;  %v2668_v19 = vrot.slane %v2619_v1, %v9550_v45  ;;  %v2685_v7 = vsel %vm2503_vm8, %v2664_v60, %v2684_v12 }
 0x740   :  { %v2672_v6 = vrot.slane %v2622_v14, %v9553_v10 }
 0x742   :  { %v2625_v50 = vpop.permute.xlu0 %2624  ;;  %v2673_v25 = vsel %vm2452_vm5, %v2672_v6, %v2668_v19 }
 0x743   :  { %v2628_v40 = vpop.permute.xlu1 %2627  ;;  %v2677_v29 = vrot.slane %v2625_v50, %v9550_v45  ;;  %v2686_v57 = vsel %vm2505_vm9, %v2673_v25, %v2685_v7 }
 0x744   :  { %v2681_v34 = vrot.slane %v2628_v40, %v9553_v10 }
 0x746   :  { %v2682_v51 = vsel %vm2452_vm5, %v2681_v34, %v2677_v29 }
 0x747   :  { %v2687_v62 = vsel %vm2507_vm10, %v2682_v51, %v2686_v57 }
 0x748   :  { %v2689_v8 = vsel %vm2510_vm11, %v2687_v62, 0.0  ;;  %vm5033_vm11 = vcmask 1047559  }
 0x749   :  { %2690 = vadd.xlane.f32.xlu0 %v2689_v8 }
 0x777   :  { %v9697_v0 = vpop.f32.mrf.mxu0 }
 0x779   :  { %v8242_v49 = vpop.f32.mrf.mxu0 }
 0x77f   :  { %v9699_v61 = vpop.f32.mrf.mxu0 }
 0x781   :  { %v8264_v56 = vpop.f32.mrf.mxu0 }
 0x7d2   :  { %v2691_v63 = vpop.xlane.xlu0 %2690 }
 0x7d3   :  { %8575 = vrcp.f32 %v2691_v63  ;;  %v3372_v63 = vld [vmem:[%s10633_s6 + $0xd0] sm:$0xff] }
 0x7e0   :  { %v8576_v52 = vpop.eup %8575 }
 0x7e1   :  { %v2713_v43 = vrot.slane %v8576_v52, %v9406_v46  ;;  %v2697_v11 = vrot.slane %v8576_v52, %v9132_v35  ;;  %v2701_v1 = vrot.slane %v8576_v52, %v9391_v3  ;;  %v2705_v5 = vrot.slane %v8576_v52, %v9396_v4 }
 0x7e3   :  { %v2732_v28 = vmul.f32 %v8568_v13, %v2713_v43  ;;  %v2724_v42 = vmul.f32 %v9600_v2, %v2697_v11  ;;  %v2725_v31 = vmul.f32 %v9609_v44, %v2697_v11  ;;  %v2726_v14 = vmul.f32 %v9614_v36, %v2701_v1  ;;  %v3369_v11 = vld [vmem:[%s10633_s6 + $0xb8] sm:$0xff] }
 0x7e4   :  { %v2727_v19 = vmul.f32 %v9617_v47, %v2701_v1  ;;  %v2728_v6 = vmul.f32 %v9631_v15, %v2705_v5  ;;  %v2729_v2 = vmul.f32 %v9639_v26, %v2705_v5  ;;  %v2709_v13 = vrot.slane %v8576_v52, %v9401_v9 }
 0x7e5   :  { %3095 = vperm.xlu0 %8473, %v2732_v28   ;;  %2739 = vperm.xlu1 %8474, %v2724_v42   ;;  %v2733_v36 = vmul.f32 %v9662_v53, %v2713_v43  ;;  %v2717_v47 = vrot.slane %v8576_v52, %v9501_v55  ;;  %v3370_v43 = vld [vmem:[%s10633_s6 + $0xc0] sm:$0xff] }
 0x7e6   :  { %v2730_v44 = vmul.f32 %v9649_v18, %v2709_v13  ;;  %v2731_v59 = vmul.f32 %v9655_v33, %v2709_v13  ;;  %v7435_v42 = vld [vmem:[%s10633_s6 + $0x100] ss:$0 sm:$0xff] }
 0x7e7   :  { %v2734_v54 = vmul.f32 %v9667_v30, %v2717_v47  ;;  %v2735_v15 = vmul.f32 %v9669_v17, %v2717_v47  ;;  %v3528_v1 = vadd.f32 %v7435_v42, %v9699_v61  ;;  %v3616_v61 = vld [vmem:[%s10633_s6 + $0x138] sm:$0xff]  ;;  %v9904_v42 = vld [vmem:[%s10637_s3 + $0x28] sm:$0xff] }
 0x7e8   :  { %8277 = vmatpush3.msra.mxu0 %v3616_v61 }
 0x7e9   :  { %2742 = vperm.xlu1 %8474, %v2725_v31   ;;  %v3534_v31 = vld [vmem:[%s10633_s6 + $0x118] sm:$0xff]  ;;  %v3531_v5 = vmax.f32 %v3528_v1, 0.0  ;;  %8278 = vmatprep.subr.mxu0 %v8677_v48  ;;  %v3715_v1 = vld [vmem:[%s10638_s4] sm:$0x3f] }
 0x7ed   :  { %2828 = vperm.xlu1 %8474, %v2726_v14   ;;  %v3533_v14 = vld [vmem:[%s10633_s6 + $0x110] sm:$0xff] }
 0x7f1   :  { %2831 = vperm.xlu1 %8474, %v2727_v19   ;;  %v3532_v19 = vld [vmem:[%s10633_s6 + $0x108] sm:$0xff] }
 0x7f5   :  { %2917 = vperm.xlu1 %8474, %v2728_v6   ;;  %v3615_v6 = vld [vmem:[%s10633_s6 + $0x130] sm:$0xff] }
 0x7f6   :  { %8279 = vmatpush3.msra.mxu0 %v3615_v6 }
 0x7f7   :  { %8296 = vmatprep.subr.mxu0 %v8677_v48 }
 0x7f9   :  { %2920 = vperm.xlu1 %8474, %v2729_v2  }
 0x7fd   :  { %3006 = vperm.xlu1 %8474, %v2730_v44  }
 0x801   :  { %3009 = vperm.xlu1 %8474, %v2731_v59  }
 0x805   :  { %3098 = vperm.xlu1 %8474, %v2733_v36  }
 0x809   :  { %3184 = vperm.xlu1 %8474, %v2734_v54  }
 0x80d   :  { %3187 = vperm.xlu1 %8474, %v2735_v15  }
 0x860   :  { %v2740_v26 = vpop.permute.xlu1 %2739  ;;  %v3096_v51 = vpop.permute.xlu0 %3095 }
 0x861   :  { %v2747_v50 = vrot.slane %v2740_v26, %v9550_v45  ;;  %v3103_v62 = vrot.slane %v3096_v51, %v9550_v45 }
 0x864   :  { %v2743_v60 = vpop.permute.xlu1 %2742 }
 0x865   :  { %v2751_v18 = vrot.slane %v2743_v60, %v9553_v10 }
 0x867   :  { %v2752_v33 = vsel %vm2452_vm5, %v2751_v18, %v2747_v50 }
 0x868   :  { %8195 = vmatmul.mubr.msk.f32.vlgmr.msra.gmra.mxu1 %vm1229_vm1, %v2752_v33  ;;  %v2829_v53 = vpop.permute.xlu1 %2828 }
 0x869   :  { %8198 = vmatpush3.msra.mxu1 %v9414_v27  ;;  %8201 = vmatprep.mubr.msk.f32.mxu1 %vm8679_vm14, %v8677_v48  ;;  %v2836_v17 = vrot.slane %v2829_v53, %v9550_v45 }
 0x86a   :  { %8199 = vmatprep.subr.mxu1 %v8677_v48 }
 0x86b   :  { %8200 = vmatpush3.msra.mxu1 %v9416_v22 }
 0x86c   :  { %v2832_v30 = vpop.permute.xlu1 %2831  ;;  %8204 = vmatprep.subr.mxu1 %v8677_v48 }
 0x86d   :  { %v2840_v58 = vrot.slane %v2832_v30, %v9553_v10 }
 0x86f   :  { %v2841_v40 = vsel %vm2452_vm5, %v2840_v58, %v2836_v17 }
 0x870   :  { %8202 = vmatmul.mubr.msk.f32.vlgmr.msra.gmra.mxu1 %vm1229_vm1, %v2841_v40  ;;  %v2918_v29 = vpop.permute.xlu1 %2917 }
 0x871   :  { %8205 = vmatpush3.msra.mxu1 %v9422_v16  ;;  %8208 = vmatprep.mubr.msk.f32.mxu1 %vm8679_vm14, %v8677_v48  ;;  %v2925_v22 = vrot.slane %v2918_v29, %v9550_v45 }
 0x872   :  { %8206 = vmatprep.subr.mxu1 %v8677_v48 }
 0x873   :  { %8207 = vmatpush3.msra.mxu1 %v9424_v23 }
 0x874   :  { %v2921_v27 = vpop.permute.xlu1 %2920  ;;  %8211 = vmatprep.subr.mxu1 %v8677_v48 }
 0x875   :  { %v2929_v25 = vrot.slane %v2921_v27, %v9553_v10 }
 0x877   :  { %v2930_v34 = vsel %vm2452_vm5, %v2929_v25, %v2925_v22 }
 0x878   :  { %8209 = vmatmul.mubr.msk.f32.vlgmr.msra.gmra.mxu1 %vm1229_vm1, %v2930_v34  ;;  %v3007_v12 = vpop.permute.xlu1 %3006 }
 0x879   :  { %8212 = vmatpush3.msra.mxu1 %v9428_v32  ;;  %8215 = vmatprep.mubr.msk.f32.mxu1 %vm8679_vm14, %v8677_v48  ;;  %v3014_v23 = vrot.slane %v3007_v12, %v9550_v45 }
 0x87a   :  { %8213 = vmatprep.subr.mxu1 %v8677_v48 }
 0x87b   :  { %8214 = vmatpush3.msra.mxu1 %v9432_v37 }
 0x87c   :  { %v3010_v16 = vpop.permute.xlu1 %3009  ;;  %8218 = vmatprep.subr.mxu1 %v8677_v48 }
 0x87d   :  { %v3018_v7 = vrot.slane %v3010_v16, %v9553_v10  ;;  %v7437_v16 = vld [vmem:[%s10633_s6 + $0x128] ss:$0 sm:$0xff] }
 0x87f   :  { %v3019_v57 = vsel %vm2452_vm5, %v3018_v7, %v3014_v23 }
 0x880   :  { %8216 = vmatmul.mubr.msk.f32.vlgmr.msra.gmra.mxu1 %vm1229_vm1, %v3019_v57  ;;  %v3099_v32 = vpop.permute.xlu1 %3098 }
 0x881   :  { %8219 = vmatpush3.msra.mxu1 %v9438_v21  ;;  %v3107_v8 = vrot.slane %v3099_v32, %v9553_v10  ;;  %8222 = vmatprep.mubr.msk.f32.mxu1 %vm8679_vm14, %v8677_v48  ;;  %v3719_v32 = vld [vmem:[%s10633_s6 + $0x150] sm:$0xff] }
 0x882   :  { %8220 = vmatprep.subr.mxu1 %v8677_v48 }
 0x883   :  { %8221 = vmatpush3.msra.mxu1 %v9440_v38  ;;  %v3108_v37 = vsel %vm2452_vm5, %v3107_v8, %v3103_v62  ;;  %v3718_v62 = vld [vmem:[%s10633_s6 + $0x148] sm:$0xff]  ;;  %v3841_v8 = vld [vmem:[%s10633_s6 + $0x160] sm:$0xff] }
 0x884   :  { %8225 = vmatprep.subr.mxu1 %v8677_v48  ;;  %8223 = vmatmul.mubr.msk.f32.vlgmr.msra.gmra.mxu1 %vm1229_vm1, %v3108_v37  ;;  %v3185_v49 = vpop.permute.xlu1 %3184  ;;  %v9852_v37 = vld [vmem:[%s10637_s3] sm:$0xff] }
 0x885   :  { %8226 = vmatpush3.msra.mxu1 %v9444_v39  ;;  %8229 = vmatprep.mubr.msk.f32.mxu1 %vm8679_vm14, %v8677_v48  ;;  %v3192_v38 = vrot.slane %v3185_v49, %v9550_v45  ;;  %v7431_v39 = vld [vmem:[%s10633_s6 + $0xb0] ss:$0 sm:$0xff]  ;;  %v3840_v49 = vld [vmem:[%s10633_s6 + $0x158] sm:$0xff] }
 0x886   :  { %8227 = vmatprep.subr.mxu1 %v8677_v48 }
 0x887   :  { %8228 = vmatpush3.msra.mxu1 %v9448_v41  ;;  %v3371_v41 = vld [vmem:[%s10633_s6 + $0xc8] sm:$0xff] }
 0x888   :  { %v3188_v21 = vpop.permute.xlu1 %3187  ;;  %8243 = vmatprep.subr.mxu1 %v8677_v48 }
 0x889   :  { %v3196_v56 = vrot.slane %v3188_v21, %v9553_v10  ;;  %v3365_v10 = vadd.f32 %v7431_v39, %v9697_v0  ;;  %v3535_v0 = vld [vmem:[%s10633_s6 + $0x120] sm:$0xff]  ;;  %v9862_v21 = vld [vmem:[%s10637_s3 + $0x8] sm:$0xff] }
 0x88b   :  { %v3197_v52 = vsel %vm2452_vm5, %v3196_v56, %v3192_v38  ;;  %v3368_v28 = vmax.f32 %v3365_v10, 0.0  ;;  %v7439_v38 = vld [vmem:[%s10633_s6 + $0x140] ss:$0 sm:$0xff]  ;;  %v9879_v10 = vld [vmem:[%s10637_s3 + $0x10] sm:$0xff]  ;;  %vm5031_vm5 = vcmask 1046534  }
 0x88c   :  { %8230 = vmatmul.mubr.msk.f32.vlgmr.msra.gmra.mxu1 %vm1229_vm1, %v3197_v52 }
 0x88d   :  { %8244 = vmatpush3.msra.mxu1 %v3372_v63  ;;  %8251 = vmatprep.mubr.msk.f32.mxu1 %vm8679_vm14, %v8677_v48 }
 0x88e   :  { %8245 = vmatprep.subr.mxu1 %v8677_v48 }
 0x88f   :  { %8246 = vmatpush3.msra.mxu1 %v3371_v41  ;;  %v4164_v41 = vld [vmem:[%s10633_s6 + $0x170] sm:$0xff] }
 0x890   :  { %8247 = vmatprep.subr.mxu1 %v8677_v48 }
 0x891   :  { %8248 = vmatpush3.msra.mxu1 %v3370_v43  ;;  %v9884_v43 = vld [vmem:[%s10637_s3 + $0x18] sm:$0xff] }
 0x892   :  { %8249 = vmatprep.subr.mxu1 %v8677_v48 }
 0x893   :  { %8250 = vmatpush3.msra.mxu1 %v3369_v11  ;;  %v9891_v11 = vld [vmem:[%s10637_s3 + $0x20] sm:$0xff] }
 0x894   :  { %8252 = vmatmul.mubr.msk.f32.vlgmr.msra.gmra.mxu1 %vm61_vm0, %v3368_v28  ;;  %8265 = vmatprep.subr.mxu1 %v8677_v48  ;;  %v4163_v28 = vld [vmem:[%s10633_s6 + $0x168] sm:$0xff] }
 0x895   :  { %8266 = vmatpush3.msra.mxu1 %v3535_v0  ;;  %8273 = vmatprep.mubr.msk.f32.mxu1 %vm8679_vm14, %v8677_v48 }
 0x896   :  { %8267 = vmatprep.subr.mxu1 %v8677_v48 }
 0x897   :  { %8268 = vmatpush3.msra.mxu1 %v3534_v31 }
 0x898   :  { %8269 = vmatprep.subr.mxu1 %v8677_v48 }
 0x899   :  { %8270 = vmatpush3.msra.mxu1 %v3533_v14  ;;  %v7441_v14 = vadd.f32 -1.0, %v3715_v1 }
 0x89a   :  { %8271 = vmatprep.subr.mxu1 %v8677_v48 }
 0x89b   :  { %8272 = vmatpush3.msra.mxu1 %v3532_v19  ;;  %v3717_v19 = vmul.f32 1e+09, %v7441_v14 }
 0x89c   :  { %8274 = vmatmul.mubr.msk.f32.vlgmr.msra.gmra.mxu1 %vm61_vm0, %v3531_v5  ;;  %8283 = vmatprep.subr.mxu1 %v3719_v32 }
 0x89d   :  { %8284 = vmatpush3.msra.mxu1 %v3719_v32  ;;  %8287 = vmatprep.mubr.msk.f32.mxu1 %vm1229_vm1, %v9852_v37  ;;  %v3834_v5 = vrot.slane %v3717_v19, 2 }
 0x89e   :  { %8285 = vmatprep.subr.mxu1 %v3718_v62 }
 0x89f   :  { %8286 = vmatpush3.msra.mxu1 %v3718_v62  ;;  %v3838_v61 = vsel %vm3705_vm15, %v3717_v19, %v3834_v5 }
 0x8a0   :  { %8288 = vmatmul.mubr.msk.f32.vlgmr.msra.gmra.mxu1 %vm1229_vm1, %v9862_v21  ;;  %8309 = vmatprep.subr.mxu1 %v4164_v41  ;;  %v4723_v6 = vrot.slane %v3838_v61, %v9132_v35 }
 0x8a1   :  { %8290 = vmatprep.mubr.msk.f32.mxu1 %vm1229_vm1, %v9879_v10  ;;  %8310 = vmatpush3.msra.mxu1 %v4164_v41 }
 0x8a2   :  { %8311 = vmatprep.subr.mxu1 %v4163_v28 }
 0x8a3   :  { %8312 = vmatpush3.msra.mxu1 %v4163_v28 }
 0x8a4   :  { %8291 = vmatmul.mubr.msk.f32.gmra.mxu1 %vm1229_vm1, %v9884_v43  ;;  %8385 = vmatprep.subr.mxu1 %v8677_v48 }
 0x8a5   :  { %8293 = vmatprep.mubr.msk.f32.mxu1 %vm1229_vm1, %v9891_v11 }
 0x8a8   :  { %8294 = vmatmul.mubr.msk.f32.gmra.mxu1 %vm1229_vm1, %v9904_v42 }
 0x928   :  { %v2821_v2 = vpop.f32.mrf.mxu1 }
 0x92a   :  { %v8196_v13 = vpop.f32.mrf.mxu1 }
 0x92b   :  { %v4737_v13 = vrot.slane %v3838_v61, %v9396_v4 }
 0x930   :  { %v2910_v44 = vpop.f32.mrf.mxu1 }
 0x931   :  { %v7257_v59 = vrot.slane %v2910_v44, 7  ;;  %v4758_v44 = vrot.slane %v3838_v61, %v9501_v55 }
 0x932   :  { %v8203_v36 = vpop.f32.mrf.mxu1 }
 0x933   :  { %v7258_v47 = vsel %vm2499_vm6, %v7257_v59, %v2821_v2  ;;  %v4730_v2 = vrot.slane %v3838_v61, %v9391_v3  ;;  %v9919_v59 = vsub.s32 7, %v9116_v20  ;;  %v9921_v36 = vrot.slane %v3717_v19, 4 }
 0x935   :  { %4732 = vbcast.lane.b32.xlu0 %v4730_v2, 256 }
 0x938   :  { %v2999_v54 = vpop.f32.mrf.mxu1 }
 0x939   :  { %v7259_v15 = vrot.slane %v2999_v54, 6  ;;  %4760 = vbcast.lane.b32.xlu0 %v4758_v44, 256  ;;  %v4772_v54 = vrot.slane %v3838_v61, %v9919_v59 }
 0x93a   :  { %v8210_v26 = vpop.f32.mrf.mxu1 }
 0x93b   :  { %v7260_v60 = vsel %vm2501_vm7, %v7259_v15, %v7258_v47  ;;  %v4744_v47 = vrot.slane %v3838_v61, %v9401_v9  ;;  %v9927_v15 = vsel %vm3707_vm4, %v3834_v5, %v9921_v36  ;;  %v4751_v26 = vrot.slane %v3838_v61, %v9406_v46 }
 0x93d   :  { %4774 = vbcast.lane.b32.xlu0 %v4772_v54, 256 }
 0x940   :  { %v3088_v50 = vpop.f32.mrf.mxu1 }
 0x941   :  { %v7261_v18 = vrot.slane %v3088_v50, 5  ;;  %v4786_v50 = vrot.slane %v9927_v15, %v9391_v3 }
 0x942   :  { %v8217_v33 = vpop.f32.mrf.mxu1 }
 0x943   :  { %v7262_v53 = vsel %vm2503_vm8, %v7261_v18, %v7260_v60  ;;  %v9931_v60 = vsub.s32 6, %v9116_v20  ;;  %4788 = vbcast.lane.b32.xlu0 %v4786_v50, 256  ;;  %v4814_v33 = vrot.slane %v9927_v15, %v9501_v55  ;;  %v4793_v20 = vrot.slane %v9927_v15, %v9396_v4 }
 0x944   :  { %v3177_v30 = vpop.f32.mrf.mxu1 }
 0x945   :  { %v7263_v17 = vrot.slane %v3177_v30, 4  ;;  %v4765_v18 = vrot.slane %v3838_v61, %v9931_v60  ;;  %v4800_v30 = vrot.slane %v9927_v15, %v9401_v9 }
 0x946   :  { %v8224_v58 = vpop.f32.mrf.mxu1 }
 0x947   :  { %v7264_v40 = vsel %vm2505_vm9, %v7263_v17, %v7262_v53  ;;  %v4779_v53 = vrot.slane %v9927_v15, %v9132_v35  ;;  %4816 = vbcast.lane.b32.xlu0 %v4814_v33, 256  ;;  %v4807_v17 = vrot.slane %v9927_v15, %v9406_v46  ;;  %v4821_v58 = vrot.slane %v9927_v15, %v9931_v60 }
 0x94c   :  { %v3266_v29 = vpop.f32.mrf.mxu1 }
 0x94d   :  { %v7265_v27 = vrot.slane %v3266_v29, 3 }
 0x94e   :  { %v8231_v22 = vpop.f32.mrf.mxu1 }
 0x94f   :  { %v9830_v25 = vsel %vm2507_vm10, %v7265_v27, %v7264_v40 }
 0x954   :  { %v9832_v34 = vpop.f32.mrf.mxu1 }
 0x956   :  { %v8253_v12 = vpop.f32.mrf.mxu1 }
 0x95c   :  { %v3610_v23 = vpop.f32.mrf.mxu1 }
 0x95d   :  { %v3611_v7 = vadd.f32 %v7437_v16, %v3610_v23 }
 0x95e   :  { %v8275_v51 = vpop.f32.mrf.mxu1 }
 0x95f   :  { %v3614_v57 = vmax.f32 %v3611_v7, 0.0 }
 0x961   :  { %8281 = vmatmul.mubr.msk.f32.vlgmr.msra.gmra.mxu0 %vm1229_vm1, %v3614_v57 }
 0x962   :  { %8300 = vmatprep.mubr.msk.f32.mxu0 %vm8679_vm14, %v8677_v48  ;;  %8297 = vmatpush3.msra.mxu0 %v3841_v8 }
 0x963   :  { %8298 = vmatprep.subr.mxu0 %v8677_v48 }
 0x964   :  { %8299 = vmatpush3.msra.mxu0 %v3840_v49 }
 0x965   :  { %8340 = vmatprep.subr.mxu0 %v8677_v48 }
 0xa21   :  { %v3691_v56 = vpop.f32.mrf.mxu0 }
 0xa22   :  { %v3692_v63 = vadd.f32 %v7439_v38, %v3691_v56 }
 0xa23   :  { %v8282_v39 = vpop.f32.mrf.mxu0 }
 0xa24   :  { %v9871_v52 = vmax.f32 %v3692_v63, 0.0 }
 0xa26   :  { %v3697_v0 = vrot.slane %v9871_v52, 2  ;;  %v3701_v31 = vrot.slane %v9871_v52, 4 }
 0xa28   :  { %3698 = vrot.lane.b32.xlu1 %v3697_v0, %s8680_s21 }
 0xa2c   :  { %3702 = vrot.lane.b32.xlu1 %v3701_v31, %s8681_s2 }
 0xa30   :  { %4725 = vbcast.lane.b32.xlu1 %v4723_v6, 256 }
 0xa34   :  { %4739 = vbcast.lane.b32.xlu1 %v4737_v13, 256 }
 0xa38   :  { %4746 = vbcast.lane.b32.xlu1 %v4744_v47, 256 }
 0xa3c   :  { %4753 = vbcast.lane.b32.xlu1 %v4751_v26, 256 }
 0xa40   :  { %4767 = vbcast.lane.b32.xlu1 %v4765_v18, 256 }
 0xa44   :  { %4781 = vbcast.lane.b32.xlu1 %v4779_v53, 256 }
 0xa48   :  { %4795 = vbcast.lane.b32.xlu1 %v4793_v20, 256 }
 0xa4c   :  { %4802 = vbcast.lane.b32.xlu1 %v4800_v30, 256 }
 0xa50   :  { %4809 = vbcast.lane.b32.xlu1 %v4807_v17, 256 }
 0xa54   :  { %4823 = vbcast.lane.b32.xlu1 %v4821_v58, 256 }
 0xa9a   :  { %v3699_v40 = vpop.permute.xlu1 %3698 }
 0xa9b   :  { %v3706_v29 = vsel %vm3705_vm15, %v9871_v52, %v3699_v40 }
 0xa9c   :  { %v3935_v27 = vcombine.high %v3706_v29, %v3706_v29  ;;  %v3942_v22 = vrot.slane %v3706_v29, %v9122_v24  ;;  %8301 = vmatmul.mubr.msk.f32.vlgmr.msra.gmra.mxu0 %vm1229_vm1, %v3706_v29 }
 0xa9d   :  { %8303 = vmatprep.mubr.msk.f32.mxu0 %vm8679_vm14, %v8677_v48  ;;  %8341 = vmatpush3.msra.mxu0 %v9852_v37 }
 0xa9e   :  { %v3949_v12 = vrot.slane %v3935_v27, %v9122_v24  ;;  %v3950_v16 = vcombine.high %v3942_v22, %v3942_v22  ;;  %v3958_v23 = vrot.slane %v3942_v22, %v9122_v24  ;;  %v3703_v7 = vpop.permute.xlu1 %3702  ;;  %8345 = vmatprep.subr.mxu0 %v8677_v48 }
 0xa9f   :  { %v3708_v51 = vsel %vm3707_vm4, %v3699_v40, %v3703_v7 }
 0xaa0   :  { %v3972_v57 = vrot.slane %v3950_v16, %v9122_v24  ;;  %v3980_v32 = vcombine.high %v3958_v23, %v3958_v23  ;;  %8304 = vmatmul.mubr.msk.f32.gmra.mxu0 %vm1229_vm1, %v3708_v51  ;;  %v3951_v62 = vcombine.high %v3949_v12, %v3949_v12  ;;  %v3965_v8 = vrot.slane %v3949_v12, %v9122_v24 }
 0xaa1   :  { %8306 = vmatprep.mubr.msk.f32.mxu0 %vm8679_vm14, %v8677_v48  ;;  %v4058_v38 = vrot.slane %v3958_v23, %v9132_v35  ;;  %v3991_v28 = vrot.slane %v3708_v51, %v9122_v24  ;;  %v3984_v19 = vcombine.high %v3708_v51, %v3708_v51  ;;  %v4039_v12 = vrot.slane %v3703_v7, %v9122_v24 }
 0xaa2   :  { %v4062_v49 = vrot.slane %v3972_v57, %v9132_v35  ;;  %v4066_v56 = vrot.slane %v3980_v32, %v9132_v35  ;;  %v3982_v63 = vcombine.high %v3972_v57, %v3972_v57  ;;  %v4074_v31 = vrot.slane %v3965_v8, %v9132_v35 }
 0xaa3   :  { %v4145_v52 = vmul.f32 %v4058_v38, %v9852_v37  ;;  %v3979_v1 = vrot.slane %v3951_v62, %v9122_v24  ;;  %v3981_v14 = vcombine.high %v3965_v8, %v3965_v8  ;;  %v3999_v5 = vcombine.high %v3991_v28, %v3991_v28 }
 0xaa4   :  { %v4146_v39 = vmul.f32 %v4062_v49, %v9862_v21  ;;  %8307 = vmatmul.mubr.msk.f32.gmra.mxu0 %vm1229_vm1, %v3703_v7  ;;  %v4147_v41 = vmul.f32 %v4066_v56, %v9879_v10  ;;  %v4070_v0 = vrot.slane %v3982_v63, %v9132_v35  ;;  %v4007_v13 = vrot.slane %v3991_v28, %v9122_v24 }
 0xaa5   :  { %8342 = vmatprep.mubr.msk.f32.mxu0 %vm8679_vm14, %v8677_v48  ;;  %8313 = vmatprep.mubr.msk.f32.mxu1 %vm1229_vm1, %v4145_v52  ;;  %v4078_v6 = vrot.slane %v3979_v1, %v9132_v35  ;;  %v3983_v2 = vcombine.high %v3979_v1, %v3979_v1  ;;  %v4149_v44 = vmul.f32 %v4074_v31, %v9891_v11 }
 0xaa6   :  { %8314 = vmatmul.mubr.msk.f32.vlgmr.msra.gmra.mxu1 %vm1229_vm1, %v4146_v39  ;;  %v4148_v61 = vmul.f32 %v4070_v0, %v9884_v43  ;;  %v4082_v47 = vrot.slane %v3981_v14, %v9132_v35  ;;  %v3998_v54 = vrot.slane %v3984_v19, %v9122_v24  ;;  %v4021_v26 = vrot.slane %v3999_v5, %v9122_v24  ;;  %v7448_v5 = vld [vmem:[%s10633_s6 + $0x178] ss:$0 sm:$0xff] }
 0xaa7   :  { %8316 = vmatprep.mubr.msk.f32.mxu1 %vm1229_vm1, %v4147_v41  ;;  %8386 = vmatpush3.msra.mxu1 %v9884_v43  ;;  %v4150_v50 = vmul.f32 %v4078_v6, %v9904_v42  ;;  %v4086_v18 = vrot.slane %v3983_v2, %v9132_v35  ;;  %v4029_v33 = vcombine.high %v4007_v13, %v4007_v13 }
 0xaa8   :  { %8395 = vmatprep.subr.mxu1 %v8677_v48  ;;  %v4151_v53 = vmul.f32 %v4082_v47, %v9852_v37  ;;  %v4090_v20 = vrot.slane %v4007_v13, %v9132_v35  ;;  %v4000_v30 = vcombine.high %v3998_v54, %v3998_v54  ;;  %v4094_v58 = vrot.slane %v4021_v26, %v9132_v35 }
 0xaa9   :  { %v4152_v17 = vmul.f32 %v4086_v18, %v9862_v21  ;;  %v4031_v40 = vcombine.high %v4021_v26, %v4021_v26  ;;  %v4014_v29 = vrot.slane %v3998_v54, %v9122_v24  ;;  %v4098_v22 = vrot.slane %v4029_v33, %v9132_v35 }
 0xaaa   :  { %8317 = vmatmul.mubr.msk.f32.gmra.mxu1 %vm1229_vm1, %v4148_v61  ;;  %v4153_v27 = vmul.f32 %v4090_v20, %v9879_v10  ;;  %v4154_v16 = vmul.f32 %v4094_v58, %v9884_v43  ;;  %v4028_v51 = vrot.slane %v4000_v30, %v9122_v24  ;;  %v4040_v8 = vcombine.high %v4039_v12, %v4039_v12 }
 0xaab   :  { %8319 = vmatprep.mubr.msk.f32.mxu1 %vm1229_vm1, %v4149_v44  ;;  %v4102_v23 = vrot.slane %v4031_v40, %v9132_v35  ;;  %v4155_v57 = vmul.f32 %v4098_v22, %v9891_v11  ;;  %v4106_v32 = vrot.slane %v4014_v29, %v9132_v35  ;;  %v4030_v62 = vcombine.high %v4014_v29, %v4014_v29 }
 0xaac   :  { %v4110_v7 = vrot.slane %v4028_v51, %v9132_v35  ;;  %v4032_v38 = vcombine.high %v4028_v51, %v4028_v51  ;;  %v4047_v56 = vrot.slane %v4039_v12, %v9122_v24  ;;  %v4054_v52 = vrot.slane %v4040_v8, %v9122_v24 }
 0xaad   :  { %v4156_v49 = vmul.f32 %v4102_v23, %v9904_v42  ;;  %v4157_v63 = vmul.f32 %v4106_v32, %v9852_v37  ;;  %v4114_v39 = vrot.slane %v4030_v62, %v9132_v35 }
 0xaae   :  { %8320 = vmatmul.mubr.msk.f32.gmra.mxu1 %vm1229_vm1, %v4150_v50  ;;  %v4158_v41 = vmul.f32 %v4110_v7, %v9862_v21  ;;  %v4118_v28 = vrot.slane %v4032_v38, %v9132_v35  ;;  %v4122_v31 = vrot.slane %v4047_v56, %v9132_v35  ;;  %v4126_v1 = vrot.slane %v4054_v52, %v9132_v35 }
 0xaaf   :  { %8322 = vmatprep.mubr.msk.f32.mxu1 %vm1229_vm1, %v4151_v53  ;;  %v4159_v0 = vmul.f32 %v4114_v39, %v9879_v10  ;;  %v4828_v10 = vrot.slane %v9927_v15, %v9919_v59 }
 0xab0   :  { %v4160_v37 = vmul.f32 %v4118_v28, %v9884_v43  ;;  %v4161_v14 = vmul.f32 %v4122_v31, %v9891_v11  ;;  %v4162_v21 = vmul.f32 %v4126_v1, %v9904_v42  ;;  %v10037_v43 = vpop.f32.mrf.mxu1 }
 0xab1   :  { %4830 = vbcast.lane.b32.xlu0 %v4828_v10, 256 }
 0xab2   :  { %8323 = vmatmul.mubr.msk.f32.gmra.mxu1 %vm1229_vm1, %v4152_v17  ;;  %v10039_v19 = vpop.f32.mrf.mxu1 }
 0xab3   :  { %8325 = vmatprep.mubr.msk.f32.mxu1 %vm1229_vm1, %v4153_v27 }
 0xab4   :  { %v10041_v11 = vpop.f32.mrf.mxu1 }
 0xab6   :  { %8326 = vmatmul.mubr.msk.f32.gmra.mxu1 %vm1229_vm1, %v4154_v16  ;;  %v10046_v42 = vpop.f32.mrf.mxu1 }
 0xab7   :  { %8328 = vmatprep.mubr.msk.f32.mxu1 %vm1229_vm1, %v4155_v57 }
 0xab8   :  { %v10049_v15 = vpop.f32.mrf.mxu1 }
 0xaba   :  { %8329 = vmatmul.mubr.msk.f32.gmra.mxu1 %vm1229_vm1, %v4156_v49  ;;  %v10053_v20 = vpop.f32.mrf.mxu1 }
 0xabb   :  { %8331 = vmatprep.mubr.msk.f32.mxu1 %vm1229_vm1, %v4157_v63 }
 0xabe   :  { %8332 = vmatmul.mubr.msk.f32.gmra.mxu1 %vm1229_vm1, %v4158_v41 }
 0xabf   :  { %8334 = vmatprep.mubr.msk.f32.mxu1 %vm1229_vm1, %v4159_v0 }
 0xac2   :  { %8335 = vmatmul.mubr.msk.f32.gmra.mxu1 %vm1229_vm1, %v4160_v37 }
 0xac3   :  { %8337 = vmatprep.mubr.msk.f32.mxu1 %vm1229_vm1, %v4161_v14 }
 0xac6   :  { %8338 = vmatmul.mubr.msk.f32.gmra.mxu1 %vm1229_vm1, %v4162_v21 }
 0xac7   :  { %8387 = vmatprep.mubr.msk.f32.mxu1 %vm8679_vm14, %v8677_v48 }
 0xb5c   :  { %v3921_v61 = vpop.f32.mrf.mxu0 }
 0xb5d   :  { %v3922_v6 = vadd.f32 %v7448_v5, %v3921_v61 }
 0xb5e   :  { %v8302_v2 = vpop.f32.mrf.mxu0 }
 0xb5f   :  { %v4377_v13 = vcombine.high %v3922_v6, %v3922_v6  ;;  %v4384_v44 = vrot.slane %v3922_v6, %v9122_v24 }
 0xb60   :  { %v3926_v47 = vpop.f32.mrf.mxu0 }
 0xb61   :  { %v4391_v54 = vrot.slane %v4377_v13, %v9122_v24  ;;  %v4392_v26 = vcombine.high %v4384_v44, %v4384_v44  ;;  %v4400_v50 = vrot.slane %v4384_v44, %v9122_v24  ;;  %v3927_v18 = vadd.f32 %v7448_v5, %v3926_v47 }
 0xb62   :  { %v8305_v33 = vpop.f32.mrf.mxu0 }
 0xb63   :  { %v4393_v53 = vcombine.high %v4391_v54, %v4391_v54  ;;  %v4414_v30 = vrot.slane %v4392_v26, %v9122_v24  ;;  %v4433_v17 = vrot.slane %v3927_v18, %v9122_v24  ;;  %v4500_v40 = vrot.slane %v4400_v50, %v9132_v35 }
 0xb64   :  { %v3931_v58 = vpop.f32.mrf.mxu0  ;;  %v4422_v29 = vcombine.high %v4400_v50, %v4400_v50  ;;  %v4407_v32 = vrot.slane %v4391_v54, %v9122_v24  ;;  %v4426_v38 = vcombine.high %v3927_v18, %v3927_v18 }
 0xb65   :  { %v3932_v27 = vadd.f32 %v7448_v5, %v3931_v58  ;;  %v4504_v12 = vrot.slane %v4414_v30, %v9132_v35  ;;  %v4424_v16 = vcombine.high %v4414_v30, %v4414_v30  ;;  %v4421_v57 = vrot.slane %v4393_v53, %v9122_v24 }
 0xb66   :  { %v8308_v22 = vpop.f32.mrf.mxu0  ;;  %v8315_v23 = vpop.f32.mrf.mxu1  ;;  %v4508_v51 = vrot.slane %v4422_v29, %v9132_v35  ;;  %v4449_v62 = vrot.slane %v4433_v17, %v9122_v24  ;;  %v4587_v49 = vadd.f32 %v4500_v40, %v10039_v19  ;;  %v4441_v56 = vcombine.high %v4433_v17, %v4433_v17 }
 0xb67   :  { %v4588_v8 = vadd.f32 %v10037_v43, %v4504_v12  ;;  %v4512_v7 = vrot.slane %v4424_v16, %v9132_v35  ;;  %v4520_v39 = vrot.slane %v4421_v57, %v9132_v35  ;;  %v4425_v0 = vcombine.high %v4421_v57, %v4421_v57 }
 0xb68   :  { %v4285_v63 = vpop.f32.mrf.mxu1  ;;  %v10069_v31 = vrot.slane %v3932_v27, %v9122_v24  ;;  %v4589_v1 = vadd.f32 %v4508_v51, %v10046_v42  ;;  %v4516_v14 = vrot.slane %v4407_v32, %v9132_v35  ;;  %v4423_v10 = vcombine.high %v4407_v32, %v4407_v32 }
 0xb69   :  { %v4606_v52 = vadd.f32 %v8315_v23, %v4588_v8  ;;  %v4605_v41 = vadd.f32 %v4587_v49, %v4285_v63  ;;  %v4590_v28 = vadd.f32 %v10041_v11, %v4512_v7  ;;  %v4471_v5 = vcombine.high %v4449_v62, %v4449_v62 }
 0xb6a   :  { %v8318_v37 = vpop.f32.mrf.mxu1  ;;  %v4440_v61 = vrot.slane %v4426_v38, %v9122_v24  ;;  %v4592_v2 = vadd.f32 %v10049_v15, %v4520_v39  ;;  %v4528_v44 = vrot.slane %v4425_v0, %v9132_v35  ;;  %v4463_v47 = vrot.slane %v4441_v56, %v9122_v24 }
 0xb6b   :  { %8577 = vtanh.f32 %v4606_v52  ;;  %v4608_v21 = vadd.f32 %v8318_v37, %v4590_v28  ;;  %v4489_v54 = vrot.slane %v10069_v31, %v9122_v24  ;;  %v4540_v50 = vrot.slane %v4471_v5, %v9132_v35 }
 0xb6c   :  { %8579 = vtanh.f32 %v4605_v41  ;;  %v4295_v6 = vpop.f32.mrf.mxu1  ;;  %v4591_v33 = vadd.f32 %v4516_v14, %v10053_v20  ;;  %v4524_v53 = vrot.slane %v4423_v10, %v9132_v35  ;;  %v4442_v30 = vcombine.high %v4440_v61, %v4440_v61 }
 0xb6d   :  { %8581 = vtanh.f32 %v4608_v21  ;;  %v4607_v13 = vadd.f32 %v4589_v1, %v4295_v6  ;;  %v4597_v58 = vadd.f32 %v4540_v50, %v10053_v20  ;;  %v4594_v29 = vadd.f32 %v10037_v43, %v4528_v44 }
 0xb6e   :  { %v8321_v26 = vpop.f32.mrf.mxu1  ;;  %v4536_v27 = vrot.slane %v4463_v47, %v9132_v35  ;;  %v4473_v22 = vcombine.high %v4463_v47, %v4463_v47  ;;  %v4532_v16 = vrot.slane %v4449_v62, %v9132_v35  ;;  %v4593_v51 = vadd.f32 %v4524_v53, %v10039_v19  ;;  %v10097_v62 = vld [vmem:[%s10633_s6 + $0x180] ss:$0 sm:$0xff] }
 0xb6f   :  { %8583 = vtanh.f32 %v4607_v13  ;;  %v4610_v18 = vadd.f32 %v8321_v26, %v4592_v2  ;;  %v4564_v57 = vrot.slane %v4489_v54, %v9132_v35  ;;  %v4470_v8 = vrot.slane %v4442_v30, %v9122_v24 }
 0xb70   :  { %v4305_v17 = vpop.f32.mrf.mxu1  ;;  %v4596_v7 = vadd.f32 %v10041_v11, %v4536_v27  ;;  %v4544_v38 = vrot.slane %v4473_v22, %v9132_v35  ;;  %v4456_v39 = vrot.slane %v4440_v61, %v9122_v24  ;;  %v4595_v41 = vadd.f32 %v4532_v16, %v10046_v42 }
 0xb71   :  { %v4609_v40 = vadd.f32 %v4591_v33, %v4305_v17  ;;  %8585 = vtanh.f32 %v4610_v18  ;;  %v10092_v56 = vadd.f32 %v4564_v57, %v10053_v20  ;;  %v4482_v0 = vcombine.high %v10069_v31, %v10069_v31 }
 0xb72   :  { %v8324_v12 = vpop.f32.mrf.mxu1  ;;  %v4552_v20 = vrot.slane %v4470_v8, %v9132_v35  ;;  %v4474_v1 = vcombine.high %v4470_v8, %v4470_v8  ;;  %v4598_v10 = vadd.f32 %v10049_v15, %v4544_v38  ;;  %v4548_v13 = vrot.slane %v4456_v39, %v9132_v35 }
 0xb73   :  { %8587 = vtanh.f32 %v4609_v40  ;;  %v4612_v23 = vadd.f32 %v8324_v12, %v4594_v29  ;;  %v4472_v44 = vcombine.high %v4456_v39, %v4456_v39  ;;  %v4496_v33 = vrot.slane %v4482_v0, %v9122_v24 }
 0xb74   :  { %v4315_v32 = vpop.f32.mrf.mxu1  ;;  %v4600_v30 = vadd.f32 %v10037_v43, %v4552_v20  ;;  %v4560_v17 = vrot.slane %v4474_v1, %v9132_v35  ;;  %v4599_v29 = vadd.f32 %v4548_v13, %v10039_v19 }
 0xb75   :  { %v4611_v49 = vadd.f32 %v4593_v51, %v4315_v32  ;;  %8589 = vtanh.f32 %v4612_v23  ;;  %v4556_v27 = vrot.slane %v4472_v44, %v9132_v35 }
 0xb76   :  { %v8327_v63 = vpop.f32.mrf.mxu1  ;;  %v4602_v57 = vadd.f32 %v10041_v11, %v4560_v17 }
 0xb77   :  { %8591 = vtanh.f32 %v4611_v49  ;;  %v4614_v52 = vadd.f32 %v8327_v63, %v4596_v7  ;;  %v4601_v8 = vadd.f32 %v4556_v27, %v10046_v42 }
 0xb78   :  { %v8578_v28 = vpop.eup %8577  ;;  %v4325_v37 = vpop.f32.mrf.mxu1 }
 0xb79   :  { %v8580_v14 = vpop.eup %8579  ;;  %8593 = vtanh.f32 %v4614_v52  ;;  %v4613_v21 = vadd.f32 %v4595_v41, %v4325_v37  ;;  %v4647_v5 = vmul.f32 %v8578_v28, %v10097_v62 }
 0xb7a   :  { %v8582_v61 = vpop.eup %8581  ;;  %v8330_v6 = vpop.f32.mrf.mxu1  ;;  %v4646_v2 = vmul.f32 %v8580_v14, %v10097_v62 }
 0xb7b   :  { %8595 = vtanh.f32 %v4613_v21  ;;  %v4616_v31 = vadd.f32 %v8330_v6, %v4598_v10  ;;  %v4667_v47 = vsel %vm1229_vm1, %v4647_v5, 0.0  ;;  %v4649_v54 = vmul.f32 %v8582_v61, %v10097_v62 }
 0xb7c   :  { %v8584_v26 = vpop.eup %8583  ;;  %4668 = vadd.xlane.f32.xlu0 %v4667_v47  ;;  %v4664_v50 = vsel %vm1229_vm1, %v4646_v2, 0.0  ;;  %v4335_v18 = vpop.f32.mrf.mxu1 }
 0xb7d   :  { %8597 = vtanh.f32 %v4616_v31  ;;  %4665 = vadd.xlane.f32.xlu1 %v4664_v50  ;;  %v4615_v53 = vadd.f32 %v4597_v58, %v4335_v18  ;;  %v4673_v16 = vsel %vm1229_vm1, %v4649_v54, 0.0  ;;  %v4648_v23 = vmul.f32 %v8584_v26, %v10097_v62 }
 0xb7e   :  { %v8333_v40 = vpop.f32.mrf.mxu1  ;;  %v8586_v22 = vpop.eup %8585  ;;  %v4568_v58 = vrot.slane %v4496_v33, %v9132_v35 }
 0xb7f   :  { %8599 = vtanh.f32 %v4615_v53  ;;  %v4618_v12 = vadd.f32 %v8333_v40, %v4600_v30  ;;  %v4651_v49 = vmul.f32 %v8586_v22, %v10097_v62  ;;  %v4670_v63 = vsel %vm1229_vm1, %v4648_v23, 0.0 }
 0xb80   :  { %v8588_v24 = vpop.eup %8587  ;;  %4674 = vadd.xlane.f32.xlu0 %v4673_v16  ;;  %v4345_v51 = vpop.f32.mrf.mxu1  ;;  %v4604_v28 = vadd.f32 %v10049_v15, %v4568_v58  ;;  %v4842_v30 = vrot.slane %v9921_v36, %v9391_v3 }
 0xb81   :  { %8601 = vtanh.f32 %v4618_v12  ;;  %v4617_v43 = vadd.f32 %v4599_v29, %v4345_v51  ;;  %v4650_v19 = vmul.f32 %v8588_v24, %v10097_v62  ;;  %v4679_v20 = vsel %vm1229_vm1, %v4651_v49, 0.0 }
 0xb82   :  { %v8336_v32 = vpop.f32.mrf.mxu1  ;;  %v8590_v7 = vpop.eup %8589  ;;  %v4835_v12 = vrot.slane %v9921_v36, %v9132_v35 }
 0xb83   :  { %8603 = vtanh.f32 %v4617_v43  ;;  %v4620_v38 = vadd.f32 %v8336_v32, %v4602_v57  ;;  %v4676_v39 = vsel %vm1229_vm1, %v4650_v19, 0.0  ;;  %v4653_v1 = vmul.f32 %v8590_v7, %v10097_v62  ;;  %v4726_v43 = vpop.permute.xlu1 %4725 }
 0xb84   :  { %v8592_v52 = vpop.eup %8591  ;;  %4671 = vadd.xlane.f32.xlu0 %v4670_v63  ;;  %4677 = vadd.xlane.f32.xlu1 %v4676_v39  ;;  %v4355_v41 = vpop.f32.mrf.mxu1 }
 0xb85   :  { %8605 = vtanh.f32 %v4620_v38  ;;  %v4619_v11 = vadd.f32 %v4601_v8, %v4355_v41  ;;  %v4652_v0 = vmul.f32 %v8592_v52, %v10097_v62  ;;  %v4685_v13 = vsel %vm1229_vm1, %v4653_v1, 0.0  ;;  %v4733_v38 = vpop.permute.xlu0 %4732 }
 0xb86   :  { %v8594_v42 = vpop.eup %8593  ;;  %v8339_v37 = vpop.f32.mrf.mxu1 }
 0xb87   :  { %8607 = vtanh.f32 %v4619_v11  ;;  %v4622_v14 = vadd.f32 %v8339_v37, %v4604_v28  ;;  %v4682_v21 = vsel %vm1229_vm1, %v4652_v0, 0.0  ;;  %v4655_v10 = vmul.f32 %v8594_v42, %v10097_v62  ;;  %v4740_v32 = vpop.permute.xlu1 %4739 }
 0xb88   :  { %v8596_v5 = vpop.eup %8595  ;;  %4680 = vadd.xlane.f32.xlu0 %v4679_v20  ;;  %4683 = vadd.xlane.f32.xlu1 %v4682_v21  ;;  %v4365_v61 = vpop.f32.mrf.mxu1 }
 0xb89   :  { %8609 = vtanh.f32 %v4622_v14  ;;  %v4621_v15 = vadd.f32 %v10092_v56, %v4365_v61  ;;  %v4654_v6 = vmul.f32 %v8596_v5, %v10097_v62  ;;  %v4691_v23 = vsel %vm1229_vm1, %v4655_v10, 0.0  ;;  %v4761_v39 = vpop.permute.xlu0 %4760 }
 0xb8a   :  { %v8598_v2 = vpop.eup %8597 }
 0xb8b   :  { %8611 = vtanh.f32 %v4621_v15  ;;  %v4657_v44 = vmul.f32 %v8598_v2, %v10097_v62  ;;  %v4688_v16 = vsel %vm1229_vm1, %v4654_v6, 0.0  ;;  %v4747_v49 = vpop.permute.xlu1 %4746 }
 0xb8c   :  { %v8600_v31 = vpop.eup %8599  ;;  %4686 = vadd.xlane.f32.xlu0 %v4685_v13 }
 0xb8d   :  { %v4656_v47 = vmul.f32 %v8600_v31, %v10097_v62  ;;  %v4697_v51 = vsel %vm1229_vm1, %v4657_v44, 0.0  ;;  %v4775_v41 = vpop.permute.xlu0 %4774 }
 0xb8e   :  { %v8602_v54 = vpop.eup %8601 }
 0xb8f   :  { %v4659_v26 = vmul.f32 %v8602_v54, %v10097_v62  ;;  %v4754_v7 = vpop.permute.xlu1 %4753 }
 0xb90   :  { %v8604_v50 = vpop.eup %8603 }
 0xb91   :  { %v4658_v18 = vmul.f32 %v8604_v50, %v10097_v62  ;;  %v4703_v57 = vsel %vm1229_vm1, %v4659_v26, 0.0  ;;  %v4789_v28 = vpop.permute.xlu0 %4788 }
 0xb92   :  { %v8606_v33 = vpop.eup %8605 }
 0xb93   :  { %v4661_v56 = vmul.f32 %v8606_v33, %v10097_v62  ;;  %v4700_v24 = vsel %vm1229_vm1, %v4658_v18, 0.0  ;;  %v4768_v63 = vpop.permute.xlu1 %4767 }
 0xb94   :  { %v8608_v53 = vpop.eup %8607 }
 0xb95   :  { %v4660_v17 = vmul.f32 %v8608_v53, %v10097_v62  ;;  %v4709_v19 = vsel %vm1229_vm1, %v4661_v56, 0.0  ;;  %v4817_v42 = vpop.permute.xlu0 %4816 }
 0xb96   :  { %v8610_v40 = vpop.eup %8609 }
 0xb97   :  { %v4663_v29 = vmul.f32 %v8610_v40, %v10097_v62  ;;  %v4706_v58 = vsel %vm1229_vm1, %v4660_v17, 0.0  ;;  %v4782_v52 = vpop.permute.xlu1 %4781 }
 0xb98   :  { %v8612_v27 = vpop.eup %8611 }
 0xb99   :  { %4844 = vbcast.lane.b32.xlu1 %v4842_v30, 256  ;;  %v4662_v22 = vmul.f32 %v8612_v27, %v10097_v62  ;;  %v4694_v62 = vsel %vm1229_vm1, %v4656_v47, 0.0  ;;  %v4715_v8 = vsel %vm1229_vm1, %v4663_v29, 0.0  ;;  %v4831_v20 = vpop.permute.xlu0 %4830 }
 0xb9b   :  { %v4712_v36 = vsel %vm1229_vm1, %v4662_v22, 0.0  ;;  %v4796_v11 = vpop.permute.xlu1 %4795 }
 0xb9f   :  { %v4803_v0 = vpop.permute.xlu1 %4802 }
 0xba2   :  { %4837 = vbcast.lane.b32.xlu0 %v4835_v12, 256 }
 0xba3   :  { %v4810_v37 = vpop.permute.xlu1 %4809 }
 0xba7   :  { %v4824_v1 = vpop.permute.xlu1 %4823 }
 0xbbd   :  { %4689 = vadd.xlane.f32.xlu1 %v4688_v16 }
 0xbc1   :  { %4692 = vadd.xlane.f32.xlu0 %v4691_v23  ;;  %4701 = vadd.xlane.f32.xlu1 %v4700_v24 }
 0xbc5   :  { %4698 = vadd.xlane.f32.xlu0 %v4697_v51  ;;  %4707 = vadd.xlane.f32.xlu1 %v4706_v58 }
 0xbc9   :  { %4695 = vadd.xlane.f32.xlu0 %v4694_v62  ;;  %4713 = vadd.xlane.f32.xlu1 %v4712_v36 }
 0xbcd   :  { %4704 = vadd.xlane.f32.xlu0 %v4703_v57 }
 0xbd1   :  { %4710 = vadd.xlane.f32.xlu0 %v4709_v19 }
 0xbd5   :  { %4716 = vadd.xlane.f32.xlu0 %v4715_v8 }
 0xc05   :  { %v4669_v14 = vpop.xlane.xlu0 %4668 }
 0xc06   :  { %v10156_v21 = vadd.f32 %v4733_v38, %v4669_v14  ;;  %v4666_v10 = vpop.xlane.xlu1 %4665 }
 0xc07   :  { %v10158_v5 = vadd.f32 %v4726_v43, %v4666_v10 }
 0xc08   :  { %4904 = vperm.xlu0 %8473, %v10156_v21  }
 0xc09   :  { %4901 = vperm.xlu1 %8474, %v10158_v5   ;;  %v4675_v61 = vpop.xlane.xlu0 %4674 }
 0xc0a   :  { %v10162_v15 = vadd.f32 %v4747_v49, %v4675_v61 }
 0xc0c   :  { %4910 = vperm.xlu0 %8473, %v10162_v15  }
 0xc0d   :  { %v4672_v6 = vpop.xlane.xlu0 %4671  ;;  %v4678_v2 = vpop.xlane.xlu1 %4677 }
 0xc0e   :  { %v10165_v13 = vadd.f32 %v4740_v32, %v4672_v6  ;;  %v10168_v31 = vadd.f32 %v4754_v7, %v4678_v2 }
 0xc10   :  { %4907 = vperm.xlu1 %8474, %v10165_v13  }
 0xc11   :  { %v4681_v44 = vpop.xlane.xlu0 %4680  ;;  %v4684_v54 = vpop.xlane.xlu1 %4683 }
 0xc12   :  { %v10170_v47 = vadd.f32 %v4761_v39, %v4681_v44  ;;  %v10174_v50 = vadd.f32 %v4768_v63, %v4684_v54 }
 0xc14   :  { %4916 = vperm.xlu0 %8473, %v10170_v47   ;;  %4913 = vperm.xlu1 %8474, %v10168_v31  }
 0xc15   :  { %v4687_v26 = vpop.xlane.xlu0 %4686  ;;  %v4845_v33 = vpop.permute.xlu1 %4844 }
 0xc16   :  { %v10176_v18 = vadd.f32 %v4775_v41, %v4687_v26 }
 0xc18   :  { %4922 = vperm.xlu0 %8473, %v10176_v18   ;;  %4919 = vperm.xlu1 %8474, %v10174_v50  }
 0xc19   :  { %v4838_v56 = vpop.permute.xlu0 %4837 }
 0xc46   :  { %v4690_v53 = vpop.xlane.xlu1 %4689 }
 0xc47   :  { %v10180_v30 = vadd.f32 %v4782_v52, %v4690_v53 }
 0xc49   :  { %4925 = vperm.xlu1 %8474, %v10180_v30  }
 0xc4a   :  { %v4693_v17 = vpop.xlane.xlu0 %4692  ;;  %v4702_v22 = vpop.xlane.xlu1 %4701 }
 0xc4b   :  { %v10183_v40 = vadd.f32 %v4789_v28, %v4693_v17  ;;  %v10192_v51 = vadd.f32 %v4810_v37, %v4702_v22 }
 0xc4d   :  { %4928 = vperm.xlu0 %8473, %v10183_v40  }
 0xc4e   :  { %v4699_v29 = vpop.xlane.xlu0 %4698  ;;  %v4708_v23 = vpop.xlane.xlu1 %4707 }
 0xc4f   :  { %v10186_v27 = vadd.f32 %v4803_v0, %v4699_v29  ;;  %v10198_v36 = vadd.f32 %v4824_v1, %v4708_v23 }
 0xc51   :  { %4934 = vperm.xlu0 %8473, %v10186_v27  }
 0xc52   :  { %v4696_v12 = vpop.xlane.xlu0 %4695  ;;  %v4714_v57 = vpop.xlane.xlu1 %4713 }
 0xc53   :  { %v10189_v16 = vadd.f32 %v4796_v11, %v4696_v12  ;;  %v10204_v32 = vadd.f32 %v4838_v56, %v4714_v57 }
 0xc55   :  { %4931 = vperm.xlu1 %8474, %v10189_v16  }
 0xc56   :  { %v4705_v24 = vpop.xlane.xlu0 %4704 }
 0xc57   :  { %v10194_v58 = vadd.f32 %v4817_v42, %v4705_v24 }
 0xc59   :  { %4940 = vperm.xlu0 %8473, %v10194_v58   ;;  %4937 = vperm.xlu1 %8474, %v10192_v51  }
 0xc5a   :  { %v4711_v62 = vpop.xlane.xlu0 %4710 }
 0xc5b   :  { %v10200_v43 = vadd.f32 %v4831_v20, %v4711_v62 }
 0xc5d   :  { %4946 = vperm.xlu0 %8473, %v10200_v43   ;;  %4943 = vperm.xlu1 %8474, %v10198_v36  }
 0xc5e   :  { %v4717_v19 = vpop.xlane.xlu0 %4716 }
 0xc5f   :  { %v10206_v8 = vadd.f32 %v4845_v33, %v4717_v19 }
 0xc61   :  { %4952 = vperm.xlu0 %8473, %v10206_v8   ;;  %4949 = vperm.xlu1 %8474, %v10204_v32  }
 0xc83   :  { %v4905_v49 = vpop.permute.xlu0 %4904 }
 0xc84   :  { %v4902_v7 = vpop.permute.xlu1 %4901  ;;  %v4961_v38 = vrot.slane %v4905_v49, %v9550_v45 }
 0xc85   :  { %v4957_v63 = vrot.slane %v4902_v7, %v9550_v45 }
 0xc87   :  { %v4911_v39 = vpop.permute.xlu0 %4910  ;;  %v5026_v11 = vsel %vm2499_vm6, %v4961_v38, %v4957_v63 }
 0xc88   :  { %v4969_v0 = vrot.slane %v4911_v39, %v9550_v45 }
 0xc8b   :  { %v4908_v52 = vpop.permute.xlu1 %4907 }
 0xc8c   :  { %v4965_v41 = vrot.slane %v4908_v52, %v9550_v45 }
 0xc8e   :  { %v5027_v28 = vsel %vm2501_vm7, %v4965_v41, %v5026_v11 }
 0xc8f   :  { %v4917_v42 = vpop.permute.xlu0 %4916  ;;  %v4914_v37 = vpop.permute.xlu1 %4913  ;;  %v5028_v14 = vsel %vm2503_vm8, %v4969_v0, %v5027_v28 }
 0xc90   :  { %v4973_v20 = vrot.slane %v4914_v37, %v9550_v45  ;;  %v4977_v1 = vrot.slane %v4917_v42, %v9550_v45 }
 0xc92   :  { %v5029_v10 = vsel %vm2505_vm9, %v4973_v20, %v5028_v14 }
 0xc93   :  { %v4923_v61 = vpop.permute.xlu0 %4922  ;;  %v4920_v6 = vpop.permute.xlu1 %4919  ;;  %v5030_v54 = vsel %vm2507_vm10, %v4977_v1, %v5029_v10 }
 0xc94   :  { %v4985_v2 = vrot.slane %v4923_v61, %v9550_v45  ;;  %v4981_v44 = vrot.slane %v4920_v6, %v9550_v45 }
 0xc96   :  { %v5032_v26 = vsel %vm5031_vm5, %v4981_v44, %v5030_v54 }
 0xc97   :  { %v5034_v33 = vsel %vm5033_vm11, %v4985_v2, %v5032_v26 }
 0xc98   :  { %v5047_v56 = vsel %vm5046_vm12, %v5034_v33, -inf }
 0xc99   :  { %5048 = vmax.xlane.f32.xlu1 %v5047_v56 }
 0xcc4   :  { %v4926_v17 = vpop.permute.xlu1 %4925 }
 0xcc5   :  { %v4989_v22 = vrot.slane %v4926_v17, %v9550_v45 }
 0xcc8   :  { %v4929_v53 = vpop.permute.xlu0 %4928 }
 0xcc9   :  { %v4993_v29 = vrot.slane %v4929_v53, %v9550_v45 }
 0xccb   :  { %v5035_v62 = vsel %vm2499_vm6, %v4993_v29, %v4989_v22 }
 0xccc   :  { %v4935_v12 = vpop.permute.xlu0 %4934 }
 0xccd   :  { %v5001_v19 = vrot.slane %v4935_v12, %v9550_v45 }
 0xcd0   :  { %v4932_v23 = vpop.permute.xlu1 %4931 }
 0xcd1   :  { %v4997_v24 = vrot.slane %v4932_v23, %v9550_v45 }
 0xcd3   :  { %v5036_v57 = vsel %vm2501_vm7, %v4997_v24, %v5035_v62 }
 0xcd4   :  { %v4941_v49 = vpop.permute.xlu0 %4940  ;;  %v4938_v7 = vpop.permute.xlu1 %4937  ;;  %v5037_v39 = vsel %vm2503_vm8, %v5001_v19, %v5036_v57 }
 0xcd5   :  { %v5005_v38 = vrot.slane %v4938_v7, %v9550_v45  ;;  %v5009_v63 = vrot.slane %v4941_v49, %v9550_v45 }
 0xcd7   :  { %v5038_v52 = vsel %vm2505_vm9, %v5005_v38, %v5037_v39 }
 0xcd8   :  { %v4947_v41 = vpop.permute.xlu0 %4946  ;;  %v4944_v11 = vpop.permute.xlu1 %4943  ;;  %v5039_v42 = vsel %vm2507_vm10, %v5009_v63, %v5038_v52 }
 0xcd9   :  { %v5017_v28 = vrot.slane %v4947_v41, %v9550_v45  ;;  %v5013_v0 = vrot.slane %v4944_v11, %v9550_v45 }
 0xcdb   :  { %v5040_v37 = vsel %vm5031_vm5, %v5013_v0, %v5039_v42 }
 0xcdc   :  { %v4953_v20 = vpop.permute.xlu0 %4952  ;;  %v4950_v1 = vpop.permute.xlu1 %4949  ;;  %v5041_v14 = vsel %vm5033_vm11, %v5017_v28, %v5040_v37 }
 0xcdd   :  { %v5025_v10 = vrot.slane %v4953_v20, %v9550_v45  ;;  %v5021_v61 = vrot.slane %v4950_v1, %v9550_v45  ;;  %v5050_v6 = vsel %vm5046_vm12, %v5041_v14, -inf }
 0xcde   :  { %5051 = vmax.xlane.f32.xlu0 %v5050_v6 }
 0xcdf   :  { %v5042_v2 = vsel %vm2499_vm6, %v5025_v10, %v5021_v61 }
 0xce0   :  { %v5054_v44 = vsel %vm5053_vm13, %v5042_v2, -inf }
 0xce2   :  { %5055 = vmax.xlane.f32.xlu0 %v5054_v44 }
 0xd22   :  { %v5049_v54 = vpop.xlane.xlu1 %5048 }
 0xd23   :  { %v5063_v26 = vrot.slane %v5049_v54, %v9132_v35  ;;  %v5067_v33 = vrot.slane %v5049_v54, %v9391_v3  ;;  %v5071_v56 = vrot.slane %v5049_v54, %v9396_v4  ;;  %v5079_v53 = vrot.slane %v5049_v54, %v9406_v46 }
 0xd24   :  { %v5087_v17 = vrot.slane %v5049_v54, %v9931_v60  ;;  %v5075_v12 = vrot.slane %v5049_v54, %v9401_v9  ;;  %v5083_v7 = vrot.slane %v5049_v54, %v9501_v55  ;;  %v5091_v63 = vrot.slane %v5049_v54, %v9919_v59 }
 0xd25   :  { %v5150_v29 = vsub.f32 %v10158_v5, %v5063_v26  ;;  %v5151_v22 = vsub.f32 %v10156_v21, %v5067_v33  ;;  %v5152_v23 = vsub.f32 %v10165_v13, %v5071_v56  ;;  %v5154_v24 = vsub.f32 %v10168_v31, %v5079_v53 }
 0xd26   :  { %v5156_v19 = vsub.f32 %v10174_v50, %v5087_v17  ;;  %v5153_v38 = vsub.f32 %v10162_v15, %v5075_v12  ;;  %v5155_v13 = vsub.f32 %v10170_v47, %v5083_v7  ;;  %v5157_v39 = vsub.f32 %v10176_v18, %v5091_v63 }
 0xd27   :  { %v5168_v62 = vmul.f32 1.442695, %v5150_v29  ;;  %v5170_v57 = vmul.f32 1.442695, %v5151_v22  ;;  %v5176_v49 = vmul.f32 1.442695, %v5154_v24 }
 0xd28   :  { %v5172_v5 = vmul.f32 1.442695, %v5152_v23  ;;  %v5180_v21 = vmul.f32 1.442695, %v5156_v19  ;;  %v5174_v31 = vmul.f32 1.442695, %v5153_v38 }
 0xd29   :  { %8613 = vpow2.f32 %v5168_v62  ;;  %v5178_v50 = vmul.f32 1.442695, %v5155_v13  ;;  %v5182_v41 = vmul.f32 1.442695, %v5157_v39 }
 0xd2a   :  { %8615 = vpow2.f32 %v5170_v57 }
 0xd2b   :  { %8617 = vpow2.f32 %v5176_v49 }
 0xd2c   :  { %8619 = vpow2.f32 %v5172_v5 }
 0xd2d   :  { %8621 = vpow2.f32 %v5180_v21 }
 0xd2e   :  { %8623 = vpow2.f32 %v5174_v31 }
 0xd2f   :  { %8625 = vpow2.f32 %v5178_v50 }
 0xd30   :  { %8627 = vpow2.f32 %v5182_v41 }
 0xd36   :  { %v10262_v52 = vpop.eup %8613 }
 0xd37   :  { %v10264_v15 = vpop.eup %8615  ;;  %5223 = vperm.xlu0 %8473, %v10262_v52  }
 0xd38   :  { %5226 = vperm.xlu1 %8474, %v10264_v15   ;;  %v10268_v11 = vpop.eup %8617 }
 0xd39   :  { %v10270_v47 = vpop.eup %8619 }
 0xd3a   :  { %v10274_v18 = vpop.eup %8621 }
 0xd3b   :  { %5235 = vperm.xlu0 %8473, %v10268_v11   ;;  %v10276_v28 = vpop.eup %8623 }
 0xd3c   :  { %5229 = vperm.xlu1 %8474, %v10270_v47   ;;  %v10280_v0 = vpop.eup %8625 }
 0xd3d   :  { %v10283_v42 = vpop.eup %8627 }
 0xd3f   :  { %5241 = vperm.xlu0 %8473, %v10274_v18  }
 0xd40   :  { %5232 = vperm.xlu1 %8474, %v10276_v28  }
 0xd44   :  { %5238 = vperm.xlu1 %8474, %v10280_v0  }
 0xd48   :  { %5244 = vperm.xlu1 %8474, %v10283_v42  }
 0xd67   :  { %v5052_v37 = vpop.xlane.xlu0 %5051 }
 0xd68   :  { %v5095_v20 = vrot.slane %v5052_v37, %v9132_v35  ;;  %v5099_v1 = vrot.slane %v5052_v37, %v9391_v3  ;;  %v5103_v14 = vrot.slane %v5052_v37, %v9396_v4  ;;  %v5107_v10 = vrot.slane %v5052_v37, %v9401_v9 }
 0xd69   :  { %v5111_v61 = vrot.slane %v5052_v37, %v9406_v46  ;;  %v5115_v54 = vrot.slane %v5052_v37, %v9501_v55  ;;  %v5119_v53 = vrot.slane %v5052_v37, %v9931_v60  ;;  %v5123_v22 = vrot.slane %v5052_v37, %v9919_v59 }
 0xd6a   :  { %v5158_v6 = vsub.f32 %v10180_v30, %v5095_v20  ;;  %v5159_v2 = vsub.f32 %v10183_v40, %v5099_v1  ;;  %v5160_v44 = vsub.f32 %v10189_v16, %v5103_v14  ;;  %v5161_v26 = vsub.f32 %v10186_v27, %v5107_v10 }
 0xd6b   :  { %v5162_v17 = vsub.f32 %v10192_v51, %v5111_v61  ;;  %v5163_v30 = vsub.f32 %v10194_v58, %v5115_v54  ;;  %v5056_v12 = vpop.xlane.xlu0 %5055  ;;  %v5164_v16 = vsub.f32 %v10198_v36, %v5119_v53  ;;  %v5165_v24 = vsub.f32 %v10200_v43, %v5123_v22 }
 0xd6c   :  { %v5184_v33 = vmul.f32 1.442695, %v5158_v6  ;;  %v5186_v56 = vmul.f32 1.442695, %v5159_v2  ;;  %v5188_v29 = vmul.f32 1.442695, %v5160_v44  ;;  %v5127_v27 = vrot.slane %v5056_v12, %v9132_v35 }
 0xd6d   :  { %v5190_v40 = vmul.f32 1.442695, %v5161_v26  ;;  %v5192_v23 = vmul.f32 1.442695, %v5162_v17  ;;  %v5194_v62 = vmul.f32 1.442695, %v5163_v30  ;;  %v5131_v51 = vrot.slane %v5056_v12, %v9391_v3 }
 0xd6e   :  { %8629 = vpow2.f32 %v5184_v33  ;;  %v5196_v57 = vmul.f32 1.442695, %v5164_v16  ;;  %v5166_v19 = vsub.f32 %v10204_v32, %v5127_v27  ;;  %v5198_v58 = vmul.f32 1.442695, %v5165_v24 }
 0xd6f   :  { %8631 = vpow2.f32 %v5186_v56  ;;  %v5167_v49 = vsub.f32 %v10206_v8, %v5131_v51 }
 0xd70   :  { %8633 = vpow2.f32 %v5188_v29  ;;  %v5200_v36 = vmul.f32 1.442695, %v5166_v19 }
 0xd71   :  { %8635 = vpow2.f32 %v5190_v40  ;;  %v5202_v38 = vmul.f32 1.442695, %v5167_v49 }
 0xd72   :  { %8637 = vpow2.f32 %v5192_v23 }
 0xd73   :  { %8639 = vpow2.f32 %v5194_v62 }
 0xd74   :  { %8641 = vpow2.f32 %v5196_v57 }
 0xd75   :  { %8643 = vpow2.f32 %v5198_v58 }
 0xd76   :  { %8645 = vpow2.f32 %v5200_v36 }
 0xd77   :  { %8647 = vpow2.f32 %v5202_v38 }
 0xd7b   :  { %v10306_v7 = vpop.eup %8629 }
 0xd7c   :  { %v10308_v5 = vpop.eup %8631  ;;  %5247 = vperm.xlu0 %8473, %v10306_v7  }
 0xd7d   :  { %5250 = vperm.xlu1 %8474, %v10308_v5   ;;  %v10312_v43 = vpop.eup %8633 }
 0xd7e   :  { %v10314_v32 = vpop.eup %8635 }
 0xd7f   :  { %v10318_v8 = vpop.eup %8637 }
 0xd80   :  { %5253 = vperm.xlu0 %8473, %v10312_v43   ;;  %v10320_v21 = vpop.eup %8639 }
 0xd81   :  { %5256 = vperm.xlu1 %8474, %v10314_v32   ;;  %v10324_v63 = vpop.eup %8641 }
 0xd82   :  { %v10326_v13 = vpop.eup %8643 }
 0xd83   :  { %v10330_v31 = vpop.eup %8645 }
 0xd84   :  { %5259 = vperm.xlu0 %8473, %v10318_v8   ;;  %v10332_v39 = vpop.eup %8647 }
 0xd85   :  { %5262 = vperm.xlu1 %8474, %v10320_v21  }
 0xd88   :  { %5265 = vperm.xlu0 %8473, %v10324_v63  }
 0xd89   :  { %5268 = vperm.xlu1 %8474, %v10326_v13  }
 0xd8c   :  { %5271 = vperm.xlu0 %8473, %v10330_v31  }
 0xd8d   :  { %5274 = vperm.xlu1 %8474, %v10332_v39  }
 0xdb2   :  { %v5224_v41 = vpop.permute.xlu0 %5223 }
 0xdb3   :  { %v5227_v50 = vpop.permute.xlu1 %5226  ;;  %v5279_v1 = vrot.slane %v5224_v41, %v9550_v45 }
 0xdb4   :  { %v5283_v20 = vrot.slane %v5227_v50, %v9550_v45 }
 0xdb6   :  { %v5236_v10 = vpop.permute.xlu0 %5235  ;;  %v5348_v6 = vsel %vm2499_vm6, %v5283_v20, %v5279_v1 }
 0xdb7   :  { %v5230_v37 = vpop.permute.xlu1 %5229  ;;  %v5295_v26 = vrot.slane %v5236_v10, %v9550_v45 }
 0xdb8   :  { %v5287_v14 = vrot.slane %v5230_v37, %v9550_v45 }
 0xdba   :  { %v5349_v44 = vsel %vm2501_vm7, %v5287_v14, %v5348_v6  ;;  %v5242_v56 = vpop.permute.xlu0 %5241 }
 0xdbb   :  { %v5233_v61 = vpop.permute.xlu1 %5232  ;;  %v5303_v22 = vrot.slane %v5242_v56, %v9550_v45 }
 0xdbc   :  { %v5291_v2 = vrot.slane %v5233_v61, %v9550_v45 }
 0xdbe   :  { %v5350_v54 = vsel %vm2503_vm8, %v5291_v2, %v5349_v44 }
 0xdbf   :  { %v5239_v33 = vpop.permute.xlu1 %5238  ;;  %v5351_v17 = vsel %vm2505_vm9, %v5295_v26, %v5350_v54 }
 0xdc0   :  { %v5299_v53 = vrot.slane %v5239_v33, %v9550_v45 }
 0xdc2   :  { %v5352_v29 = vsel %vm2507_vm10, %v5299_v53, %v5351_v17 }
 0xdc3   :  { %v5245_v30 = vpop.permute.xlu1 %5244  ;;  %v5353_v12 = vsel %vm5031_vm5, %v5303_v22, %v5352_v29 }
 0xdc4   :  { %v5307_v40 = vrot.slane %v5245_v30, %v9550_v45 }
 0xdc6   :  { %v5354_v16 = vsel %vm5033_vm11, %v5307_v40, %v5353_v12 }
 0xdc7   :  { %v5366_v23 = vsel %vm5046_vm12, %v5354_v16, 0.0 }
 0xdc8   :  { %5367 = vadd.xlane.f32.xlu0 %v5366_v23 }
 0xdf7   :  { %v5248_v27 = vpop.permute.xlu0 %5247 }
 0xdf8   :  { %v5251_v24 = vpop.permute.xlu1 %5250  ;;  %v5311_v51 = vrot.slane %v5248_v27, %v9550_v45 }
 0xdf9   :  { %v5315_v62 = vrot.slane %v5251_v24, %v9550_v45 }
 0xdfb   :  { %v5254_v57 = vpop.permute.xlu0 %5253  ;;  %v5355_v49 = vsel %vm2499_vm6, %v5315_v62, %v5311_v51 }
 0xdfc   :  { %v5257_v19 = vpop.permute.xlu1 %5256  ;;  %v5319_v58 = vrot.slane %v5254_v57, %v9550_v45 }
 0xdfd   :  { %v5323_v36 = vrot.slane %v5257_v19, %v9550_v45 }
 0xdfe   :  { %v5356_v38 = vsel %vm2501_vm7, %v5319_v58, %v5355_v49 }
 0xdff   :  { %v5260_v50 = vpop.permute.xlu0 %5259  ;;  %v5357_v1 = vsel %vm2503_vm8, %v5323_v36, %v5356_v38 }
 0xe00   :  { %v5263_v41 = vpop.permute.xlu1 %5262  ;;  %v5327_v37 = vrot.slane %v5260_v50, %v9550_v45 }
 0xe01   :  { %v5331_v20 = vrot.slane %v5263_v41, %v9550_v45 }
 0xe02   :  { %v5358_v14 = vsel %vm2505_vm9, %v5327_v37, %v5357_v1 }
 0xe03   :  { %v5266_v10 = vpop.permute.xlu0 %5265  ;;  %v5359_v44 = vsel %vm2507_vm10, %v5331_v20, %v5358_v14 }
 0xe04   :  { %v5269_v61 = vpop.permute.xlu1 %5268  ;;  %v5335_v6 = vrot.slane %v5266_v10, %v9550_v45 }
 0xe05   :  { %v5339_v2 = vrot.slane %v5269_v61, %v9550_v45 }
 0xe06   :  { %v5360_v54 = vsel %vm5031_vm5, %v5335_v6, %v5359_v44 }
 0xe07   :  { %v5272_v26 = vpop.permute.xlu0 %5271  ;;  %v5361_v33 = vsel %vm5033_vm11, %v5339_v2, %v5360_v54  ;;  %v10435_v54 = vld [vmem:[%s10637_s3 + $0x18] sm:$0xff] }
 0xe08   :  { %v5275_v56 = vpop.permute.xlu1 %5274  ;;  %v5343_v53 = vrot.slane %v5272_v26, %v9550_v45  ;;  %v5369_v17 = vsel %vm5046_vm12, %v5361_v33, 0.0 }
 0xe09   :  { %v5347_v29 = vrot.slane %v5275_v56, %v9550_v45  ;;  %5370 = vadd.xlane.f32.xlu1 %v5369_v17  ;;  %v10446_v56 = vld [vmem:[%s10637_s3 + $0x20] sm:$0xff] }
 0xe0b   :  { %v5362_v22 = vsel %vm2499_vm6, %v5347_v29, %v5343_v53  ;;  %v10457_v29 = vld [vmem:[%s10637_s3 + $0x28] sm:$0xff] }
 0xe0c   :  { %v5372_v30 = vsel %vm5053_vm13, %v5362_v22, 0.0 }
 0xe0d   :  { %5373 = vadd.xlane.f32.xlu0 %v5372_v30 }
 0xe51   :  { %v5368_v40 = vpop.xlane.xlu0 %5367 }
 0xe52   :  { %8649 = vrcp.f32 %v5368_v40  ;;  %v8672_v40 = vld [vmem:[%s10637_s3] sm:$0xff] }
 0xe5f   :  { %v8650_v12 = vpop.eup %8649 }
 0xe60   :  { %v5388_v16 = vrot.slane %v8650_v12, %v9391_v3  ;;  %v5384_v23 = vrot.slane %v8650_v12, %v9132_v35  ;;  %v5392_v62 = vrot.slane %v8650_v12, %v9396_v4  ;;  %v5396_v51 = vrot.slane %v8650_v12, %v9401_v9 }
 0xe61   :  { %v5400_v58 = vrot.slane %v8650_v12, %v9406_v46  ;;  %v5404_v49 = vrot.slane %v8650_v12, %v9501_v55  ;;  %v5408_v36 = vrot.slane %v8650_v12, %v9931_v60  ;;  %v5412_v38 = vrot.slane %v8650_v12, %v9919_v59 }
 0xe62   :  { %v5472_v27 = vmul.f32 %v10264_v15, %v5388_v16  ;;  %v5471_v24 = vmul.f32 %v10262_v52, %v5384_v23  ;;  %v5473_v57 = vmul.f32 %v10270_v47, %v5392_v62  ;;  %v5474_v19 = vmul.f32 %v10276_v28, %v5396_v51 }
 0xe63   :  { %v5475_v15 = vmul.f32 %v10268_v11, %v5400_v58  ;;  %v5476_v52 = vmul.f32 %v10280_v0, %v5404_v49  ;;  %v5477_v47 = vmul.f32 %v10274_v18, %v5408_v36  ;;  %v5478_v28 = vmul.f32 %v10283_v42, %v5412_v38 }
 0xe64   :  { %5571 = vperm.xlu1 %8474, %v5472_v27   ;;  %5491 = vperm.xlu0 %8473, %v5471_v24  }
 0xe68   :  { %5651 = vperm.xlu1 %8474, %v5473_v57   ;;  %5731 = vperm.xlu0 %8473, %v5474_v19  }
 0xe6c   :  { %5811 = vperm.xlu1 %8474, %v5475_v15   ;;  %5891 = vperm.xlu0 %8473, %v5476_v52  }
 0xe70   :  { %5971 = vperm.xlu1 %8474, %v5477_v47   ;;  %6051 = vperm.xlu0 %8473, %v5478_v28  }
 0xe92   :  { %v5371_v50 = vpop.xlane.xlu1 %5370 }
 0xe93   :  { %8651 = vrcp.f32 %v5371_v50 }
 0xe96   :  { %v5374_v41 = vpop.xlane.xlu0 %5373 }
 0xe97   :  { %8653 = vrcp.f32 %v5374_v41 }
 0xea0   :  { %v8652_v37 = vpop.eup %8651 }
 0xea1   :  { %v5416_v11 = vrot.slane %v8652_v37, %v9132_v35  ;;  %v5420_v0 = vrot.slane %v8652_v37, %v9391_v3  ;;  %v5424_v14 = vrot.slane %v8652_v37, %v9396_v4  ;;  %v5428_v18 = vrot.slane %v8652_v37, %v9401_v9 }
 0xea2   :  { %v5432_v61 = vrot.slane %v8652_v37, %v9406_v46  ;;  %v5436_v6 = vrot.slane %v8652_v37, %v9501_v55  ;;  %v5440_v4 = vrot.slane %v8652_v37, %v9931_v60  ;;  %v5444_v9 = vrot.slane %v8652_v37, %v9919_v59 }
 0xea3   :  { %v5479_v20 = vmul.f32 %v10306_v7, %v5416_v11  ;;  %v5480_v1 = vmul.f32 %v10308_v5, %v5420_v0  ;;  %v5481_v42 = vmul.f32 %v10312_v43, %v5424_v14  ;;  %v5482_v10 = vmul.f32 %v10314_v32, %v5428_v18 }
 0xea4   :  { %v5483_v7 = vmul.f32 %v10318_v8, %v5432_v61  ;;  %v5484_v5 = vmul.f32 %v10320_v21, %v5436_v6  ;;  %v8654_v2 = vpop.eup %8653  ;;  %v5485_v43 = vmul.f32 %v10324_v63, %v5440_v4  ;;  %v5486_v32 = vmul.f32 %v10326_v13, %v5444_v9  ;;  %v10424_v13 = vld [vmem:[%s10637_s3 + $0x10] sm:$0xff] }
 0xea5   :  { %6131 = vperm.xlu1 %8474, %v5479_v20   ;;  %6211 = vperm.xlu0 %8473, %v5480_v1   ;;  %v5452_v46 = vrot.slane %v8654_v2, %v9391_v3  ;;  %v5448_v55 = vrot.slane %v8654_v2, %v9132_v35  ;;  %v10413_v3 = vld [vmem:[%s10637_s3 + $0x8] sm:$0xff] }
 0xea7   :  { %v5488_v8 = vmul.f32 %v10332_v39, %v5452_v46  ;;  %v5487_v21 = vmul.f32 %v10330_v31, %v5448_v55 }
 0xea9   :  { %6291 = vperm.xlu1 %8474, %v5481_v42   ;;  %6371 = vperm.xlu0 %8473, %v5482_v10  }
 0xead   :  { %6451 = vperm.xlu1 %8474, %v5483_v7   ;;  %6531 = vperm.xlu0 %8473, %v5484_v5  }
 0xeb1   :  { %6611 = vperm.xlu1 %8474, %v5485_v43   ;;  %6691 = vperm.xlu0 %8473, %v5486_v32  }
 0xeb5   :  { %6851 = vperm.xlu0 %8473, %v5488_v8   ;;  %6771 = vperm.xlu1 %8474, %v5487_v21  }
 0xedf   :  { %v5572_v59 = vpop.permute.xlu1 %5571  ;;  %v5492_v60 = vpop.permute.xlu0 %5491 }
 0xee0   :  { %v5496_v44 = vrot.slane %v5492_v60, %v9550_v45  ;;  %v5576_v35 = vrot.slane %v5572_v59, %v9550_v45 }
 0xee2   :  { %8343 = vmatmul.mubr.msk.f32.vlgmr.msra.gmra.mxu0 %vm5046_vm12, %v5496_v44 }
 0xee3   :  { %8346 = vmatpush3.msra.mxu0 %v10413_v3  ;;  %8347 = vmatprep.mubr.msk.f32.mxu0 %vm8679_vm14, %v8677_v48  ;;  %v5652_v63 = vpop.permute.xlu1 %5651  ;;  %v5732_v39 = vpop.permute.xlu0 %5731 }
 0xee4   :  { %8350 = vmatprep.subr.mxu0 %v8677_v48  ;;  %v5656_v31 = vrot.slane %v5652_v63, %v9550_v45  ;;  %v5736_v26 = vrot.slane %v5732_v39, %v9550_v45 }
 0xee6   :  { %8348 = vmatmul.mubr.msk.f32.vlgmr.msra.gmra.mxu0 %vm5046_vm12, %v5576_v35 }
 0xee7   :  { %8351 = vmatpush3.msra.mxu0 %v10424_v13  ;;  %8352 = vmatprep.mubr.msk.f32.mxu0 %vm8679_vm14, %v8677_v48  ;;  %v5812_v33 = vpop.permute.xlu1 %5811  ;;  %v5892_v17 = vpop.permute.xlu0 %5891 }
 0xee8   :  { %8355 = vmatprep.subr.mxu0 %v8677_v48  ;;  %v5816_v53 = vrot.slane %v5812_v33, %v9550_v45  ;;  %v5896_v22 = vrot.slane %v5892_v17, %v9550_v45 }
 0xeea   :  { %8353 = vmatmul.mubr.msk.f32.vlgmr.msra.gmra.mxu0 %vm5046_vm12, %v5656_v31 }
 0xeeb   :  { %8356 = vmatpush3.msra.mxu0 %v10435_v54  ;;  %8357 = vmatprep.mubr.msk.f32.mxu0 %vm8679_vm14, %v8677_v48  ;;  %v5972_v30 = vpop.permute.xlu1 %5971  ;;  %v6052_v16 = vpop.permute.xlu0 %6051 }
 0xeec   :  { %8360 = vmatprep.subr.mxu0 %v8677_v48  ;;  %v5976_v12 = vrot.slane %v5972_v30, %v9550_v45  ;;  %v6056_v23 = vrot.slane %v6052_v16, %v9550_v45 }
 0xeee   :  { %8358 = vmatmul.mubr.msk.f32.vlgmr.msra.gmra.mxu0 %vm5046_vm12, %v5736_v26 }
 0xeef   :  { %8361 = vmatpush3.msra.mxu0 %v10446_v56  ;;  %8362 = vmatprep.mubr.msk.f32.mxu0 %vm8679_vm14, %v8677_v48 }
 0xef0   :  { %8365 = vmatprep.subr.mxu0 %v8677_v48 }
 0xef2   :  { %8363 = vmatmul.mubr.msk.f32.vlgmr.msra.gmra.mxu0 %vm5046_vm12, %v5816_v53 }
 0xef3   :  { %8366 = vmatpush3.msra.mxu0 %v10457_v29  ;;  %8367 = vmatprep.mubr.msk.f32.mxu0 %vm8679_vm14, %v8677_v48 }
 0xef4   :  { %8370 = vmatprep.subr.mxu0 %v8677_v48 }
 0xef6   :  { %8368 = vmatmul.mubr.msk.f32.vlgmr.msra.gmra.mxu0 %vm5046_vm12, %v5896_v22 }
 0xef7   :  { %8371 = vmatpush3.msra.mxu0 %v8672_v40  ;;  %8372 = vmatprep.mubr.msk.f32.mxu0 %vm8679_vm14, %v8677_v48 }
 0xef8   :  { %8375 = vmatprep.subr.mxu0 %v8677_v48 }
 0xefa   :  { %8373 = vmatmul.mubr.msk.f32.vlgmr.msra.gmra.mxu0 %vm5046_vm12, %v5976_v12 }
 0xefb   :  { %8376 = vmatpush3.msra.mxu0 %v10413_v3  ;;  %8377 = vmatprep.mubr.msk.f32.mxu0 %vm8679_vm14, %v8677_v48 }
 0xefc   :  { %8380 = vmatprep.subr.mxu0 %v8677_v48 }
 0xefe   :  { %8378 = vmatmul.mubr.msk.f32.vlgmr.msra.gmra.mxu0 %vm5046_vm12, %v6056_v23 }
 0xeff   :  { %8381 = vmatpush3.msra.mxu0 %v10424_v13  ;;  %8382 = vmatprep.mubr.msk.f32.mxu0 %vm8679_vm14, %v8677_v48 }
 0xf00   :  { %8390 = vmatprep.subr.mxu0 %v8677_v48 }
 0xf20   :  { %v6132_v27 = vpop.permute.xlu1 %6131  ;;  %v6212_v24 = vpop.permute.xlu0 %6211 }
 0xf21   :  { %v6136_v62 = vrot.slane %v6132_v27, %v9550_v45  ;;  %v6216_v51 = vrot.slane %v6212_v24, %v9550_v45 }
 0xf23   :  { %8383 = vmatmul.mubr.msk.f32.vlgmr.msra.gmra.mxu0 %vm5046_vm12, %v6136_v62  ;;  %8388 = vmatmul.mubr.msk.f32.vlgmr.msra.gmra.mxu1 %vm5046_vm12, %v6216_v51 }
 0xf24   :  { %8391 = vmatpush3.msra.mxu0 %v10446_v56  ;;  %v6292_v57 = vpop.permute.xlu1 %6291  ;;  %8396 = vmatpush3.msra.mxu1 %v10457_v29  ;;  %v6372_v19 = vpop.permute.xlu0 %6371 }
 0xf25   :  { %v6296_v58 = vrot.slane %v6292_v57, %v9550_v45  ;;  %v6376_v49 = vrot.slane %v6372_v19, %v9550_v45  ;;  %8392 = vmatprep.mubr.msk.f32.mxu0 %vm8679_vm14, %v8677_v48  ;;  %8397 = vmatprep.mubr.msk.f32.mxu1 %vm8679_vm14, %v8677_v48 }
 0xf26   :  { %8400 = vmatprep.subr.mxu0 %v8677_v48  ;;  %8405 = vmatprep.subr.mxu1 %v8677_v48 }
 0xf27   :  { %8393 = vmatmul.mubr.msk.f32.vlgmr.msra.gmra.mxu0 %vm5046_vm12, %v6296_v58  ;;  %8398 = vmatmul.mubr.msk.f32.vlgmr.msra.gmra.mxu1 %vm5046_vm12, %v6376_v49 }
 0xf28   :  { %8401 = vmatpush3.msra.mxu0 %v8672_v40  ;;  %v6452_v15 = vpop.permute.xlu1 %6451  ;;  %8406 = vmatpush3.msra.mxu1 %v10413_v3  ;;  %v6532_v52 = vpop.permute.xlu0 %6531 }
 0xf29   :  { %v6456_v36 = vrot.slane %v6452_v15, %v9550_v45  ;;  %v6536_v38 = vrot.slane %v6532_v52, %v9550_v45  ;;  %8402 = vmatprep.mubr.msk.f32.mxu0 %vm8679_vm14, %v8677_v48  ;;  %8407 = vmatprep.mubr.msk.f32.mxu1 %vm8679_vm14, %v8677_v48 }
 0xf2a   :  { %8410 = vmatprep.subr.mxu0 %v8677_v48  ;;  %8415 = vmatprep.subr.mxu1 %v8677_v48 }
 0xf2b   :  { %8403 = vmatmul.mubr.msk.f32.vlgmr.msra.gmra.mxu0 %vm5046_vm12, %v6456_v36  ;;  %8408 = vmatmul.mubr.msk.f32.vlgmr.msra.gmra.mxu1 %vm5046_vm12, %v6536_v38 }
 0xf2c   :  { %8411 = vmatpush3.msra.mxu0 %v10424_v13  ;;  %v6612_v47 = vpop.permute.xlu1 %6611  ;;  %8416 = vmatpush3.msra.mxu1 %v10435_v54  ;;  %v6692_v28 = vpop.permute.xlu0 %6691 }
 0xf2d   :  { %v6616_v50 = vrot.slane %v6612_v47, %v9550_v45  ;;  %v6696_v41 = vrot.slane %v6692_v28, %v9550_v45  ;;  %8412 = vmatprep.mubr.msk.f32.mxu0 %vm8679_vm14, %v8677_v48  ;;  %8417 = vmatprep.mubr.msk.f32.mxu1 %vm8679_vm14, %v8677_v48 }
 0xf2e   :  { %8420 = vmatprep.subr.mxu0 %v8677_v48  ;;  %8425 = vmatprep.subr.mxu1 %v8677_v48 }
 0xf2f   :  { %8413 = vmatmul.mubr.msk.f32.vlgmr.msra.gmra.mxu0 %vm5046_vm12, %v6616_v50  ;;  %8418 = vmatmul.mubr.msk.f32.vlgmr.msra.gmra.mxu1 %vm5046_vm12, %v6696_v41 }
 0xf30   :  { %8421 = vmatpush3.msra.mxu0 %v10446_v56  ;;  %v6772_v37 = vpop.permute.xlu1 %6771  ;;  %8426 = vmatpush3.msra.mxu1 %v10457_v29  ;;  %v6852_v11 = vpop.permute.xlu0 %6851 }
 0xf31   :  { %v6776_v0 = vrot.slane %v6772_v37, %v9550_v45  ;;  %v6856_v20 = vrot.slane %v6852_v11, %v9550_v45  ;;  %8422 = vmatprep.mubr.msk.f32.mxu0 %vm8679_vm14, %v8677_v48  ;;  %8427 = vmatprep.mubr.msk.f32.mxu1 %vm8679_vm14, %v8677_v48  ;;  %v7433_v37 = vld [vmem:[%s10633_s6 + $0xd8] ss:$0 sm:$0xff] }
 0xf32   :  { %8430 = vmatprep.subr.mxu0 %v8677_v48  ;;  %8445 = vmatprep.subr.mxu1 %v8677_v48 }
 0xf33   :  { %8423 = vmatmul.mubr.msk.f32.vlgmr.msra.gmra.mxu0 %vm5046_vm12, %v6776_v0  ;;  %8428 = vmatmul.mubr.msk.f32.vlgmr.msra.gmra.mxu1 %vm5046_vm12, %v6856_v20 }
 0xf34   :  { %8442 = vmatprep.mubr.msk.f32.mxu0 %vm8679_vm14, %v8677_v48  ;;  %8453 = vmatprep.mubr.msk.f32.mxu1 %vm8679_vm14, %v8677_v48 }
 0xfa2   :  { %v5565_v45 = vpop.f32.mrf.mxu0 }
 0xfa4   :  { %v8344_v1 = vpop.f32.mrf.mxu0 }
 0xfa6   :  { %v5645_v14 = vpop.f32.mrf.mxu0 }
 0xfa7   :  { %v6935_v18 = vrot.slane %v5645_v14, 7 }
 0xfa8   :  { %v8349_v42 = vpop.f32.mrf.mxu0 }
 0xfa9   :  { %v6936_v10 = vsel %vm2499_vm6, %v6935_v18, %v5565_v45  ;;  %v3448_v42 = vadd.f32 %v7433_v37, %v9832_v34  ;;  %v7006_v34 = vld [vmem:[%s10633_s6 + $0x1b0] sm:$0xff] }
 0xfaa   :  { %v5725_v61 = vpop.f32.mrf.mxu0  ;;  %8431 = vmatpush3.msra.mxu0 %v7006_v34 }
 0xfab   :  { %v6937_v6 = vrot.slane %v5725_v61, 6  ;;  %8432 = vmatprep.subr.mxu0 %v8677_v48 }
 0xfac   :  { %v8354_v7 = vpop.f32.mrf.mxu0 }
 0xfad   :  { %v6938_v5 = vsel %vm2501_vm7, %v6937_v6, %v6936_v10  ;;  %v3451_v6 = vmax.f32 %v3448_v42, 0.0 }
 0xfae   :  { %v5805_v4 = vpop.f32.mrf.mxu0 }
 0xfaf   :  { %v6939_v9 = vrot.slane %v5805_v4, 5 }
 0xfb0   :  { %v8359_v2 = vpop.f32.mrf.mxu0 }
 0xfb1   :  { %v6940_v43 = vsel %vm2503_vm8, %v6939_v9, %v6938_v5 }
 0xfb2   :  { %v5885_v32 = vpop.f32.mrf.mxu0 }
 0xfb3   :  { %v6941_v46 = vrot.slane %v5885_v32, 4  ;;  %v7005_v32 = vld [vmem:[%s10633_s6 + $0x1a8] sm:$0xff] }
 0xfb4   :  { %v8364_v55 = vpop.f32.mrf.mxu0  ;;  %8433 = vmatpush3.msra.mxu0 %v7005_v32 }
 0xfb5   :  { %v6942_v8 = vsel %vm2505_vm9, %v6941_v46, %v6940_v43  ;;  %v7004_v46 = vld [vmem:[%s10633_s6 + $0x1a0] sm:$0xff]  ;;  %8434 = vmatprep.subr.mxu0 %v8677_v48  ;;  %v7003_v55 = vld [vmem:[%s10633_s6 + $0x198] sm:$0xff] }
 0xfb6   :  { %v5965_v21 = vpop.f32.mrf.mxu0  ;;  %8435 = vmatpush3.msra.mxu0 %v7004_v46 }
 0xfb7   :  { %v6943_v59 = vrot.slane %v5965_v21, 3  ;;  %8436 = vmatprep.subr.mxu0 %v8677_v48  ;;  %v7001_v21 = vld [vmem:[%s10633_s6 + $0x188] sm:$0xff] }
 0xfb8   :  { %v8369_v60 = vpop.f32.mrf.mxu0  ;;  %8437 = vmatpush3.msra.mxu0 %v7003_v55 }
 0xfb9   :  { %v6944_v44 = vsel %vm2507_vm10, %v6943_v59, %v6942_v8  ;;  %v7002_v8 = vld [vmem:[%s10633_s6 + $0x190] sm:$0xff]  ;;  %8438 = vmatprep.subr.mxu0 %v8677_v48  ;;  %v7089_v59 = vld [vmem:[%s10633_s6 + $0x1d8] sm:$0xff] }
 0xfba   :  { %v6045_v3 = vpop.f32.mrf.mxu0  ;;  %8439 = vmatpush3.msra.mxu0 %v7002_v8  ;;  %v7088_v60 = vld [vmem:[%s10633_s6 + $0x1d0] sm:$0xff]  ;;  %8446 = vmatpush3.msra.mxu1 %v7089_v59 }
 0xfbb   :  { %8440 = vmatprep.subr.mxu0 %v8677_v48  ;;  %8447 = vmatprep.subr.mxu1 %v8677_v48 }
 0xfbc   :  { %v8374_v35 = vpop.f32.mrf.mxu0  ;;  %8441 = vmatpush3.msra.mxu0 %v7001_v21  ;;  %8448 = vmatpush3.msra.mxu1 %v7088_v60 }
 0xfbd   :  { %8449 = vmatprep.subr.mxu1 %v8677_v48 }
 0xfbe   :  { %v6125_v63 = vpop.f32.mrf.mxu0 }
 0xfbf   :  { %v6952_v31 = vrot.slane %v6125_v63, 7 }
 0xfc0   :  { %v8379_v13 = vpop.f32.mrf.mxu0 }
 0xfc1   :  { %v6953_v33 = vsel %vm2499_vm6, %v6952_v31, %v6045_v3 }
 0xfe3   :  { %v6205_v39 = vpop.f32.mrf.mxu0  ;;  %v6285_v54 = vpop.f32.mrf.mxu1 }
 0xfe4   :  { %v6954_v26 = vrot.slane %v6205_v39, 6  ;;  %v6956_v56 = vrot.slane %v6285_v54, 5 }
 0xfe5   :  { %v8384_v53 = vpop.f32.mrf.mxu0  ;;  %v8389_v17 = vpop.f32.mrf.mxu1 }
 0xfe6   :  { %v6955_v29 = vsel %vm2501_vm7, %v6954_v26, %v6953_v33  ;;  %v7087_v33 = vld [vmem:[%s10633_s6 + $0x1c8] sm:$0xff]  ;;  %v7489_v53 = vld [vmem:[%s10633_s6 + $0x1b8] ss:$0 sm:$0xff] }
 0xfe7   :  { %v6365_v22 = vpop.f32.mrf.mxu0  ;;  %v6445_v30 = vpop.f32.mrf.mxu1  ;;  %v6957_v16 = vsel %vm2503_vm8, %v6956_v56, %v6955_v29  ;;  %v7086_v56 = vld [vmem:[%s10633_s6 + $0x1c0] sm:$0xff]  ;;  %8450 = vmatpush3.msra.mxu1 %v7087_v33 }
 0xfe8   :  { %v6958_v40 = vrot.slane %v6365_v22, 4  ;;  %v6960_v12 = vrot.slane %v6445_v30, 3  ;;  %8451 = vmatprep.subr.mxu1 %v8677_v48 }
 0xfe9   :  { %v8394_v23 = vpop.f32.mrf.mxu0  ;;  %v8399_v27 = vpop.f32.mrf.mxu1  ;;  %8452 = vmatpush3.msra.mxu1 %v7086_v56 }
 0xfea   :  { %v6959_v24 = vsel %vm2505_vm9, %v6958_v40, %v6957_v16  ;;  %8456 = vmatprep.subr.mxu1 %v8677_v48  ;;  %v7171_v40 = vld [vmem:[%s10633_s6 + $0x1f0] sm:$0xff]  ;;  %v7169_v16 = vld [vmem:[%s10639_s5] sm:$0x3f]  ;;  %s8682_s5 = smov 64  }
 0xfeb   :  { %v6525_v62 = vpop.f32.mrf.mxu0  ;;  %v6605_v51 = vpop.f32.mrf.mxu1  ;;  %v6961_v57 = vsel %vm2507_vm10, %v6960_v12, %v6959_v24  ;;  %v7170_v12 = vld [vmem:[%s10633_s6 + $0x1e8] sm:$0xff]  ;;  %v7491_v23 = vld [vmem:[%s10633_s6 + $0x1e0] ss:$0 sm:$0xff] }
 0xfec   :  { %6962 = vrot.lane.b32.xlu1 %v6961_v57, %s8673_s27  ;;  %v6971_v19 = vrot.slane %v6605_v51, 7  ;;  %v7493_v51 = vld [vmem:[%s10633_s6 + $0x1f8] ss:$0 sm:$0xff] }
 0xfed   :  { %v8404_v58 = vpop.f32.mrf.mxu0  ;;  %v8409_v49 = vpop.f32.mrf.mxu1 }
 0xfee   :  { %v6972_v38 = vsel %vm2499_vm6, %v6971_v19, %v6525_v62  ;;  %vm6987_vm6 = vcmask 390144  }
 0xfef   :  { %v6685_v15 = vpop.f32.mrf.mxu0  ;;  %v6765_v52 = vpop.f32.mrf.mxu1 }
 0xff0   :  { %v6973_v36 = vrot.slane %v6685_v15, 6  ;;  %v6975_v47 = vrot.slane %v6765_v52, 5 }
 0xff1   :  { %v8414_v28 = vpop.f32.mrf.mxu0  ;;  %v8419_v50 = vpop.f32.mrf.mxu1 }
 0xff2   :  { %v6974_v41 = vsel %vm2501_vm7, %v6973_v36, %v6972_v38 }
 0xff3   :  { %v6845_v11 = vpop.f32.mrf.mxu0  ;;  %v6925_v0 = vpop.f32.mrf.mxu1  ;;  %v6976_v1 = vsel %vm2503_vm8, %v6975_v47, %v6974_v41 }
 0xff4   :  { %v6977_v20 = vrot.slane %v6845_v11, 4  ;;  %v6979_v45 = vrot.slane %v6925_v0, 3 }
 0xff5   :  { %v8424_v14 = vpop.f32.mrf.mxu0  ;;  %v8429_v18 = vpop.f32.mrf.mxu1 }
 0xff6   :  { %v6978_v10 = vsel %vm2505_vm9, %v6977_v20, %v6976_v1 }
 0xff7   :  { %v6980_v61 = vsel %vm2507_vm10, %v6979_v45, %v6978_v10 }
 0xff8   :  { %6981 = vrot.lane.b32.xlu0 %v6980_v61, %s8675_s29 }
 0xffc   :  { %7269 = vrot.lane.b32.xlu0 %v3451_v6, %s8675_s29 }
0x105e   :  { %v6963_v7 = vpop.permute.xlu1 %6962 }
0x105f   :  { %v6984_v5 = vsel %vm1229_vm1, %v6944_v44, %v6963_v7 }
0x106a   :  { %v6982_v4 = vpop.permute.xlu0 %6981 }
0x106b   :  { %v6985_v9 = vsel %vm61_vm0, %v6984_v5, %v6982_v4 }
0x106c   :  { %v6986_v2 = vmul.f32 %v6985_v9, %v6985_v9 }
0x106e   :  { %v6988_v43 = vsel %vm6987_vm6, %v6986_v2, 0.0  ;;  %v7270_v15 = vpop.permute.xlu0 %7269 }
0x106f   :  { %6989 = vadd.xlane.f32.xlu1 %v6988_v43  ;;  %v7280_v36 = vsel %vm61_vm0, %v9830_v25, %v7270_v15 }
0x10f8   :  { %v6990_v44 = vpop.xlane.xlu1 %6989 }
0x10f9   :  { %8655 = vrsqrt.f32 %v6990_v44  ;;  %vm6993_vm7 = vcmp.eq.f32.partialorder %v6990_v44, inf  ;;  %v6996_v63 = vand.u32 2147483648, %v6990_v44  ;;  %vm6995_vm8 = vcmp.eq.f32.partialorder %v6990_v44, 0.0 }
0x1106   :  { %v8656_v3 = vpop.eup %8655 }
0x1107   :  { %v6992_v35 = vmul.f32 %v8656_v3, %v6990_v44 }
0x1109   :  { %v6994_v13 = vsel %vm6993_vm7, %v6990_v44, %v6992_v35 }
0x110a   :  { %v6997_v31 = vsel %vm6995_vm8, %v6996_v63, %v6994_v13 }
0x110b   :  { %v6998_v39 = vmax.f32 %v6997_v31, 1e-12 }
0x110d   :  { %8657 = vrcp.f32 %v6998_v39 }
0x111a   :  { %v8658_v54 = vpop.eup %8657 }
0x111b   :  { %v7000_v26 = vmul.f32 %v8658_v54, %v6985_v9 }
0x111d   :  { %8443 = vmatmul.mubr.msk.f32.vlgmr.msra.gmra.mxu0 %vm1232_vm2, %v7000_v26 }
0x11dd   :  { %v7081_v17 = vpop.f32.mrf.mxu0 }
0x11de   :  { %v7082_v29 = vadd.f32 %v7489_v53, %v7081_v17 }
0x11df   :  { %v8444_v22 = vpop.f32.mrf.mxu0 }
0x11e0   :  { %v7085_v30 = vmax.f32 %v7082_v29, 0.0 }
0x11e2   :  { %8454 = vmatmul.mubr.msk.f32.vlgmr.msra.gmra.mxu1 %vm61_vm0, %v7085_v30 }
0x11e3   :  { %8457 = vmatpush3.msra.mxu1 %v7171_v40  ;;  %8460 = vmatprep.mubr.msk.f32.mxu1 %vm8679_vm14, %v8677_v48 }
0x11e4   :  { %8458 = vmatprep.subr.mxu1 %v8677_v48 }
0x11e5   :  { %8459 = vmatpush3.msra.mxu1 %v7170_v12 }
0x11e6   :  { %8461 = vmatmul.mubr.msk.f32.vlgmr.msra.gmra.mxu1 %vm1229_vm1, %v7169_v16  ;;  %vm7283_vm1 = vcmask 654336  }
0x12a2   :  { %v7164_v27 = vpop.f32.mrf.mxu1 }
0x12a3   :  { %v7165_v24 = vadd.f32 %v7491_v23, %v7164_v27 }
0x12a4   :  { %v8455_v62 = vpop.f32.mrf.mxu1 }
0x12a5   :  { %v7168_v57 = vmax.f32 %v7165_v24, 0.0 }
0x12a6   :  { %v7246_v19 = vpop.f32.mrf.mxu1 }
0x12a7   :  { %v7247_v58 = vadd.f32 %v7493_v51, %v7246_v19  ;;  %7273 = vrot.lane.b32.xlu0 %v7168_v57, %s8674_s28 }
0x12a8   :  { %v8462_v48 = vpop.f32.mrf.mxu1 }
0x12a9   :  { %v7250_v49 = vmax.f32 %v7247_v58, 0.0 }
0x12ab   :  { %7277 = vrot.lane.b32.xlu0 %v7250_v49, %s8682_s5 }
0x1319   :  { %v7274_v52 = vpop.permute.xlu0 %7273 }
0x131a   :  { %v7281_v38 = vsel %vm1232_vm2, %v7280_v36, %v7274_v52 }
0x131d   :  { %v7278_v47 = vpop.permute.xlu0 %7277 }
0x131e   :  { %v7282_v28 = vsel %vm1324_vm3, %v7281_v38, %v7278_v47 }
0x131f   :  { %v7284_v50 = vsel %vm7283_vm1, %v7282_v28, 0.0 }
0x1320   :  { %7285 = vst [vmem:[%s10640_s7] sm:$0x3f] %v7284_v50 }

</bundles_post_ra>
